<compile_context>
chip_gen: v7x
topology: tpu7x:2x2x1
jax: 0.10.0
libtpu: 0.0.40
codegen_flags: <defaults>
</compile_context>

<pallas_src>
import math

import jax
import jax.numpy as jnp
from jax import lax
from jax.experimental import pallas as pl
from jax.experimental.pallas import tpu as pltpu

# ----------------------------- small config --------------------------------
CGCNN_FEATURES = 16     # config.cgcnn_features
NODE_FEATURES = 32      # config.node_features
EDGE_FEATURES = 32      # config.edge_features (RBF bins == edge_dim)
OUTPUT_FEATURES = 1     # config.output_features
N_CONV_LAYERS = 4       # config.node_transformer_layers
N_PPE_LAYERS = 3        # config.ppe_layers

_BN_EPS = 1e-5
_LN_EPS = 1e-5
_BN_SCALE = 1.0 / math.sqrt(1.0 + _BN_EPS)   # eval-mode BatchNorm1d, default stats
RBF_VMIN, RBF_VMAX = -6.0, 0.0
RBF_GAMMA = (EDGE_FEATURES - 1) / (RBF_VMAX - RBF_VMIN)   # 1 / mean(diff(centers))


# --------------------- elementwise helpers (kernel-safe, f32) ---------------
def _sigmoid(x):
    return 1.0 / (1.0 + jnp.exp(-x))


def _silu(x):
    return x * _sigmoid(x)


def _softplus(x):
    return jnp.maximum(x, 0.0) + jnp.log(1.0 + jnp.exp(-jnp.abs(x)))


def _erf(x):
    a1, a2, a3, a4, a5 = 0.254829592, -0.284496736, 1.421413741, -1.453152027, 1.061405429
    p = 0.3275911
    s = jnp.where(x < 0.0, -1.0, 1.0)
    ax = jnp.abs(x)
    t = 1.0 / (1.0 + p * ax)
    poly = ((((a5 * t + a4) * t + a3) * t + a2) * t + a1) * t
    return s * (1.0 - poly * jnp.exp(-ax * ax))


def _gelu_exact(x):
    return 0.5 * x * (1.0 + _erf(x * (1.0 / math.sqrt(2.0))))


def _layer_norm(x, g, b):
    mu = jnp.mean(x, axis=-1, keepdims=True)
    var = jnp.mean((x - mu) ** 2, axis=-1, keepdims=True)
    return (x - mu) * jax.lax.rsqrt(var + _LN_EPS) * g + b


# --------------------------- the fused kernel -------------------------------
def _zeoformer_kernel(
    # scalar-prefetch (SMEM) edge indices
    src_ref, dst_ref,
    # raw inputs
    x_ref, dist_ref, cen_ref,
    # embedding weights
    aw1, ab1, aw2, ab2, ew, eb, pw, pb,
    # per-layer (stacked) ZeoformerConv weights, block = 1 layer slab
    wqkv, bqkv, we, be, wmu1, bmu1, wmu2, bmu2,
    lag, lab, wmsg, bmsg, lmg, lmb, wc, bc,
    # per-layer (stacked) PPE_Conv weights (layers >= N_PPE_LAYERS are unused zeros)
    pw1, pb1, pw2, pb2, pw3, pb3,
    # readout
    pool, fcw, fcb, ow, ob, osda,
    # output
    out_ref,
    # VMEM scratch (resident across grid / layers)
    node_scr, ppe_scr, edge_scr, qkv_scr, xi_scr, xj_scr, msg_scr, agg_scr,
):
    C = node_scr.shape[1]
    E = xi_scr.shape[0]
    li = pl.program_id(0)

    def mm(a, w, b=None):
        # bf16 MXU operands, f32 accumulation; elementwise stays f32.
        y = jnp.dot(a.astype(jnp.bfloat16), w, preferred_element_type=jnp.float32)
        return y if b is None else y + b

    # ---- layer 0: fused input embeddings into resident VMEM state ----------
    @pl.when(li == 0)
    def _():
        xf = x_ref[...]
        atom_in = jnp.floor(xf)                                        # torch.floor
        trunc = jnp.where(xf >= 0.0, jnp.floor(xf), -jnp.floor(-xf))   # torch.trunc
        ppe_in = (xf - trunc) * 1000.0                                 # torch.frac * 1000

        h = _silu(mm(atom_in, aw1[...], ab1[...]))
        node_scr[...] = mm(h, aw2[...], ab2[...])
        ppe_scr[...] = mm(ppe_in, pw[...], pb[...])

        diff = dist_ref[...] - cen_ref[...]
        rbf = jnp.exp(-RBF_GAMMA * diff * diff)
        edge_scr[...] = _silu(mm(rbf, ew[...], eb[...]))

    # ---- ZeoformerConv (graph-transformer conv) -----------------------------
    x = node_scr[...]
    qkv_scr[...] = mm(x, wqkv[0], bqkv[0])          # fused q|k|v projection (N, 3C)

    # index-based gather of dst/src rows (no O(E*N) one-hot matmuls)
    unroll = E <= 64

    def gather_body(e, carry):
        d = dst_ref[e]
        s = src_ref[e]
        xi_scr[pl.ds(e, 1), :] = qkv_scr[pl.ds(d, 1), :]
        xj_scr[pl.ds(e, 1), :] = qkv_scr[pl.ds(s, 1), :]
        return carry

    lax.fori_loop(0, E, gather_body, 0, unroll=unroll)

    xi = xi_scr[...]
    xj = xj_scr[...]
    eproj = mm(edge_scr[...], we[0], be[0])

    qi = xi[:, 0:C]
    ki = xi[:, C:2 * C]
    vi = xi[:, 2 * C:3 * C]
    kj = xj[:, C:2 * C]
    vj = xj[:, 2 * C:3 * C]

    inv = 1.0 / math.sqrt(3.0 * C)
    alpha = jnp.concatenate([qi * ki, qi * kj, qi * eproj], axis=1) * inv   # (E,3C)
    v_cat = jnp.concatenate([vi, vj, eproj], axis=1)                        # (E,3C)

    h = _silu(mm(v_cat, wmu1[0], bmu1[0]))
    h = mm(h, wmu2[0], bmu2[0])
    gate = _sigmoid(_layer_norm(alpha, lag[0], lab[0]))
    msg_scr[...] = _layer_norm(mm(h * gate, wmsg[0], bmsg[0]), lmg[0], lmb[0])

    # index-based scatter-add of messages onto dst nodes
    agg_scr[...] = jnp.zeros_like(agg_scr)

    def scatter_body(e, carry):
        d = dst_ref[e]
        agg_scr[pl.ds(d, 1), :] = agg_scr[pl.ds(d, 1), :] + msg_scr[pl.ds(e, 1), :]
        return carry

    lax.fori_loop(0, E, scatter_body, 0, unroll=unroll)

    node = _softplus(x + mm(agg_scr[...], wc[0], bc[0]) * _BN_SCALE)        # eval-mode BN

    # ---- PPE_Conv (first N_PPE_LAYERS layers only) --------------------------
    @pl.when(li < N_PPE_LAYERS)
    def _():
        adj = ppe_scr[...] + node
        adj2 = mm(adj * _BN_SCALE, pw1[0], pb1[0])                          # bn + lin1
        x1 = mm(adj2[:, 0:C], pw2[0], pb2[0])
        x2 = _gelu_exact(adj2[:, C:2 * C])                                  # Dropout -> identity
        node_scr[...] = mm(x1 * x2, pw3[0], pb3[0]) + node
        ppe_scr[...] = adj

    @pl.when(li >= N_PPE_LAYERS)
    def _():
        node_scr[...] = node

    # ---- readout (last layer): mean-pool, fc residual, output head ----------
    @pl.when(li == N_CONV_LAYERS - 1)
    def _():
        feats = node_scr[...]
        pooled = jnp.dot(pool[...], feats, preferred_element_type=jnp.float32)   # (B,C)
        crystal = pooled + _silu(mm(pooled, fcw[...], fcb[...]))
        res = jnp.dot(crystal, ow[...], preferred_element_type=jnp.float32) + ob[...]
        out_ref[...] = res / osda[...]


# ------------------------------ parameters ---------------------------------
def init_params(key):
    C = NODE_FEATURES
    L = N_CONV_LAYERS
    keys = iter(jax.random.split(key, 512))

    def lin(fan_in, fan_out, w_scale=0.5):
        w = (w_scale / math.sqrt(fan_in)) * jax.random.normal(
            next(keys), (fan_in, fan_out), jnp.float32)
        b = 0.01 * jax.random.normal(next(keys), (1, fan_out), jnp.float32)
        return w.astype(jnp.bfloat16), b         # bf16 MXU weights, f32 bias

    def lin_stack(fan_in, fan_out, n, w_scale=0.5):
        ws, bs = [], []
        for _ in range(n):
            w, b = lin(fan_in, fan_out, w_scale)
            ws.append(w)
            bs.append(b)
        return jnp.stack(ws, 0), jnp.stack(bs, 0)

    p = {}
    p["atom_w1"], p["atom_b1"] = lin(CGCNN_FEATURES, C)
    p["atom_w2"], p["atom_b2"] = lin(C, C)
    p["rbf_centers"] = jnp.linspace(RBF_VMIN, RBF_VMAX, EDGE_FEATURES,
                                    dtype=jnp.float32).reshape(1, EDGE_FEATURES)
    p["edge_w"], p["edge_b"] = lin(EDGE_FEATURES, C)
    # ppe input is frac(x)*1000; scale init so the random-weight demo stays finite.
    p["ppe_w"], p["ppe_b"] = lin(CGCNN_FEATURES, C, w_scale=0.5e-3)

    conv = {}
    conv["wqkv"], conv["bqkv"] = lin_stack(C, 3 * C, L)       # fused q|k|v
    conv["we"], conv["be"] = lin_stack(C, C, L)               # lin_edge
    conv["wmu1"], conv["bmu1"] = lin_stack(3 * C, 3 * C, L)
    conv["wmu2"], conv["bmu2"] = lin_stack(3 * C, 3 * C, L)
    conv["wmsg"], conv["bmsg"] = lin_stack(3 * C, C, L)
    conv["wc"], conv["bc"] = lin_stack(C, C, L)
    conv["ln_a_g"] = jnp.ones((L, 1, 3 * C), jnp.float32)
    conv["ln_a_b"] = jnp.zeros((L, 1, 3 * C), jnp.float32)
    conv["ln_m_g"] = jnp.ones((L, 1, C), jnp.float32)
    conv["ln_m_b"] = jnp.zeros((L, 1, C), jnp.float32)
    p["conv"] = conv

    def pad_layers(w, b):
        # pad PPE weights to L layers with zeros; gated off by pl.when in-kernel.
        padw = jnp.zeros((L - N_PPE_LAYERS,) + w.shape[1:], w.dtype)
        padb = jnp.zeros((L - N_PPE_LAYERS,) + b.shape[1:], b.dtype)
        return jnp.concatenate([w, padw], 0), jnp.concatenate([b, padb], 0)

    ppe = {}
    w, b = lin_stack(C, 2 * C, N_PPE_LAYERS)
    ppe["w1"], ppe["b1"] = pad_layers(w, b)
    w, b = lin_stack(C, C, N_PPE_LAYERS)
    ppe["w2"], ppe["b2"] = pad_layers(w, b)
    w, b = lin_stack(C, C, N_PPE_LAYERS)
    ppe["w3"], ppe["b3"] = pad_layers(w, b)
    p["ppe"] = ppe

    p["fc_w"], p["fc_b"] = lin(C, C)
    # tiny output head kept in f32 (precision of the final division)
    p["out_w"] = (0.5 / math.sqrt(C)) * jax.random.normal(
        next(keys), (C, OUTPUT_FEATURES), jnp.float32)
    p["out_b"] = 0.01 * jax.random.normal(next(keys), (1, OUTPUT_FEATURES), jnp.float32)
    return p


# ------------------------------ forward pass --------------------------------
def zeoformer_forward(params, x, edge_index, edge_attr, batch, num_osda):
    N = x.shape[0]
    E = edge_index.shape[1]
    B = num_osda.shape[0]
    C = NODE_FEATURES
    L = N_CONV_LAYERS

    # --- glue: tiny index / norm prep ---
    norm = jnp.linalg.norm(edge_attr, axis=1, keepdims=True)
    dist = -1.0 / jnp.maximum(norm, 1e-12)                     # guarded -1/||e||
    src = edge_index[0].astype(jnp.int32)
    dst = edge_index[1].astype(jnp.int32)
    pool_1h = (batch[None, :] == jnp.arange(B)[:, None]).astype(jnp.float32)
    counts = jnp.maximum(jnp.sum(pool_1h, axis=1, keepdims=True), 1.0)
    pool_mat = pool_1h / counts                                # (B,N) mean pooling
    osda = num_osda.reshape(B, 1)
    osda = jnp.where(jnp.abs(osda) < 1e-12, 1.0, osda)         # guarded division

    p = params
    c = p["conv"]
    q = p["ppe"]

    def full2(a):       # whole 2-D array resident every grid step
        return pl.BlockSpec(a.shape, lambda l, s, d: (0, 0))

    def per_layer(a):   # (L, d1, d2) stacked weights: one layer slab per step
        return pl.BlockSpec((1,) + a.shape[1:], lambda l, s, d: (l, 0, 0))

    inputs = [
        (x, full2(x)), (dist, full2(dist)),
        (p["rbf_centers"], full2(p["rbf_centers"])),
        (p["atom_w1"], full2(p["atom_w1"])), (p["atom_b1"], full2(p["atom_b1"])),
        (p["atom_w2"], full2(p["atom_w2"])), (p["atom_b2"], full2(p["atom_b2"])),
        (p["edge_w"], full2(p["edge_w"])), (p["edge_b"], full2(p["edge_b"])),
        (p["ppe_w"], full2(p["ppe_w"])), (p["ppe_b"], full2(p["ppe_b"])),
    ]
    for k in ("wqkv", "bqkv", "we", "be", "wmu1", "bmu1", "wmu2", "bmu2",
              "ln_a_g", "ln_a_b", "wmsg", "bmsg", "ln_m_g", "ln_m_b", "wc", "bc"):
        inputs.append((c[k], per_layer(c[k])))
    for k in ("w1", "b1", "w2", "b2", "w3", "b3"):
        inputs.append((q[k], per_layer(q[k])))
    for a in (pool_mat, p["fc_w"], p["fc_b"], p["out_w"], p["out_b"], osda):
        inputs.append((a, full2(a)))

    arrays = [a for a, _ in inputs]
    specs = [sp for _, sp in inputs]

    grid_spec = pltpu.PrefetchScalarGridSpec(
        num_scalar_prefetch=2,                  # src, dst -> SMEM, usable in-kernel
        grid=(L,),
        in_specs=specs,
        out_specs=pl.BlockSpec((B, OUTPUT_FEATURES), lambda l, s, d: (0, 0)),
        scratch_shapes=[
            pltpu.VMEM((N, C), jnp.float32),       # node features (resident)
            pltpu.VMEM((N, C), jnp.float32),       # ppe features (resident)
            pltpu.VMEM((E, C), jnp.float32),       # edge features (resident)
            pltpu.VMEM((N, 3 * C), jnp.float32),   # fused q|k|v
            pltpu.VMEM((E, 3 * C), jnp.float32),   # dst-gathered q|k|v
            pltpu.VMEM((E, 3 * C), jnp.float32),   # src-gathered q|k|v
            pltpu.VMEM((E, C), jnp.float32),       # messages
            pltpu.VMEM((N, C), jnp.float32),       # scatter-add accumulator
        ],
    )

    flops = 2 * L * (N * C * 3 * C + E * C * C + 2 * E * 9 * C * C
                     + E * 3 * C * C + 4 * N * C * C + N * C * 2 * C)
    trans = L * (6 * E * C + 4 * N * C)
    bytes_accessed = (sum(int(a.size) * a.dtype.itemsize for a in arrays)
                      + B * OUTPUT_FEATURES * 4 + 2 * E * 4)

    out = pl.pallas_call(
        _zeoformer_kernel,
        out_shape=jax.ShapeDtypeStruct((B, OUTPUT_FEATURES), jnp.float32),
        grid_spec=grid_spec,
        compiler_params=pltpu.CompilerParams(dimension_semantics=("arbitrary",)),
        cost_estimate=pl.CostEstimate(flops=flops, transcendentals=trans,
                                      bytes_accessed=bytes_accessed),
    )(src, dst, *arrays)
    return jnp.squeeze(out)


# ------------------------------------ main ----------------------------------
if __name__ == "__main__":
    key = jax.random.PRNGKey(0)
    k1, k2, k3, k4 = jax.random.split(key, 4)

    N_NODES, N_EDGES, N_GRAPHS = 8, 16, 2
    x = jax.random.uniform(k1, (N_NODES, CGCNN_FEATURES), jnp.float32, 0.0, 5.0)
    edge_attr = jax.random.normal(k2, (N_EDGES, 3), jnp.float32)
    e_src = jax.random.randint(k3, (N_EDGES,), 0, N_NODES)
    e_dst = jax.random.randint(k4, (N_EDGES,), 0, N_NODES)
    edge_index = jnp.stack([e_src, e_dst]).astype(jnp.int32)
    batch = jnp.array([0, 0, 0, 0, 1, 1, 1, 1], jnp.int32)
    num_osda = jnp.array([1.0, 2.0], jnp.float32)

    params = init_params(jax.random.PRNGKey(42))

    fwd = jax.jit(zeoformer_forward)
    out = jax.block_until_ready(fwd(params, x, edge_index, edge_attr, batch, num_osda))
    assert out.shape == (N_GRAPHS,)
    assert bool(jnp.all(jnp.isfinite(out)))
    print("KERNEL_OK")
</pallas_src>

<mosaic_0001>
module attributes {stable_mosaic.version = 11 : i64} {
  func.func @_zeoformer_kernel(%arg0: i32, %arg1: memref<16xi32, #tpu.memory_space<smem>>, %arg2: memref<16xi32, #tpu.memory_space<smem>>, %arg3: memref<8x16xf32, #tpu.memory_space<vmem>>, %arg4: memref<16x1xf32, #tpu.memory_space<vmem>>, %arg5: memref<1x32xf32, #tpu.memory_space<vmem>>, %arg6: memref<16x32xbf16, #tpu.memory_space<vmem>>, %arg7: memref<1x32xf32, #tpu.memory_space<vmem>>, %arg8: memref<32x32xbf16, #tpu.memory_space<vmem>>, %arg9: memref<1x32xf32, #tpu.memory_space<vmem>>, %arg10: memref<32x32xbf16, #tpu.memory_space<vmem>>, %arg11: memref<1x32xf32, #tpu.memory_space<vmem>>, %arg12: memref<16x32xbf16, #tpu.memory_space<vmem>>, %arg13: memref<1x32xf32, #tpu.memory_space<vmem>>, %arg14: memref<1x32x96xbf16, #tpu.memory_space<vmem>>, %arg15: memref<1x1x96xf32, #tpu.memory_space<vmem>>, %arg16: memref<1x32x32xbf16, #tpu.memory_space<vmem>>, %arg17: memref<1x1x32xf32, #tpu.memory_space<vmem>>, %arg18: memref<1x96x96xbf16, #tpu.memory_space<vmem>>, %arg19: memref<1x1x96xf32, #tpu.memory_space<vmem>>, %arg20: memref<1x96x96xbf16, #tpu.memory_space<vmem>>, %arg21: memref<1x1x96xf32, #tpu.memory_space<vmem>>, %arg22: memref<1x1x96xf32, #tpu.memory_space<vmem>>, %arg23: memref<1x1x96xf32, #tpu.memory_space<vmem>>, %arg24: memref<1x96x32xbf16, #tpu.memory_space<vmem>>, %arg25: memref<1x1x32xf32, #tpu.memory_space<vmem>>, %arg26: memref<1x1x32xf32, #tpu.memory_space<vmem>>, %arg27: memref<1x1x32xf32, #tpu.memory_space<vmem>>, %arg28: memref<1x32x32xbf16, #tpu.memory_space<vmem>>, %arg29: memref<1x1x32xf32, #tpu.memory_space<vmem>>, %arg30: memref<1x32x64xbf16, #tpu.memory_space<vmem>>, %arg31: memref<1x1x64xf32, #tpu.memory_space<vmem>>, %arg32: memref<1x32x32xbf16, #tpu.memory_space<vmem>>, %arg33: memref<1x1x32xf32, #tpu.memory_space<vmem>>, %arg34: memref<1x32x32xbf16, #tpu.memory_space<vmem>>, %arg35: memref<1x1x32xf32, #tpu.memory_space<vmem>>, %arg36: memref<2x8xf32, #tpu.memory_space<vmem>>, %arg37: memref<32x32xbf16, #tpu.memory_space<vmem>>, %arg38: memref<1x32xf32, #tpu.memory_space<vmem>>, %arg39: memref<32x1xf32, #tpu.memory_space<vmem>>, %arg40: memref<1x1xf32, #tpu.memory_space<vmem>>, %arg41: memref<2x1xf32, #tpu.memory_space<vmem>>, %arg42: memref<2x1xf32, #tpu.memory_space<vmem>>, %arg43: memref<8x32xf32, #tpu.memory_space<vmem>>, %arg44: memref<8x32xf32, #tpu.memory_space<vmem>>, %arg45: memref<16x32xf32, #tpu.memory_space<vmem>>, %arg46: memref<8x96xf32, #tpu.memory_space<vmem>>, %arg47: memref<16x96xf32, #tpu.memory_space<vmem>>, %arg48: memref<16x96xf32, #tpu.memory_space<vmem>>, %arg49: memref<16x32xf32, #tpu.memory_space<vmem>>, %arg50: memref<8x32xf32, #tpu.memory_space<vmem>>) attributes {dimension_semantics = [#tpu.dimension_semantics<arbitrary>], iteration_bounds = array<i64: 4>, scalar_prefetch = 2 : i64, scratch_operands = 8 : i64, tpu.core_type = #tpu.core_type<tc>, window_params = [{pipeline_mode = #tpu.pipeline_mode<synchronous>, transform_indices = @transform_0, window_bounds = array<i64: 8, 16>}, {pipeline_mode = #tpu.pipeline_mode<synchronous>, transform_indices = @transform_1, window_bounds = array<i64: 16, 1>}, {pipeline_mode = #tpu.pipeline_mode<synchronous>, transform_indices = @transform_2, window_bounds = array<i64: 1, 32>}, {pipeline_mode = #tpu.pipeline_mode<synchronous>, transform_indices = @transform_3, window_bounds = array<i64: 16, 32>}, {pipeline_mode = #tpu.pipeline_mode<synchronous>, transform_indices = @transform_4, window_bounds = array<i64: 1, 32>}, {pipeline_mode = #tpu.pipeline_mode<synchronous>, transform_indices = @transform_5, window_bounds = array<i64: 32, 32>}, {pipeline_mode = #tpu.pipeline_mode<synchronous>, transform_indices = @transform_6, window_bounds = array<i64: 1, 32>}, {pipeline_mode = #tpu.pipeline_mode<synchronous>, transform_indices = @transform_7, window_bounds = array<i64: 32, 32>}, {pipeline_mode = #tpu.pipeline_mode<synchronous>, transform_indices = @transform_8, window_bounds = array<i64: 1, 32>}, {pipeline_mode = #tpu.pipeline_mode<synchronous>, transform_indices = @transform_9, window_bounds = array<i64: 16, 32>}, {pipeline_mode = #tpu.pipeline_mode<synchronous>, transform_indices = @transform_10, window_bounds = array<i64: 1, 32>}, {transform_indices = @transform_11, window_bounds = array<i64: 1, 32, 96>}, {transform_indices = @transform_12, window_bounds = array<i64: 1, 1, 96>}, {transform_indices = @transform_13, window_bounds = array<i64: 1, 32, 32>}, {transform_indices = @transform_14, window_bounds = array<i64: 1, 1, 32>}, {transform_indices = @transform_15, window_bounds = array<i64: 1, 96, 96>}, {transform_indices = @transform_16, window_bounds = array<i64: 1, 1, 96>}, {transform_indices = @transform_17, window_bounds = array<i64: 1, 96, 96>}, {transform_indices = @transform_18, window_bounds = array<i64: 1, 1, 96>}, {transform_indices = @transform_19, window_bounds = array<i64: 1, 1, 96>}, {transform_indices = @transform_20, window_bounds = array<i64: 1, 1, 96>}, {transform_indices = @transform_21, window_bounds = array<i64: 1, 96, 32>}, {transform_indices = @transform_22, window_bounds = array<i64: 1, 1, 32>}, {transform_indices = @transform_23, window_bounds = array<i64: 1, 1, 32>}, {transform_indices = @transform_24, window_bounds = array<i64: 1, 1, 32>}, {transform_indices = @transform_25, window_bounds = array<i64: 1, 32, 32>}, {transform_indices = @transform_26, window_bounds = array<i64: 1, 1, 32>}, {transform_indices = @transform_27, window_bounds = array<i64: 1, 32, 64>}, {transform_indices = @transform_28, window_bounds = array<i64: 1, 1, 64>}, {transform_indices = @transform_29, window_bounds = array<i64: 1, 32, 32>}, {transform_indices = @transform_30, window_bounds = array<i64: 1, 1, 32>}, {transform_indices = @transform_31, window_bounds = array<i64: 1, 32, 32>}, {transform_indices = @transform_32, window_bounds = array<i64: 1, 1, 32>}, {pipeline_mode = #tpu.pipeline_mode<synchronous>, transform_indices = @transform_33, window_bounds = array<i64: 2, 8>}, {pipeline_mode = #tpu.pipeline_mode<synchronous>, transform_indices = @transform_34, window_bounds = array<i64: 32, 32>}, {pipeline_mode = #tpu.pipeline_mode<synchronous>, transform_indices = @transform_35, window_bounds = array<i64: 1, 32>}, {pipeline_mode = #tpu.pipeline_mode<synchronous>, transform_indices = @transform_36, window_bounds = array<i64: 32, 1>}, {pipeline_mode = #tpu.pipeline_mode<synchronous>, transform_indices = @transform_37, window_bounds = array<i64: 1, 1>}, {pipeline_mode = #tpu.pipeline_mode<synchronous>, transform_indices = @transform_38, window_bounds = array<i64: 2, 1>}, {pipeline_mode = #tpu.pipeline_mode<synchronous>, transform_indices = @transform_39, window_bounds = array<i64: 2, 1>}]} {
    %c0_i32 = arith.constant 0 : i32
    %0 = arith.cmpi eq, %arg0, %c0_i32 : i32
    %1 = arith.extui %0 : i1 to i32
    %c0_i32_0 = arith.constant 0 : i32
    %2 = arith.cmpi ne, %1, %c0_i32_0 : i32
    scf.if %2 {
      %c0_227 = arith.constant 0 : index
      %c0_228 = arith.constant 0 : index
      %498 = vector.load %arg3[%c0_227, %c0_228] : memref<8x16xf32, #tpu.memory_space<vmem>>, vector<8x16xf32>
      %499 = math.floor %498 : vector<8x16xf32>
      %cst_229 = arith.constant 0.000000e+00 : f32
      %500 = vector.broadcast %cst_229 : f32 to vector<8x16xf32>
      %501 = arith.cmpf oge, %498, %500 : vector<8x16xf32>
      %502 = math.floor %498 : vector<8x16xf32>
      %cst_230 = arith.constant 0.000000e+00 : f32
      %503 = vector.broadcast %cst_230 : f32 to vector<8x16xf32>
      %504 = arith.subf %503, %498 : vector<8x16xf32>
      %505 = math.floor %504 : vector<8x16xf32>
      %cst_231 = arith.constant 0.000000e+00 : f32
      %506 = vector.broadcast %cst_231 : f32 to vector<8x16xf32>
      %507 = arith.subf %506, %505 : vector<8x16xf32>
      %508 = arith.select %501, %502, %507 : vector<8x16xi1>, vector<8x16xf32>
      %509 = arith.subf %498, %508 : vector<8x16xf32>
      %cst_232 = arith.constant 1.000000e+03 : f32
      %510 = vector.broadcast %cst_232 : f32 to vector<8x16xf32>
      %511 = arith.mulf %509, %510 : vector<8x16xf32>
      %c0_233 = arith.constant 0 : index
      %c0_234 = arith.constant 0 : index
      %512 = vector.load %arg6[%c0_233, %c0_234] : memref<16x32xbf16, #tpu.memory_space<vmem>>, vector<16x32xbf16>
      %c0_235 = arith.constant 0 : index
      %c0_236 = arith.constant 0 : index
      %513 = vector.load %arg7[%c0_235, %c0_236] : memref<1x32xf32, #tpu.memory_space<vmem>>, vector<1x32xf32>
      %514 = arith.truncf %499 : vector<8x16xf32> to vector<8x16xbf16>
      %cst_237 = arith.constant dense<0.000000e+00> : vector<8x32xf32>
      %515 = tpu.matmul %514, %512, %cst_237 {dimension_numbers = #tpu.dot_dimension_numbers<[1], [0], [0], [1], [0, 0, 1, 1], [], []>} : vector<8x16xbf16>, vector<16x32xbf16>, vector<8x32xf32> -> vector<8x32xf32>
      %516 = vector.broadcast %513 : vector<1x32xf32> to vector<8x32xf32>
      %517 = arith.addf %515, %516 : vector<8x32xf32>
      %cst_238 = arith.constant 0.000000e+00 : f32
      %518 = vector.broadcast %cst_238 : f32 to vector<8x32xf32>
      %519 = arith.subf %518, %517 : vector<8x32xf32>
      %520 = math.exp %519 : vector<8x32xf32>
      %cst_239 = arith.constant 1.000000e+00 : f32
      %521 = vector.broadcast %cst_239 : f32 to vector<8x32xf32>
      %522 = arith.addf %521, %520 : vector<8x32xf32>
      %cst_240 = arith.constant 1.000000e+00 : f32
      %523 = vector.broadcast %cst_240 : f32 to vector<8x32xf32>
      %524 = arith.divf %523, %522 : vector<8x32xf32>
      %525 = arith.mulf %517, %524 : vector<8x32xf32>
      %c0_241 = arith.constant 0 : index
      %c0_242 = arith.constant 0 : index
      %526 = vector.load %arg8[%c0_241, %c0_242] : memref<32x32xbf16, #tpu.memory_space<vmem>>, vector<32x32xbf16>
      %c0_243 = arith.constant 0 : index
      %c0_244 = arith.constant 0 : index
      %527 = vector.load %arg9[%c0_243, %c0_244] : memref<1x32xf32, #tpu.memory_space<vmem>>, vector<1x32xf32>
      %528 = arith.truncf %525 : vector<8x32xf32> to vector<8x32xbf16>
      %cst_245 = arith.constant dense<0.000000e+00> : vector<8x32xf32>
      %529 = tpu.matmul %528, %526, %cst_245 {dimension_numbers = #tpu.dot_dimension_numbers<[1], [0], [0], [1], [0, 0, 1, 1], [], []>} : vector<8x32xbf16>, vector<32x32xbf16>, vector<8x32xf32> -> vector<8x32xf32>
      %530 = vector.broadcast %527 : vector<1x32xf32> to vector<8x32xf32>
      %531 = arith.addf %529, %530 : vector<8x32xf32>
      %c0_246 = arith.constant 0 : index
      %c0_247 = arith.constant 0 : index
      %532 = vector.load %arg43[%c0_246, %c0_247] : memref<8x32xf32, #tpu.memory_space<vmem>>, vector<8x32xf32>
      tpu.vector_store %arg43[%c0_246, %c0_247], %531 {strides = array<i32>} : memref<8x32xf32, #tpu.memory_space<vmem>>, vector<8x32xf32>,
      %c0_248 = arith.constant 0 : index
      %c0_249 = arith.constant 0 : index
      %533 = vector.load %arg12[%c0_248, %c0_249] : memref<16x32xbf16, #tpu.memory_space<vmem>>, vector<16x32xbf16>
      %c0_250 = arith.constant 0 : index
      %c0_251 = arith.constant 0 : index
      %534 = vector.load %arg13[%c0_250, %c0_251] : memref<1x32xf32, #tpu.memory_space<vmem>>, vector<1x32xf32>
      %535 = arith.truncf %511 : vector<8x16xf32> to vector<8x16xbf16>
      %cst_252 = arith.constant dense<0.000000e+00> : vector<8x32xf32>
      %536 = tpu.matmul %535, %533, %cst_252 {dimension_numbers = #tpu.dot_dimension_numbers<[1], [0], [0], [1], [0, 0, 1, 1], [], []>} : vector<8x16xbf16>, vector<16x32xbf16>, vector<8x32xf32> -> vector<8x32xf32>
      %537 = vector.broadcast %534 : vector<1x32xf32> to vector<8x32xf32>
      %538 = arith.addf %536, %537 : vector<8x32xf32>
      %c0_253 = arith.constant 0 : index
      %c0_254 = arith.constant 0 : index
      %539 = vector.load %arg44[%c0_253, %c0_254] : memref<8x32xf32, #tpu.memory_space<vmem>>, vector<8x32xf32>
      tpu.vector_store %arg44[%c0_253, %c0_254], %538 {strides = array<i32>} : memref<8x32xf32, #tpu.memory_space<vmem>>, vector<8x32xf32>,
      %c0_255 = arith.constant 0 : index
      %c0_256 = arith.constant 0 : index
      %540 = vector.load %arg4[%c0_255, %c0_256] : memref<16x1xf32, #tpu.memory_space<vmem>>, vector<16x1xf32>
      %c0_257 = arith.constant 0 : index
      %c0_258 = arith.constant 0 : index
      %541 = vector.load %arg5[%c0_257, %c0_258] : memref<1x32xf32, #tpu.memory_space<vmem>>, vector<1x32xf32>
      %542 = vector.broadcast %540 : vector<16x1xf32> to vector<16x32xf32>
      %543 = vector.broadcast %541 : vector<1x32xf32> to vector<16x32xf32>
      %544 = arith.subf %542, %543 : vector<16x32xf32>
      %cst_259 = arith.constant -5.16666651 : f32
      %545 = vector.broadcast %cst_259 : f32 to vector<16x32xf32>
      %546 = arith.mulf %545, %544 : vector<16x32xf32>
      %547 = arith.mulf %546, %544 : vector<16x32xf32>
      %548 = math.exp %547 : vector<16x32xf32>
      %c0_260 = arith.constant 0 : index
      %c0_261 = arith.constant 0 : index
      %549 = vector.load %arg10[%c0_260, %c0_261] : memref<32x32xbf16, #tpu.memory_space<vmem>>, vector<32x32xbf16>
      %c0_262 = arith.constant 0 : index
      %c0_263 = arith.constant 0 : index
      %550 = vector.load %arg11[%c0_262, %c0_263] : memref<1x32xf32, #tpu.memory_space<vmem>>, vector<1x32xf32>
      %551 = arith.truncf %548 : vector<16x32xf32> to vector<16x32xbf16>
      %cst_264 = arith.constant dense<0.000000e+00> : vector<16x32xf32>
      %552 = tpu.matmul %551, %549, %cst_264 {dimension_numbers = #tpu.dot_dimension_numbers<[1], [0], [0], [1], [0, 0, 1, 1], [], []>} : vector<16x32xbf16>, vector<32x32xbf16>, vector<16x32xf32> -> vector<16x32xf32>
      %553 = vector.broadcast %550 : vector<1x32xf32> to vector<16x32xf32>
      %554 = arith.addf %552, %553 : vector<16x32xf32>
      %cst_265 = arith.constant 0.000000e+00 : f32
      %555 = vector.broadcast %cst_265 : f32 to vector<16x32xf32>
      %556 = arith.subf %555, %554 : vector<16x32xf32>
      %557 = math.exp %556 : vector<16x32xf32>
      %cst_266 = arith.constant 1.000000e+00 : f32
      %558 = vector.broadcast %cst_266 : f32 to vector<16x32xf32>
      %559 = arith.addf %558, %557 : vector<16x32xf32>
      %cst_267 = arith.constant 1.000000e+00 : f32
      %560 = vector.broadcast %cst_267 : f32 to vector<16x32xf32>
      %561 = arith.divf %560, %559 : vector<16x32xf32>
      %562 = arith.mulf %554, %561 : vector<16x32xf32>
      %c0_268 = arith.constant 0 : index
      %c0_269 = arith.constant 0 : index
      %563 = vector.load %arg45[%c0_268, %c0_269] : memref<16x32xf32, #tpu.memory_space<vmem>>, vector<16x32xf32>
      tpu.vector_store %arg45[%c0_268, %c0_269], %562 {strides = array<i32>} : memref<16x32xf32, #tpu.memory_space<vmem>>, vector<16x32xf32>,
    } else {
    }
    %c0 = arith.constant 0 : index
    %c0_1 = arith.constant 0 : index
    %3 = vector.load %arg43[%c0, %c0_1] : memref<8x32xf32, #tpu.memory_space<vmem>>, vector<8x32xf32>
    %c0_2 = arith.constant 0 : index
    %c0_3 = arith.constant 0 : index
    %c0_4 = arith.constant 0 : index
    %4 = vector.load %arg14[%c0_2, %c0_3, %c0_4] : memref<1x32x96xbf16, #tpu.memory_space<vmem>>, vector<1x32x96xbf16>
    %5 = vector.shape_cast %4 : vector<1x32x96xbf16> to vector<32x96xbf16>
    %c0_5 = arith.constant 0 : index
    %c0_6 = arith.constant 0 : index
    %c0_7 = arith.constant 0 : index
    %6 = vector.load %arg15[%c0_5, %c0_6, %c0_7] : memref<1x1x96xf32, #tpu.memory_space<vmem>>, vector<1x1x96xf32>
    %7 = vector.shape_cast %6 : vector<1x1x96xf32> to vector<1x96xf32>
    %8 = arith.truncf %3 : vector<8x32xf32> to vector<8x32xbf16>
    %cst = arith.constant dense<0.000000e+00> : vector<8x96xf32>
    %9 = tpu.matmul %8, %5, %cst {dimension_numbers = #tpu.dot_dimension_numbers<[1], [0], [0], [1], [0, 0, 1, 1], [], []>} : vector<8x32xbf16>, vector<32x96xbf16>, vector<8x96xf32> -> vector<8x96xf32>
    %10 = vector.broadcast %7 : vector<1x96xf32> to vector<8x96xf32>
    %11 = arith.addf %9, %10 : vector<8x96xf32>
    %c0_8 = arith.constant 0 : index
    %c0_9 = arith.constant 0 : index
    %12 = vector.load %arg46[%c0_8, %c0_9] : memref<8x96xf32, #tpu.memory_space<vmem>>, vector<8x96xf32>
    tpu.vector_store %arg46[%c0_8, %c0_9], %11 {strides = array<i32>} : memref<8x96xf32, #tpu.memory_space<vmem>>, vector<8x96xf32>,
    %c0_i32_10 = arith.constant 0 : i32
    %13 = arith.index_cast %c0_i32_10 : i32 to index
    %14 = memref.load %arg2[%13] : memref<16xi32, #tpu.memory_space<smem>>
    %15 = arith.index_cast %c0_i32_10 : i32 to index
    %16 = memref.load %arg1[%15] : memref<16xi32, #tpu.memory_space<smem>>
    %17 = arith.index_cast %14 : i32 to index
    %c0_11 = arith.constant 0 : index
    %18 = vector.load %arg46[%17, %c0_11] : memref<8x96xf32, #tpu.memory_space<vmem>>, vector<1x96xf32>
    %19 = arith.index_cast %c0_i32_10 : i32 to index
    %c0_12 = arith.constant 0 : index
    %20 = vector.load %arg47[%19, %c0_12] : memref<16x96xf32, #tpu.memory_space<vmem>>, vector<1x96xf32>
    tpu.vector_store %arg47[%19, %c0_12], %18 {strides = array<i32>} : memref<16x96xf32, #tpu.memory_space<vmem>>, vector<1x96xf32>,
    %21 = arith.index_cast %16 : i32 to index
    %c0_13 = arith.constant 0 : index
    %22 = vector.load %arg46[%21, %c0_13] : memref<8x96xf32, #tpu.memory_space<vmem>>, vector<1x96xf32>
    %23 = arith.index_cast %c0_i32_10 : i32 to index
    %c0_14 = arith.constant 0 : index
    %24 = vector.load %arg48[%23, %c0_14] : memref<16x96xf32, #tpu.memory_space<vmem>>, vector<1x96xf32>
    tpu.vector_store %arg48[%23, %c0_14], %22 {strides = array<i32>} : memref<16x96xf32, #tpu.memory_space<vmem>>, vector<1x96xf32>,
    %c1_i32 = arith.constant 1 : i32
    %25 = arith.index_cast %c1_i32 : i32 to index
    %26 = memref.load %arg2[%25] : memref<16xi32, #tpu.memory_space<smem>>
    %27 = arith.index_cast %c1_i32 : i32 to index
    %28 = memref.load %arg1[%27] : memref<16xi32, #tpu.memory_space<smem>>
    %29 = arith.index_cast %26 : i32 to index
    %c0_15 = arith.constant 0 : index
    %30 = vector.load %arg46[%29, %c0_15] : memref<8x96xf32, #tpu.memory_space<vmem>>, vector<1x96xf32>
    %31 = arith.index_cast %c1_i32 : i32 to index
    %c0_16 = arith.constant 0 : index
    %32 = vector.load %arg47[%31, %c0_16] : memref<16x96xf32, #tpu.memory_space<vmem>>, vector<1x96xf32>
    tpu.vector_store %arg47[%31, %c0_16], %30 {strides = array<i32>} : memref<16x96xf32, #tpu.memory_space<vmem>>, vector<1x96xf32>,
    %33 = arith.index_cast %28 : i32 to index
    %c0_17 = arith.constant 0 : index
    %34 = vector.load %arg46[%33, %c0_17] : memref<8x96xf32, #tpu.memory_space<vmem>>, vector<1x96xf32>
    %35 = arith.index_cast %c1_i32 : i32 to index
    %c0_18 = arith.constant 0 : index
    %36 = vector.load %arg48[%35, %c0_18] : memref<16x96xf32, #tpu.memory_space<vmem>>, vector<1x96xf32>
    tpu.vector_store %arg48[%35, %c0_18], %34 {strides = array<i32>} : memref<16x96xf32, #tpu.memory_space<vmem>>, vector<1x96xf32>,
    %c2_i32 = arith.constant 2 : i32
    %37 = arith.index_cast %c2_i32 : i32 to index
    %38 = memref.load %arg2[%37] : memref<16xi32, #tpu.memory_space<smem>>
    %39 = arith.index_cast %c2_i32 : i32 to index
    %40 = memref.load %arg1[%39] : memref<16xi32, #tpu.memory_space<smem>>
    %41 = arith.index_cast %38 : i32 to index
    %c0_19 = arith.constant 0 : index
    %42 = vector.load %arg46[%41, %c0_19] : memref<8x96xf32, #tpu.memory_space<vmem>>, vector<1x96xf32>
    %43 = arith.index_cast %c2_i32 : i32 to index
    %c0_20 = arith.constant 0 : index
    %44 = vector.load %arg47[%43, %c0_20] : memref<16x96xf32, #tpu.memory_space<vmem>>, vector<1x96xf32>
    tpu.vector_store %arg47[%43, %c0_20], %42 {strides = array<i32>} : memref<16x96xf32, #tpu.memory_space<vmem>>, vector<1x96xf32>,
    %45 = arith.index_cast %40 : i32 to index
    %c0_21 = arith.constant 0 : index
    %46 = vector.load %arg46[%45, %c0_21] : memref<8x96xf32, #tpu.memory_space<vmem>>, vector<1x96xf32>
    %47 = arith.index_cast %c2_i32 : i32 to index
    %c0_22 = arith.constant 0 : index
    %48 = vector.load %arg48[%47, %c0_22] : memref<16x96xf32, #tpu.memory_space<vmem>>, vector<1x96xf32>
    tpu.vector_store %arg48[%47, %c0_22], %46 {strides = array<i32>} : memref<16x96xf32, #tpu.memory_space<vmem>>, vector<1x96xf32>,
    %c3_i32 = arith.constant 3 : i32
    %49 = arith.index_cast %c3_i32 : i32 to index
    %50 = memref.load %arg2[%49] : memref<16xi32, #tpu.memory_space<smem>>
    %51 = arith.index_cast %c3_i32 : i32 to index
    %52 = memref.load %arg1[%51] : memref<16xi32, #tpu.memory_space<smem>>
    %53 = arith.index_cast %50 : i32 to index
    %c0_23 = arith.constant 0 : index
    %54 = vector.load %arg46[%53, %c0_23] : memref<8x96xf32, #tpu.memory_space<vmem>>, vector<1x96xf32>
    %55 = arith.index_cast %c3_i32 : i32 to index
    %c0_24 = arith.constant 0 : index
    %56 = vector.load %arg47[%55, %c0_24] : memref<16x96xf32, #tpu.memory_space<vmem>>, vector<1x96xf32>
    tpu.vector_store %arg47[%55, %c0_24], %54 {strides = array<i32>} : memref<16x96xf32, #tpu.memory_space<vmem>>, vector<1x96xf32>,
    %57 = arith.index_cast %52 : i32 to index
    %c0_25 = arith.constant 0 : index
    %58 = vector.load %arg46[%57, %c0_25] : memref<8x96xf32, #tpu.memory_space<vmem>>, vector<1x96xf32>
    %59 = arith.index_cast %c3_i32 : i32 to index
    %c0_26 = arith.constant 0 : index
    %60 = vector.load %arg48[%59, %c0_26] : memref<16x96xf32, #tpu.memory_space<vmem>>, vector<1x96xf32>
    tpu.vector_store %arg48[%59, %c0_26], %58 {strides = array<i32>} : memref<16x96xf32, #tpu.memory_space<vmem>>, vector<1x96xf32>,
    %c4_i32 = arith.constant 4 : i32
    %61 = arith.index_cast %c4_i32 : i32 to index
    %62 = memref.load %arg2[%61] : memref<16xi32, #tpu.memory_space<smem>>
    %63 = arith.index_cast %c4_i32 : i32 to index
    %64 = memref.load %arg1[%63] : memref<16xi32, #tpu.memory_space<smem>>
    %65 = arith.index_cast %62 : i32 to index
    %c0_27 = arith.constant 0 : index
    %66 = vector.load %arg46[%65, %c0_27] : memref<8x96xf32, #tpu.memory_space<vmem>>, vector<1x96xf32>
    %67 = arith.index_cast %c4_i32 : i32 to index
    %c0_28 = arith.constant 0 : index
    %68 = vector.load %arg47[%67, %c0_28] : memref<16x96xf32, #tpu.memory_space<vmem>>, vector<1x96xf32>
    tpu.vector_store %arg47[%67, %c0_28], %66 {strides = array<i32>} : memref<16x96xf32, #tpu.memory_space<vmem>>, vector<1x96xf32>,
    %69 = arith.index_cast %64 : i32 to index
    %c0_29 = arith.constant 0 : index
    %70 = vector.load %arg46[%69, %c0_29] : memref<8x96xf32, #tpu.memory_space<vmem>>, vector<1x96xf32>
    %71 = arith.index_cast %c4_i32 : i32 to index
    %c0_30 = arith.constant 0 : index
    %72 = vector.load %arg48[%71, %c0_30] : memref<16x96xf32, #tpu.memory_space<vmem>>, vector<1x96xf32>
    tpu.vector_store %arg48[%71, %c0_30], %70 {strides = array<i32>} : memref<16x96xf32, #tpu.memory_space<vmem>>, vector<1x96xf32>,
    %c5_i32 = arith.constant 5 : i32
    %73 = arith.index_cast %c5_i32 : i32 to index
    %74 = memref.load %arg2[%73] : memref<16xi32, #tpu.memory_space<smem>>
    %75 = arith.index_cast %c5_i32 : i32 to index
    %76 = memref.load %arg1[%75] : memref<16xi32, #tpu.memory_space<smem>>
    %77 = arith.index_cast %74 : i32 to index
    %c0_31 = arith.constant 0 : index
    %78 = vector.load %arg46[%77, %c0_31] : memref<8x96xf32, #tpu.memory_space<vmem>>, vector<1x96xf32>
    %79 = arith.index_cast %c5_i32 : i32 to index
    %c0_32 = arith.constant 0 : index
    %80 = vector.load %arg47[%79, %c0_32] : memref<16x96xf32, #tpu.memory_space<vmem>>, vector<1x96xf32>
    tpu.vector_store %arg47[%79, %c0_32], %78 {strides = array<i32>} : memref<16x96xf32, #tpu.memory_space<vmem>>, vector<1x96xf32>,
    %81 = arith.index_cast %76 : i32 to index
    %c0_33 = arith.constant 0 : index
    %82 = vector.load %arg46[%81, %c0_33] : memref<8x96xf32, #tpu.memory_space<vmem>>, vector<1x96xf32>
    %83 = arith.index_cast %c5_i32 : i32 to index
    %c0_34 = arith.constant 0 : index
    %84 = vector.load %arg48[%83, %c0_34] : memref<16x96xf32, #tpu.memory_space<vmem>>, vector<1x96xf32>
    tpu.vector_store %arg48[%83, %c0_34], %82 {strides = array<i32>} : memref<16x96xf32, #tpu.memory_space<vmem>>, vector<1x96xf32>,
    %c6_i32 = arith.constant 6 : i32
    %85 = arith.index_cast %c6_i32 : i32 to index
    %86 = memref.load %arg2[%85] : memref<16xi32, #tpu.memory_space<smem>>
    %87 = arith.index_cast %c6_i32 : i32 to index
    %88 = memref.load %arg1[%87] : memref<16xi32, #tpu.memory_space<smem>>
    %89 = arith.index_cast %86 : i32 to index
    %c0_35 = arith.constant 0 : index
    %90 = vector.load %arg46[%89, %c0_35] : memref<8x96xf32, #tpu.memory_space<vmem>>, vector<1x96xf32>
    %91 = arith.index_cast %c6_i32 : i32 to index
    %c0_36 = arith.constant 0 : index
    %92 = vector.load %arg47[%91, %c0_36] : memref<16x96xf32, #tpu.memory_space<vmem>>, vector<1x96xf32>
    tpu.vector_store %arg47[%91, %c0_36], %90 {strides = array<i32>} : memref<16x96xf32, #tpu.memory_space<vmem>>, vector<1x96xf32>,
    %93 = arith.index_cast %88 : i32 to index
    %c0_37 = arith.constant 0 : index
    %94 = vector.load %arg46[%93, %c0_37] : memref<8x96xf32, #tpu.memory_space<vmem>>, vector<1x96xf32>
    %95 = arith.index_cast %c6_i32 : i32 to index
    %c0_38 = arith.constant 0 : index
    %96 = vector.load %arg48[%95, %c0_38] : memref<16x96xf32, #tpu.memory_space<vmem>>, vector<1x96xf32>
    tpu.vector_store %arg48[%95, %c0_38], %94 {strides = array<i32>} : memref<16x96xf32, #tpu.memory_space<vmem>>, vector<1x96xf32>,
    %c7_i32 = arith.constant 7 : i32
    %97 = arith.index_cast %c7_i32 : i32 to index
    %98 = memref.load %arg2[%97] : memref<16xi32, #tpu.memory_space<smem>>
    %99 = arith.index_cast %c7_i32 : i32 to index
    %100 = memref.load %arg1[%99] : memref<16xi32, #tpu.memory_space<smem>>
    %101 = arith.index_cast %98 : i32 to index
    %c0_39 = arith.constant 0 : index
    %102 = vector.load %arg46[%101, %c0_39] : memref<8x96xf32, #tpu.memory_space<vmem>>, vector<1x96xf32>
    %103 = arith.index_cast %c7_i32 : i32 to index
    %c0_40 = arith.constant 0 : index
    %104 = vector.load %arg47[%103, %c0_40] : memref<16x96xf32, #tpu.memory_space<vmem>>, vector<1x96xf32>
    tpu.vector_store %arg47[%103, %c0_40], %102 {strides = array<i32>} : memref<16x96xf32, #tpu.memory_space<vmem>>, vector<1x96xf32>,
    %105 = arith.index_cast %100 : i32 to index
    %c0_41 = arith.constant 0 : index
    %106 = vector.load %arg46[%105, %c0_41] : memref<8x96xf32, #tpu.memory_space<vmem>>, vector<1x96xf32>
    %107 = arith.index_cast %c7_i32 : i32 to index
    %c0_42 = arith.constant 0 : index
    %108 = vector.load %arg48[%107, %c0_42] : memref<16x96xf32, #tpu.memory_space<vmem>>, vector<1x96xf32>
    tpu.vector_store %arg48[%107, %c0_42], %106 {strides = array<i32>} : memref<16x96xf32, #tpu.memory_space<vmem>>, vector<1x96xf32>,
    %c8_i32 = arith.constant 8 : i32
    %109 = arith.index_cast %c8_i32 : i32 to index
    %110 = memref.load %arg2[%109] : memref<16xi32, #tpu.memory_space<smem>>
    %111 = arith.index_cast %c8_i32 : i32 to index
    %112 = memref.load %arg1[%111] : memref<16xi32, #tpu.memory_space<smem>>
    %113 = arith.index_cast %110 : i32 to index
    %c0_43 = arith.constant 0 : index
    %114 = vector.load %arg46[%113, %c0_43] : memref<8x96xf32, #tpu.memory_space<vmem>>, vector<1x96xf32>
    %115 = arith.index_cast %c8_i32 : i32 to index
    %c0_44 = arith.constant 0 : index
    %116 = vector.load %arg47[%115, %c0_44] : memref<16x96xf32, #tpu.memory_space<vmem>>, vector<1x96xf32>
    tpu.vector_store %arg47[%115, %c0_44], %114 {strides = array<i32>} : memref<16x96xf32, #tpu.memory_space<vmem>>, vector<1x96xf32>,
    %117 = arith.index_cast %112 : i32 to index
    %c0_45 = arith.constant 0 : index
    %118 = vector.load %arg46[%117, %c0_45] : memref<8x96xf32, #tpu.memory_space<vmem>>, vector<1x96xf32>
    %119 = arith.index_cast %c8_i32 : i32 to index
    %c0_46 = arith.constant 0 : index
    %120 = vector.load %arg48[%119, %c0_46] : memref<16x96xf32, #tpu.memory_space<vmem>>, vector<1x96xf32>
    tpu.vector_store %arg48[%119, %c0_46], %118 {strides = array<i32>} : memref<16x96xf32, #tpu.memory_space<vmem>>, vector<1x96xf32>,
    %c9_i32 = arith.constant 9 : i32
    %121 = arith.index_cast %c9_i32 : i32 to index
    %122 = memref.load %arg2[%121] : memref<16xi32, #tpu.memory_space<smem>>
    %123 = arith.index_cast %c9_i32 : i32 to index
    %124 = memref.load %arg1[%123] : memref<16xi32, #tpu.memory_space<smem>>
    %125 = arith.index_cast %122 : i32 to index
    %c0_47 = arith.constant 0 : index
    %126 = vector.load %arg46[%125, %c0_47] : memref<8x96xf32, #tpu.memory_space<vmem>>, vector<1x96xf32>
    %127 = arith.index_cast %c9_i32 : i32 to index
    %c0_48 = arith.constant 0 : index
    %128 = vector.load %arg47[%127, %c0_48] : memref<16x96xf32, #tpu.memory_space<vmem>>, vector<1x96xf32>
    tpu.vector_store %arg47[%127, %c0_48], %126 {strides = array<i32>} : memref<16x96xf32, #tpu.memory_space<vmem>>, vector<1x96xf32>,
    %129 = arith.index_cast %124 : i32 to index
    %c0_49 = arith.constant 0 : index
    %130 = vector.load %arg46[%129, %c0_49] : memref<8x96xf32, #tpu.memory_space<vmem>>, vector<1x96xf32>
    %131 = arith.index_cast %c9_i32 : i32 to index
    %c0_50 = arith.constant 0 : index
    %132 = vector.load %arg48[%131, %c0_50] : memref<16x96xf32, #tpu.memory_space<vmem>>, vector<1x96xf32>
    tpu.vector_store %arg48[%131, %c0_50], %130 {strides = array<i32>} : memref<16x96xf32, #tpu.memory_space<vmem>>, vector<1x96xf32>,
    %c10_i32 = arith.constant 10 : i32
    %133 = arith.index_cast %c10_i32 : i32 to index
    %134 = memref.load %arg2[%133] : memref<16xi32, #tpu.memory_space<smem>>
    %135 = arith.index_cast %c10_i32 : i32 to index
    %136 = memref.load %arg1[%135] : memref<16xi32, #tpu.memory_space<smem>>
    %137 = arith.index_cast %134 : i32 to index
    %c0_51 = arith.constant 0 : index
    %138 = vector.load %arg46[%137, %c0_51] : memref<8x96xf32, #tpu.memory_space<vmem>>, vector<1x96xf32>
    %139 = arith.index_cast %c10_i32 : i32 to index
    %c0_52 = arith.constant 0 : index
    %140 = vector.load %arg47[%139, %c0_52] : memref<16x96xf32, #tpu.memory_space<vmem>>, vector<1x96xf32>
    tpu.vector_store %arg47[%139, %c0_52], %138 {strides = array<i32>} : memref<16x96xf32, #tpu.memory_space<vmem>>, vector<1x96xf32>,
    %141 = arith.index_cast %136 : i32 to index
    %c0_53 = arith.constant 0 : index
    %142 = vector.load %arg46[%141, %c0_53] : memref<8x96xf32, #tpu.memory_space<vmem>>, vector<1x96xf32>
    %143 = arith.index_cast %c10_i32 : i32 to index
    %c0_54 = arith.constant 0 : index
    %144 = vector.load %arg48[%143, %c0_54] : memref<16x96xf32, #tpu.memory_space<vmem>>, vector<1x96xf32>
    tpu.vector_store %arg48[%143, %c0_54], %142 {strides = array<i32>} : memref<16x96xf32, #tpu.memory_space<vmem>>, vector<1x96xf32>,
    %c11_i32 = arith.constant 11 : i32
    %145 = arith.index_cast %c11_i32 : i32 to index
    %146 = memref.load %arg2[%145] : memref<16xi32, #tpu.memory_space<smem>>
    %147 = arith.index_cast %c11_i32 : i32 to index
    %148 = memref.load %arg1[%147] : memref<16xi32, #tpu.memory_space<smem>>
    %149 = arith.index_cast %146 : i32 to index
    %c0_55 = arith.constant 0 : index
    %150 = vector.load %arg46[%149, %c0_55] : memref<8x96xf32, #tpu.memory_space<vmem>>, vector<1x96xf32>
    %151 = arith.index_cast %c11_i32 : i32 to index
    %c0_56 = arith.constant 0 : index
    %152 = vector.load %arg47[%151, %c0_56] : memref<16x96xf32, #tpu.memory_space<vmem>>, vector<1x96xf32>
    tpu.vector_store %arg47[%151, %c0_56], %150 {strides = array<i32>} : memref<16x96xf32, #tpu.memory_space<vmem>>, vector<1x96xf32>,
    %153 = arith.index_cast %148 : i32 to index
    %c0_57 = arith.constant 0 : index
    %154 = vector.load %arg46[%153, %c0_57] : memref<8x96xf32, #tpu.memory_space<vmem>>, vector<1x96xf32>
    %155 = arith.index_cast %c11_i32 : i32 to index
    %c0_58 = arith.constant 0 : index
    %156 = vector.load %arg48[%155, %c0_58] : memref<16x96xf32, #tpu.memory_space<vmem>>, vector<1x96xf32>
    tpu.vector_store %arg48[%155, %c0_58], %154 {strides = array<i32>} : memref<16x96xf32, #tpu.memory_space<vmem>>, vector<1x96xf32>,
    %c12_i32 = arith.constant 12 : i32
    %157 = arith.index_cast %c12_i32 : i32 to index
    %158 = memref.load %arg2[%157] : memref<16xi32, #tpu.memory_space<smem>>
    %159 = arith.index_cast %c12_i32 : i32 to index
    %160 = memref.load %arg1[%159] : memref<16xi32, #tpu.memory_space<smem>>
    %161 = arith.index_cast %158 : i32 to index
    %c0_59 = arith.constant 0 : index
    %162 = vector.load %arg46[%161, %c0_59] : memref<8x96xf32, #tpu.memory_space<vmem>>, vector<1x96xf32>
    %163 = arith.index_cast %c12_i32 : i32 to index
    %c0_60 = arith.constant 0 : index
    %164 = vector.load %arg47[%163, %c0_60] : memref<16x96xf32, #tpu.memory_space<vmem>>, vector<1x96xf32>
    tpu.vector_store %arg47[%163, %c0_60], %162 {strides = array<i32>} : memref<16x96xf32, #tpu.memory_space<vmem>>, vector<1x96xf32>,
    %165 = arith.index_cast %160 : i32 to index
    %c0_61 = arith.constant 0 : index
    %166 = vector.load %arg46[%165, %c0_61] : memref<8x96xf32, #tpu.memory_space<vmem>>, vector<1x96xf32>
    %167 = arith.index_cast %c12_i32 : i32 to index
    %c0_62 = arith.constant 0 : index
    %168 = vector.load %arg48[%167, %c0_62] : memref<16x96xf32, #tpu.memory_space<vmem>>, vector<1x96xf32>
    tpu.vector_store %arg48[%167, %c0_62], %166 {strides = array<i32>} : memref<16x96xf32, #tpu.memory_space<vmem>>, vector<1x96xf32>,
    %c13_i32 = arith.constant 13 : i32
    %169 = arith.index_cast %c13_i32 : i32 to index
    %170 = memref.load %arg2[%169] : memref<16xi32, #tpu.memory_space<smem>>
    %171 = arith.index_cast %c13_i32 : i32 to index
    %172 = memref.load %arg1[%171] : memref<16xi32, #tpu.memory_space<smem>>
    %173 = arith.index_cast %170 : i32 to index
    %c0_63 = arith.constant 0 : index
    %174 = vector.load %arg46[%173, %c0_63] : memref<8x96xf32, #tpu.memory_space<vmem>>, vector<1x96xf32>
    %175 = arith.index_cast %c13_i32 : i32 to index
    %c0_64 = arith.constant 0 : index
    %176 = vector.load %arg47[%175, %c0_64] : memref<16x96xf32, #tpu.memory_space<vmem>>, vector<1x96xf32>
    tpu.vector_store %arg47[%175, %c0_64], %174 {strides = array<i32>} : memref<16x96xf32, #tpu.memory_space<vmem>>, vector<1x96xf32>,
    %177 = arith.index_cast %172 : i32 to index
    %c0_65 = arith.constant 0 : index
    %178 = vector.load %arg46[%177, %c0_65] : memref<8x96xf32, #tpu.memory_space<vmem>>, vector<1x96xf32>
    %179 = arith.index_cast %c13_i32 : i32 to index
    %c0_66 = arith.constant 0 : index
    %180 = vector.load %arg48[%179, %c0_66] : memref<16x96xf32, #tpu.memory_space<vmem>>, vector<1x96xf32>
    tpu.vector_store %arg48[%179, %c0_66], %178 {strides = array<i32>} : memref<16x96xf32, #tpu.memory_space<vmem>>, vector<1x96xf32>,
    %c14_i32 = arith.constant 14 : i32
    %181 = arith.index_cast %c14_i32 : i32 to index
    %182 = memref.load %arg2[%181] : memref<16xi32, #tpu.memory_space<smem>>
    %183 = arith.index_cast %c14_i32 : i32 to index
    %184 = memref.load %arg1[%183] : memref<16xi32, #tpu.memory_space<smem>>
    %185 = arith.index_cast %182 : i32 to index
    %c0_67 = arith.constant 0 : index
    %186 = vector.load %arg46[%185, %c0_67] : memref<8x96xf32, #tpu.memory_space<vmem>>, vector<1x96xf32>
    %187 = arith.index_cast %c14_i32 : i32 to index
    %c0_68 = arith.constant 0 : index
    %188 = vector.load %arg47[%187, %c0_68] : memref<16x96xf32, #tpu.memory_space<vmem>>, vector<1x96xf32>
    tpu.vector_store %arg47[%187, %c0_68], %186 {strides = array<i32>} : memref<16x96xf32, #tpu.memory_space<vmem>>, vector<1x96xf32>,
    %189 = arith.index_cast %184 : i32 to index
    %c0_69 = arith.constant 0 : index
    %190 = vector.load %arg46[%189, %c0_69] : memref<8x96xf32, #tpu.memory_space<vmem>>, vector<1x96xf32>
    %191 = arith.index_cast %c14_i32 : i32 to index
    %c0_70 = arith.constant 0 : index
    %192 = vector.load %arg48[%191, %c0_70] : memref<16x96xf32, #tpu.memory_space<vmem>>, vector<1x96xf32>
    tpu.vector_store %arg48[%191, %c0_70], %190 {strides = array<i32>} : memref<16x96xf32, #tpu.memory_space<vmem>>, vector<1x96xf32>,
    %c15_i32 = arith.constant 15 : i32
    %193 = arith.index_cast %c15_i32 : i32 to index
    %194 = memref.load %arg2[%193] : memref<16xi32, #tpu.memory_space<smem>>
    %195 = arith.index_cast %c15_i32 : i32 to index
    %196 = memref.load %arg1[%195] : memref<16xi32, #tpu.memory_space<smem>>
    %197 = arith.index_cast %194 : i32 to index
    %c0_71 = arith.constant 0 : index
    %198 = vector.load %arg46[%197, %c0_71] : memref<8x96xf32, #tpu.memory_space<vmem>>, vector<1x96xf32>
    %199 = arith.index_cast %c15_i32 : i32 to index
    %c0_72 = arith.constant 0 : index
    %200 = vector.load %arg47[%199, %c0_72] : memref<16x96xf32, #tpu.memory_space<vmem>>, vector<1x96xf32>
    tpu.vector_store %arg47[%199, %c0_72], %198 {strides = array<i32>} : memref<16x96xf32, #tpu.memory_space<vmem>>, vector<1x96xf32>,
    %201 = arith.index_cast %196 : i32 to index
    %c0_73 = arith.constant 0 : index
    %202 = vector.load %arg46[%201, %c0_73] : memref<8x96xf32, #tpu.memory_space<vmem>>, vector<1x96xf32>
    %203 = arith.index_cast %c15_i32 : i32 to index
    %c0_74 = arith.constant 0 : index
    %204 = vector.load %arg48[%203, %c0_74] : memref<16x96xf32, #tpu.memory_space<vmem>>, vector<1x96xf32>
    tpu.vector_store %arg48[%203, %c0_74], %202 {strides = array<i32>} : memref<16x96xf32, #tpu.memory_space<vmem>>, vector<1x96xf32>,
    %c16_i32 = arith.constant 16 : i32
    %c0_75 = arith.constant 0 : index
    %c0_76 = arith.constant 0 : index
    %205 = vector.load %arg47[%c0_75, %c0_76] : memref<16x96xf32, #tpu.memory_space<vmem>>, vector<16x96xf32>
    %c0_77 = arith.constant 0 : index
    %c0_78 = arith.constant 0 : index
    %206 = vector.load %arg48[%c0_77, %c0_78] : memref<16x96xf32, #tpu.memory_space<vmem>>, vector<16x96xf32>
    %c0_79 = arith.constant 0 : index
    %c0_80 = arith.constant 0 : index
    %207 = vector.load %arg45[%c0_79, %c0_80] : memref<16x32xf32, #tpu.memory_space<vmem>>, vector<16x32xf32>
    %c0_81 = arith.constant 0 : index
    %c0_82 = arith.constant 0 : index
    %c0_83 = arith.constant 0 : index
    %208 = vector.load %arg16[%c0_81, %c0_82, %c0_83] : memref<1x32x32xbf16, #tpu.memory_space<vmem>>, vector<1x32x32xbf16>
    %209 = vector.shape_cast %208 : vector<1x32x32xbf16> to vector<32x32xbf16>
    %c0_84 = arith.constant 0 : index
    %c0_85 = arith.constant 0 : index
    %c0_86 = arith.constant 0 : index
    %210 = vector.load %arg17[%c0_84, %c0_85, %c0_86] : memref<1x1x32xf32, #tpu.memory_space<vmem>>, vector<1x1x32xf32>
    %211 = vector.shape_cast %210 : vector<1x1x32xf32> to vector<1x32xf32>
    %212 = arith.truncf %207 : vector<16x32xf32> to vector<16x32xbf16>
    %cst_87 = arith.constant dense<0.000000e+00> : vector<16x32xf32>
    %213 = tpu.matmul %212, %209, %cst_87 {dimension_numbers = #tpu.dot_dimension_numbers<[1], [0], [0], [1], [0, 0, 1, 1], [], []>} : vector<16x32xbf16>, vector<32x32xbf16>, vector<16x32xf32> -> vector<16x32xf32>
    %214 = vector.broadcast %211 : vector<1x32xf32> to vector<16x32xf32>
    %215 = arith.addf %213, %214 : vector<16x32xf32>
    %216 = vector.extract_strided_slice %205 {offsets = [0, 0], sizes = [16, 32], strides = [1, 1]} : vector<16x96xf32> to vector<16x32xf32>
    %217 = vector.extract_strided_slice %205 {offsets = [0, 32], sizes = [16, 32], strides = [1, 1]} : vector<16x96xf32> to vector<16x32xf32>
    %218 = vector.extract_strided_slice %205 {offsets = [0, 64], sizes = [16, 32], strides = [1, 1]} : vector<16x96xf32> to vector<16x32xf32>
    %219 = vector.extract_strided_slice %206 {offsets = [0, 32], sizes = [16, 32], strides = [1, 1]} : vector<16x96xf32> to vector<16x32xf32>
    %220 = vector.extract_strided_slice %206 {offsets = [0, 64], sizes = [16, 32], strides = [1, 1]} : vector<16x96xf32> to vector<16x32xf32>
    %221 = arith.mulf %216, %217 : vector<16x32xf32>
    %222 = arith.mulf %216, %219 : vector<16x32xf32>
    %223 = arith.mulf %216, %215 : vector<16x32xf32>
    %224 = tpu.concatenate %221, %222, %223 in 1 : vector<16x32xf32>, vector<16x32xf32>, vector<16x32xf32> -> vector<16x96xf32>
    %cst_88 = arith.constant 0.102062076 : f32
    %225 = vector.broadcast %cst_88 : f32 to vector<16x96xf32>
    %226 = arith.mulf %224, %225 : vector<16x96xf32>
    %227 = tpu.concatenate %218, %220, %215 in 1 : vector<16x32xf32>, vector<16x32xf32>, vector<16x32xf32> -> vector<16x96xf32>
    %c0_89 = arith.constant 0 : index
    %c0_90 = arith.constant 0 : index
    %c0_91 = arith.constant 0 : index
    %228 = vector.load %arg18[%c0_89, %c0_90, %c0_91] : memref<1x96x96xbf16, #tpu.memory_space<vmem>>, vector<1x96x96xbf16>
    %229 = vector.shape_cast %228 : vector<1x96x96xbf16> to vector<96x96xbf16>
    %c0_92 = arith.constant 0 : index
    %c0_93 = arith.constant 0 : index
    %c0_94 = arith.constant 0 : index
    %230 = vector.load %arg19[%c0_92, %c0_93, %c0_94] : memref<1x1x96xf32, #tpu.memory_space<vmem>>, vector<1x1x96xf32>
    %231 = vector.shape_cast %230 : vector<1x1x96xf32> to vector<1x96xf32>
    %232 = arith.truncf %227 : vector<16x96xf32> to vector<16x96xbf16>
    %cst_95 = arith.constant dense<0.000000e+00> : vector<16x96xf32>
    %233 = tpu.matmul %232, %229, %cst_95 {dimension_numbers = #tpu.dot_dimension_numbers<[1], [0], [0], [1], [0, 0, 1, 1], [], []>} : vector<16x96xbf16>, vector<96x96xbf16>, vector<16x96xf32> -> vector<16x96xf32>
    %234 = vector.broadcast %231 : vector<1x96xf32> to vector<16x96xf32>
    %235 = arith.addf %233, %234 : vector<16x96xf32>
    %cst_96 = arith.constant 0.000000e+00 : f32
    %236 = vector.broadcast %cst_96 : f32 to vector<16x96xf32>
    %237 = arith.subf %236, %235 : vector<16x96xf32>
    %238 = math.exp %237 : vector<16x96xf32>
    %cst_97 = arith.constant 1.000000e+00 : f32
    %239 = vector.broadcast %cst_97 : f32 to vector<16x96xf32>
    %240 = arith.addf %239, %238 : vector<16x96xf32>
    %cst_98 = arith.constant 1.000000e+00 : f32
    %241 = vector.broadcast %cst_98 : f32 to vector<16x96xf32>
    %242 = arith.divf %241, %240 : vector<16x96xf32>
    %243 = arith.mulf %235, %242 : vector<16x96xf32>
    %c0_99 = arith.constant 0 : index
    %c0_100 = arith.constant 0 : index
    %c0_101 = arith.constant 0 : index
    %244 = vector.load %arg20[%c0_99, %c0_100, %c0_101] : memref<1x96x96xbf16, #tpu.memory_space<vmem>>, vector<1x96x96xbf16>
    %245 = vector.shape_cast %244 : vector<1x96x96xbf16> to vector<96x96xbf16>
    %c0_102 = arith.constant 0 : index
    %c0_103 = arith.constant 0 : index
    %c0_104 = arith.constant 0 : index
    %246 = vector.load %arg21[%c0_102, %c0_103, %c0_104] : memref<1x1x96xf32, #tpu.memory_space<vmem>>, vector<1x1x96xf32>
    %247 = vector.shape_cast %246 : vector<1x1x96xf32> to vector<1x96xf32>
    %248 = arith.truncf %243 : vector<16x96xf32> to vector<16x96xbf16>
    %cst_105 = arith.constant dense<0.000000e+00> : vector<16x96xf32>
    %249 = tpu.matmul %248, %245, %cst_105 {dimension_numbers = #tpu.dot_dimension_numbers<[1], [0], [0], [1], [0, 0, 1, 1], [], []>} : vector<16x96xbf16>, vector<96x96xbf16>, vector<16x96xf32> -> vector<16x96xf32>
    %250 = vector.broadcast %247 : vector<1x96xf32> to vector<16x96xf32>
    %251 = arith.addf %249, %250 : vector<16x96xf32>
    %c0_106 = arith.constant 0 : index
    %c0_107 = arith.constant 0 : index
    %c0_108 = arith.constant 0 : index
    %252 = vector.load %arg22[%c0_106, %c0_107, %c0_108] : memref<1x1x96xf32, #tpu.memory_space<vmem>>, vector<1x1x96xf32>
    %253 = vector.shape_cast %252 : vector<1x1x96xf32> to vector<1x96xf32>
    %c0_109 = arith.constant 0 : index
    %c0_110 = arith.constant 0 : index
    %c0_111 = arith.constant 0 : index
    %254 = vector.load %arg23[%c0_109, %c0_110, %c0_111] : memref<1x1x96xf32, #tpu.memory_space<vmem>>, vector<1x1x96xf32>
    %255 = vector.shape_cast %254 : vector<1x1x96xf32> to vector<1x96xf32>
    %cst_112 = arith.constant dense<0.000000e+00> : vector<16xf32>
    %256 = vector.multi_reduction <add>, %226, %cst_112 [1] : vector<16x96xf32> to vector<16xf32>
    %257 = vector.shape_cast %256 : vector<16xf32> to vector<16x1xf32>
    %cst_113 = arith.constant 9.600000e+01 : f32
    %258 = vector.broadcast %cst_113 : f32 to vector<16x1xf32>
    %259 = arith.divf %257, %258 : vector<16x1xf32>
    %260 = vector.broadcast %259 : vector<16x1xf32> to vector<16x96xf32>
    %261 = arith.subf %226, %260 : vector<16x96xf32>
    %262 = arith.mulf %261, %261 : vector<16x96xf32>
    %cst_114 = arith.constant dense<0.000000e+00> : vector<16xf32>
    %263 = vector.multi_reduction <add>, %262, %cst_114 [1] : vector<16x96xf32> to vector<16xf32>
    %264 = vector.shape_cast %263 : vector<16xf32> to vector<16x1xf32>
    %cst_115 = arith.constant 9.600000e+01 : f32
    %265 = vector.broadcast %cst_115 : f32 to vector<16x1xf32>
    %266 = arith.divf %264, %265 : vector<16x1xf32>
    %267 = vector.broadcast %259 : vector<16x1xf32> to vector<16x96xf32>
    %268 = arith.subf %226, %267 : vector<16x96xf32>
    %cst_116 = arith.constant 9.99999974E-6 : f32
    %269 = vector.broadcast %cst_116 : f32 to vector<16x1xf32>
    %270 = arith.addf %266, %269 : vector<16x1xf32>
    %271 = math.rsqrt %270 : vector<16x1xf32>
    %272 = vector.broadcast %271 : vector<16x1xf32> to vector<16x96xf32>
    %273 = arith.mulf %268, %272 : vector<16x96xf32>
    %274 = vector.broadcast %253 : vector<1x96xf32> to vector<16x96xf32>
    %275 = arith.mulf %273, %274 : vector<16x96xf32>
    %276 = vector.broadcast %255 : vector<1x96xf32> to vector<16x96xf32>
    %277 = arith.addf %275, %276 : vector<16x96xf32>
    %cst_117 = arith.constant 0.000000e+00 : f32
    %278 = vector.broadcast %cst_117 : f32 to vector<16x96xf32>
    %279 = arith.subf %278, %277 : vector<16x96xf32>
    %280 = math.exp %279 : vector<16x96xf32>
    %cst_118 = arith.constant 1.000000e+00 : f32
    %281 = vector.broadcast %cst_118 : f32 to vector<16x96xf32>
    %282 = arith.addf %281, %280 : vector<16x96xf32>
    %cst_119 = arith.constant 1.000000e+00 : f32
    %283 = vector.broadcast %cst_119 : f32 to vector<16x96xf32>
    %284 = arith.divf %283, %282 : vector<16x96xf32>
    %285 = arith.mulf %251, %284 : vector<16x96xf32>
    %c0_120 = arith.constant 0 : index
    %c0_121 = arith.constant 0 : index
    %c0_122 = arith.constant 0 : index
    %286 = vector.load %arg24[%c0_120, %c0_121, %c0_122] : memref<1x96x32xbf16, #tpu.memory_space<vmem>>, vector<1x96x32xbf16>
    %287 = vector.shape_cast %286 : vector<1x96x32xbf16> to vector<96x32xbf16>
    %c0_123 = arith.constant 0 : index
    %c0_124 = arith.constant 0 : index
    %c0_125 = arith.constant 0 : index
    %288 = vector.load %arg25[%c0_123, %c0_124, %c0_125] : memref<1x1x32xf32, #tpu.memory_space<vmem>>, vector<1x1x32xf32>
    %289 = vector.shape_cast %288 : vector<1x1x32xf32> to vector<1x32xf32>
    %290 = arith.truncf %285 : vector<16x96xf32> to vector<16x96xbf16>
    %cst_126 = arith.constant dense<0.000000e+00> : vector<16x32xf32>
    %291 = tpu.matmul %290, %287, %cst_126 {dimension_numbers = #tpu.dot_dimension_numbers<[1], [0], [0], [1], [0, 0, 1, 1], [], []>} : vector<16x96xbf16>, vector<96x32xbf16>, vector<16x32xf32> -> vector<16x32xf32>
    %292 = vector.broadcast %289 : vector<1x32xf32> to vector<16x32xf32>
    %293 = arith.addf %291, %292 : vector<16x32xf32>
    %c0_127 = arith.constant 0 : index
    %c0_128 = arith.constant 0 : index
    %c0_129 = arith.constant 0 : index
    %294 = vector.load %arg26[%c0_127, %c0_128, %c0_129] : memref<1x1x32xf32, #tpu.memory_space<vmem>>, vector<1x1x32xf32>
    %295 = vector.shape_cast %294 : vector<1x1x32xf32> to vector<1x32xf32>
    %c0_130 = arith.constant 0 : index
    %c0_131 = arith.constant 0 : index
    %c0_132 = arith.constant 0 : index
    %296 = vector.load %arg27[%c0_130, %c0_131, %c0_132] : memref<1x1x32xf32, #tpu.memory_space<vmem>>, vector<1x1x32xf32>
    %297 = vector.shape_cast %296 : vector<1x1x32xf32> to vector<1x32xf32>
    %cst_133 = arith.constant dense<0.000000e+00> : vector<16xf32>
    %298 = vector.multi_reduction <add>, %293, %cst_133 [1] : vector<16x32xf32> to vector<16xf32>
    %299 = vector.shape_cast %298 : vector<16xf32> to vector<16x1xf32>
    %cst_134 = arith.constant 3.200000e+01 : f32
    %300 = vector.broadcast %cst_134 : f32 to vector<16x1xf32>
    %301 = arith.divf %299, %300 : vector<16x1xf32>
    %302 = vector.broadcast %301 : vector<16x1xf32> to vector<16x32xf32>
    %303 = arith.subf %293, %302 : vector<16x32xf32>
    %304 = arith.mulf %303, %303 : vector<16x32xf32>
    %cst_135 = arith.constant dense<0.000000e+00> : vector<16xf32>
    %305 = vector.multi_reduction <add>, %304, %cst_135 [1] : vector<16x32xf32> to vector<16xf32>
    %306 = vector.shape_cast %305 : vector<16xf32> to vector<16x1xf32>
    %cst_136 = arith.constant 3.200000e+01 : f32
    %307 = vector.broadcast %cst_136 : f32 to vector<16x1xf32>
    %308 = arith.divf %306, %307 : vector<16x1xf32>
    %309 = vector.broadcast %301 : vector<16x1xf32> to vector<16x32xf32>
    %310 = arith.subf %293, %309 : vector<16x32xf32>
    %cst_137 = arith.constant 9.99999974E-6 : f32
    %311 = vector.broadcast %cst_137 : f32 to vector<16x1xf32>
    %312 = arith.addf %308, %311 : vector<16x1xf32>
    %313 = math.rsqrt %312 : vector<16x1xf32>
    %314 = vector.broadcast %313 : vector<16x1xf32> to vector<16x32xf32>
    %315 = arith.mulf %310, %314 : vector<16x32xf32>
    %316 = vector.broadcast %295 : vector<1x32xf32> to vector<16x32xf32>
    %317 = arith.mulf %315, %316 : vector<16x32xf32>
    %318 = vector.broadcast %297 : vector<1x32xf32> to vector<16x32xf32>
    %319 = arith.addf %317, %318 : vector<16x32xf32>
    %c0_138 = arith.constant 0 : index
    %c0_139 = arith.constant 0 : index
    %320 = vector.load %arg49[%c0_138, %c0_139] : memref<16x32xf32, #tpu.memory_space<vmem>>, vector<16x32xf32>
    tpu.vector_store %arg49[%c0_138, %c0_139], %319 {strides = array<i32>} : memref<16x32xf32, #tpu.memory_space<vmem>>, vector<16x32xf32>,
    %cst_140 = arith.constant 0.000000e+00 : f32
    %321 = vector.broadcast %cst_140 : f32 to vector<8x32xf32>
    %c0_141 = arith.constant 0 : index
    %c0_142 = arith.constant 0 : index
    %322 = vector.load %arg50[%c0_141, %c0_142] : memref<8x32xf32, #tpu.memory_space<vmem>>, vector<8x32xf32>
    tpu.vector_store %arg50[%c0_141, %c0_142], %321 {strides = array<i32>} : memref<8x32xf32, #tpu.memory_space<vmem>>, vector<8x32xf32>,
    %c0_i32_143 = arith.constant 0 : i32
    %323 = arith.index_cast %c0_i32_143 : i32 to index
    %324 = memref.load %arg2[%323] : memref<16xi32, #tpu.memory_space<smem>>
    %325 = arith.index_cast %324 : i32 to index
    %c0_144 = arith.constant 0 : index
    %326 = vector.load %arg50[%325, %c0_144] : memref<8x32xf32, #tpu.memory_space<vmem>>, vector<1x32xf32>
    %327 = arith.index_cast %c0_i32_143 : i32 to index
    %c0_145 = arith.constant 0 : index
    %328 = vector.load %arg49[%327, %c0_145] : memref<16x32xf32, #tpu.memory_space<vmem>>, vector<1x32xf32>
    %329 = arith.addf %326, %328 : vector<1x32xf32>
    %330 = arith.index_cast %324 : i32 to index
    %c0_146 = arith.constant 0 : index
    %331 = vector.load %arg50[%330, %c0_146] : memref<8x32xf32, #tpu.memory_space<vmem>>, vector<1x32xf32>
    tpu.vector_store %arg50[%330, %c0_146], %329 {strides = array<i32>} : memref<8x32xf32, #tpu.memory_space<vmem>>, vector<1x32xf32>,
    %c1_i32_147 = arith.constant 1 : i32
    %332 = arith.index_cast %c1_i32_147 : i32 to index
    %333 = memref.load %arg2[%332] : memref<16xi32, #tpu.memory_space<smem>>
    %334 = arith.index_cast %333 : i32 to index
    %c0_148 = arith.constant 0 : index
    %335 = vector.load %arg50[%334, %c0_148] : memref<8x32xf32, #tpu.memory_space<vmem>>, vector<1x32xf32>
    %336 = arith.index_cast %c1_i32_147 : i32 to index
    %c0_149 = arith.constant 0 : index
    %337 = vector.load %arg49[%336, %c0_149] : memref<16x32xf32, #tpu.memory_space<vmem>>, vector<1x32xf32>
    %338 = arith.addf %335, %337 : vector<1x32xf32>
    %339 = arith.index_cast %333 : i32 to index
    %c0_150 = arith.constant 0 : index
    %340 = vector.load %arg50[%339, %c0_150] : memref<8x32xf32, #tpu.memory_space<vmem>>, vector<1x32xf32>
    tpu.vector_store %arg50[%339, %c0_150], %338 {strides = array<i32>} : memref<8x32xf32, #tpu.memory_space<vmem>>, vector<1x32xf32>,
    %c2_i32_151 = arith.constant 2 : i32
    %341 = arith.index_cast %c2_i32_151 : i32 to index
    %342 = memref.load %arg2[%341] : memref<16xi32, #tpu.memory_space<smem>>
    %343 = arith.index_cast %342 : i32 to index
    %c0_152 = arith.constant 0 : index
    %344 = vector.load %arg50[%343, %c0_152] : memref<8x32xf32, #tpu.memory_space<vmem>>, vector<1x32xf32>
    %345 = arith.index_cast %c2_i32_151 : i32 to index
    %c0_153 = arith.constant 0 : index
    %346 = vector.load %arg49[%345, %c0_153] : memref<16x32xf32, #tpu.memory_space<vmem>>, vector<1x32xf32>
    %347 = arith.addf %344, %346 : vector<1x32xf32>
    %348 = arith.index_cast %342 : i32 to index
    %c0_154 = arith.constant 0 : index
    %349 = vector.load %arg50[%348, %c0_154] : memref<8x32xf32, #tpu.memory_space<vmem>>, vector<1x32xf32>
    tpu.vector_store %arg50[%348, %c0_154], %347 {strides = array<i32>} : memref<8x32xf32, #tpu.memory_space<vmem>>, vector<1x32xf32>,
    %c3_i32_155 = arith.constant 3 : i32
    %350 = arith.index_cast %c3_i32_155 : i32 to index
    %351 = memref.load %arg2[%350] : memref<16xi32, #tpu.memory_space<smem>>
    %352 = arith.index_cast %351 : i32 to index
    %c0_156 = arith.constant 0 : index
    %353 = vector.load %arg50[%352, %c0_156] : memref<8x32xf32, #tpu.memory_space<vmem>>, vector<1x32xf32>
    %354 = arith.index_cast %c3_i32_155 : i32 to index
    %c0_157 = arith.constant 0 : index
    %355 = vector.load %arg49[%354, %c0_157] : memref<16x32xf32, #tpu.memory_space<vmem>>, vector<1x32xf32>
    %356 = arith.addf %353, %355 : vector<1x32xf32>
    %357 = arith.index_cast %351 : i32 to index
    %c0_158 = arith.constant 0 : index
    %358 = vector.load %arg50[%357, %c0_158] : memref<8x32xf32, #tpu.memory_space<vmem>>, vector<1x32xf32>
    tpu.vector_store %arg50[%357, %c0_158], %356 {strides = array<i32>} : memref<8x32xf32, #tpu.memory_space<vmem>>, vector<1x32xf32>,
    %c4_i32_159 = arith.constant 4 : i32
    %359 = arith.index_cast %c4_i32_159 : i32 to index
    %360 = memref.load %arg2[%359] : memref<16xi32, #tpu.memory_space<smem>>
    %361 = arith.index_cast %360 : i32 to index
    %c0_160 = arith.constant 0 : index
    %362 = vector.load %arg50[%361, %c0_160] : memref<8x32xf32, #tpu.memory_space<vmem>>, vector<1x32xf32>
    %363 = arith.index_cast %c4_i32_159 : i32 to index
    %c0_161 = arith.constant 0 : index
    %364 = vector.load %arg49[%363, %c0_161] : memref<16x32xf32, #tpu.memory_space<vmem>>, vector<1x32xf32>
    %365 = arith.addf %362, %364 : vector<1x32xf32>
    %366 = arith.index_cast %360 : i32 to index
    %c0_162 = arith.constant 0 : index
    %367 = vector.load %arg50[%366, %c0_162] : memref<8x32xf32, #tpu.memory_space<vmem>>, vector<1x32xf32>
    tpu.vector_store %arg50[%366, %c0_162], %365 {strides = array<i32>} : memref<8x32xf32, #tpu.memory_space<vmem>>, vector<1x32xf32>,
    %c5_i32_163 = arith.constant 5 : i32
    %368 = arith.index_cast %c5_i32_163 : i32 to index
    %369 = memref.load %arg2[%368] : memref<16xi32, #tpu.memory_space<smem>>
    %370 = arith.index_cast %369 : i32 to index
    %c0_164 = arith.constant 0 : index
    %371 = vector.load %arg50[%370, %c0_164] : memref<8x32xf32, #tpu.memory_space<vmem>>, vector<1x32xf32>
    %372 = arith.index_cast %c5_i32_163 : i32 to index
    %c0_165 = arith.constant 0 : index
    %373 = vector.load %arg49[%372, %c0_165] : memref<16x32xf32, #tpu.memory_space<vmem>>, vector<1x32xf32>
    %374 = arith.addf %371, %373 : vector<1x32xf32>
    %375 = arith.index_cast %369 : i32 to index
    %c0_166 = arith.constant 0 : index
    %376 = vector.load %arg50[%375, %c0_166] : memref<8x32xf32, #tpu.memory_space<vmem>>, vector<1x32xf32>
    tpu.vector_store %arg50[%375, %c0_166], %374 {strides = array<i32>} : memref<8x32xf32, #tpu.memory_space<vmem>>, vector<1x32xf32>,
    %c6_i32_167 = arith.constant 6 : i32
    %377 = arith.index_cast %c6_i32_167 : i32 to index
    %378 = memref.load %arg2[%377] : memref<16xi32, #tpu.memory_space<smem>>
    %379 = arith.index_cast %378 : i32 to index
    %c0_168 = arith.constant 0 : index
    %380 = vector.load %arg50[%379, %c0_168] : memref<8x32xf32, #tpu.memory_space<vmem>>, vector<1x32xf32>
    %381 = arith.index_cast %c6_i32_167 : i32 to index
    %c0_169 = arith.constant 0 : index
    %382 = vector.load %arg49[%381, %c0_169] : memref<16x32xf32, #tpu.memory_space<vmem>>, vector<1x32xf32>
    %383 = arith.addf %380, %382 : vector<1x32xf32>
    %384 = arith.index_cast %378 : i32 to index
    %c0_170 = arith.constant 0 : index
    %385 = vector.load %arg50[%384, %c0_170] : memref<8x32xf32, #tpu.memory_space<vmem>>, vector<1x32xf32>
    tpu.vector_store %arg50[%384, %c0_170], %383 {strides = array<i32>} : memref<8x32xf32, #tpu.memory_space<vmem>>, vector<1x32xf32>,
    %c7_i32_171 = arith.constant 7 : i32
    %386 = arith.index_cast %c7_i32_171 : i32 to index
    %387 = memref.load %arg2[%386] : memref<16xi32, #tpu.memory_space<smem>>
    %388 = arith.index_cast %387 : i32 to index
    %c0_172 = arith.constant 0 : index
    %389 = vector.load %arg50[%388, %c0_172] : memref<8x32xf32, #tpu.memory_space<vmem>>, vector<1x32xf32>
    %390 = arith.index_cast %c7_i32_171 : i32 to index
    %c0_173 = arith.constant 0 : index
    %391 = vector.load %arg49[%390, %c0_173] : memref<16x32xf32, #tpu.memory_space<vmem>>, vector<1x32xf32>
    %392 = arith.addf %389, %391 : vector<1x32xf32>
    %393 = arith.index_cast %387 : i32 to index
    %c0_174 = arith.constant 0 : index
    %394 = vector.load %arg50[%393, %c0_174] : memref<8x32xf32, #tpu.memory_space<vmem>>, vector<1x32xf32>
    tpu.vector_store %arg50[%393, %c0_174], %392 {strides = array<i32>} : memref<8x32xf32, #tpu.memory_space<vmem>>, vector<1x32xf32>,
    %c8_i32_175 = arith.constant 8 : i32
    %395 = arith.index_cast %c8_i32_175 : i32 to index
    %396 = memref.load %arg2[%395] : memref<16xi32, #tpu.memory_space<smem>>
    %397 = arith.index_cast %396 : i32 to index
    %c0_176 = arith.constant 0 : index
    %398 = vector.load %arg50[%397, %c0_176] : memref<8x32xf32, #tpu.memory_space<vmem>>, vector<1x32xf32>
    %399 = arith.index_cast %c8_i32_175 : i32 to index
    %c0_177 = arith.constant 0 : index
    %400 = vector.load %arg49[%399, %c0_177] : memref<16x32xf32, #tpu.memory_space<vmem>>, vector<1x32xf32>
    %401 = arith.addf %398, %400 : vector<1x32xf32>
    %402 = arith.index_cast %396 : i32 to index
    %c0_178 = arith.constant 0 : index
    %403 = vector.load %arg50[%402, %c0_178] : memref<8x32xf32, #tpu.memory_space<vmem>>, vector<1x32xf32>
    tpu.vector_store %arg50[%402, %c0_178], %401 {strides = array<i32>} : memref<8x32xf32, #tpu.memory_space<vmem>>, vector<1x32xf32>,
    %c9_i32_179 = arith.constant 9 : i32
    %404 = arith.index_cast %c9_i32_179 : i32 to index
    %405 = memref.load %arg2[%404] : memref<16xi32, #tpu.memory_space<smem>>
    %406 = arith.index_cast %405 : i32 to index
    %c0_180 = arith.constant 0 : index
    %407 = vector.load %arg50[%406, %c0_180] : memref<8x32xf32, #tpu.memory_space<vmem>>, vector<1x32xf32>
    %408 = arith.index_cast %c9_i32_179 : i32 to index
    %c0_181 = arith.constant 0 : index
    %409 = vector.load %arg49[%408, %c0_181] : memref<16x32xf32, #tpu.memory_space<vmem>>, vector<1x32xf32>
    %410 = arith.addf %407, %409 : vector<1x32xf32>
    %411 = arith.index_cast %405 : i32 to index
    %c0_182 = arith.constant 0 : index
    %412 = vector.load %arg50[%411, %c0_182] : memref<8x32xf32, #tpu.memory_space<vmem>>, vector<1x32xf32>
    tpu.vector_store %arg50[%411, %c0_182], %410 {strides = array<i32>} : memref<8x32xf32, #tpu.memory_space<vmem>>, vector<1x32xf32>,
    %c10_i32_183 = arith.constant 10 : i32
    %413 = arith.index_cast %c10_i32_183 : i32 to index
    %414 = memref.load %arg2[%413] : memref<16xi32, #tpu.memory_space<smem>>
    %415 = arith.index_cast %414 : i32 to index
    %c0_184 = arith.constant 0 : index
    %416 = vector.load %arg50[%415, %c0_184] : memref<8x32xf32, #tpu.memory_space<vmem>>, vector<1x32xf32>
    %417 = arith.index_cast %c10_i32_183 : i32 to index
    %c0_185 = arith.constant 0 : index
    %418 = vector.load %arg49[%417, %c0_185] : memref<16x32xf32, #tpu.memory_space<vmem>>, vector<1x32xf32>
    %419 = arith.addf %416, %418 : vector<1x32xf32>
    %420 = arith.index_cast %414 : i32 to index
    %c0_186 = arith.constant 0 : index
    %421 = vector.load %arg50[%420, %c0_186] : memref<8x32xf32, #tpu.memory_space<vmem>>, vector<1x32xf32>
    tpu.vector_store %arg50[%420, %c0_186], %419 {strides = array<i32>} : memref<8x32xf32, #tpu.memory_space<vmem>>, vector<1x32xf32>,
    %c11_i32_187 = arith.constant 11 : i32
    %422 = arith.index_cast %c11_i32_187 : i32 to index
    %423 = memref.load %arg2[%422] : memref<16xi32, #tpu.memory_space<smem>>
    %424 = arith.index_cast %423 : i32 to index
    %c0_188 = arith.constant 0 : index
    %425 = vector.load %arg50[%424, %c0_188] : memref<8x32xf32, #tpu.memory_space<vmem>>, vector<1x32xf32>
    %426 = arith.index_cast %c11_i32_187 : i32 to index
    %c0_189 = arith.constant 0 : index
    %427 = vector.load %arg49[%426, %c0_189] : memref<16x32xf32, #tpu.memory_space<vmem>>, vector<1x32xf32>
    %428 = arith.addf %425, %427 : vector<1x32xf32>
    %429 = arith.index_cast %423 : i32 to index
    %c0_190 = arith.constant 0 : index
    %430 = vector.load %arg50[%429, %c0_190] : memref<8x32xf32, #tpu.memory_space<vmem>>, vector<1x32xf32>
    tpu.vector_store %arg50[%429, %c0_190], %428 {strides = array<i32>} : memref<8x32xf32, #tpu.memory_space<vmem>>, vector<1x32xf32>,
    %c12_i32_191 = arith.constant 12 : i32
    %431 = arith.index_cast %c12_i32_191 : i32 to index
    %432 = memref.load %arg2[%431] : memref<16xi32, #tpu.memory_space<smem>>
    %433 = arith.index_cast %432 : i32 to index
    %c0_192 = arith.constant 0 : index
    %434 = vector.load %arg50[%433, %c0_192] : memref<8x32xf32, #tpu.memory_space<vmem>>, vector<1x32xf32>
    %435 = arith.index_cast %c12_i32_191 : i32 to index
    %c0_193 = arith.constant 0 : index
    %436 = vector.load %arg49[%435, %c0_193] : memref<16x32xf32, #tpu.memory_space<vmem>>, vector<1x32xf32>
    %437 = arith.addf %434, %436 : vector<1x32xf32>
    %438 = arith.index_cast %432 : i32 to index
    %c0_194 = arith.constant 0 : index
    %439 = vector.load %arg50[%438, %c0_194] : memref<8x32xf32, #tpu.memory_space<vmem>>, vector<1x32xf32>
    tpu.vector_store %arg50[%438, %c0_194], %437 {strides = array<i32>} : memref<8x32xf32, #tpu.memory_space<vmem>>, vector<1x32xf32>,
    %c13_i32_195 = arith.constant 13 : i32
    %440 = arith.index_cast %c13_i32_195 : i32 to index
    %441 = memref.load %arg2[%440] : memref<16xi32, #tpu.memory_space<smem>>
    %442 = arith.index_cast %441 : i32 to index
    %c0_196 = arith.constant 0 : index
    %443 = vector.load %arg50[%442, %c0_196] : memref<8x32xf32, #tpu.memory_space<vmem>>, vector<1x32xf32>
    %444 = arith.index_cast %c13_i32_195 : i32 to index
    %c0_197 = arith.constant 0 : index
    %445 = vector.load %arg49[%444, %c0_197] : memref<16x32xf32, #tpu.memory_space<vmem>>, vector<1x32xf32>
    %446 = arith.addf %443, %445 : vector<1x32xf32>
    %447 = arith.index_cast %441 : i32 to index
    %c0_198 = arith.constant 0 : index
    %448 = vector.load %arg50[%447, %c0_198] : memref<8x32xf32, #tpu.memory_space<vmem>>, vector<1x32xf32>
    tpu.vector_store %arg50[%447, %c0_198], %446 {strides = array<i32>} : memref<8x32xf32, #tpu.memory_space<vmem>>, vector<1x32xf32>,
    %c14_i32_199 = arith.constant 14 : i32
    %449 = arith.index_cast %c14_i32_199 : i32 to index
    %450 = memref.load %arg2[%449] : memref<16xi32, #tpu.memory_space<smem>>
    %451 = arith.index_cast %450 : i32 to index
    %c0_200 = arith.constant 0 : index
    %452 = vector.load %arg50[%451, %c0_200] : memref<8x32xf32, #tpu.memory_space<vmem>>, vector<1x32xf32>
    %453 = arith.index_cast %c14_i32_199 : i32 to index
    %c0_201 = arith.constant 0 : index
    %454 = vector.load %arg49[%453, %c0_201] : memref<16x32xf32, #tpu.memory_space<vmem>>, vector<1x32xf32>
    %455 = arith.addf %452, %454 : vector<1x32xf32>
    %456 = arith.index_cast %450 : i32 to index
    %c0_202 = arith.constant 0 : index
    %457 = vector.load %arg50[%456, %c0_202] : memref<8x32xf32, #tpu.memory_space<vmem>>, vector<1x32xf32>
    tpu.vector_store %arg50[%456, %c0_202], %455 {strides = array<i32>} : memref<8x32xf32, #tpu.memory_space<vmem>>, vector<1x32xf32>,
    %c15_i32_203 = arith.constant 15 : i32
    %458 = arith.index_cast %c15_i32_203 : i32 to index
    %459 = memref.load %arg2[%458] : memref<16xi32, #tpu.memory_space<smem>>
    %460 = arith.index_cast %459 : i32 to index
    %c0_204 = arith.constant 0 : index
    %461 = vector.load %arg50[%460, %c0_204] : memref<8x32xf32, #tpu.memory_space<vmem>>, vector<1x32xf32>
    %462 = arith.index_cast %c15_i32_203 : i32 to index
    %c0_205 = arith.constant 0 : index
    %463 = vector.load %arg49[%462, %c0_205] : memref<16x32xf32, #tpu.memory_space<vmem>>, vector<1x32xf32>
    %464 = arith.addf %461, %463 : vector<1x32xf32>
    %465 = arith.index_cast %459 : i32 to index
    %c0_206 = arith.constant 0 : index
    %466 = vector.load %arg50[%465, %c0_206] : memref<8x32xf32, #tpu.memory_space<vmem>>, vector<1x32xf32>
    tpu.vector_store %arg50[%465, %c0_206], %464 {strides = array<i32>} : memref<8x32xf32, #tpu.memory_space<vmem>>, vector<1x32xf32>,
    %c16_i32_207 = arith.constant 16 : i32
    %c0_208 = arith.constant 0 : index
    %c0_209 = arith.constant 0 : index
    %467 = vector.load %arg50[%c0_208, %c0_209] : memref<8x32xf32, #tpu.memory_space<vmem>>, vector<8x32xf32>
    %c0_210 = arith.constant 0 : index
    %c0_211 = arith.constant 0 : index
    %c0_212 = arith.constant 0 : index
    %468 = vector.load %arg28[%c0_210, %c0_211, %c0_212] : memref<1x32x32xbf16, #tpu.memory_space<vmem>>, vector<1x32x32xbf16>
    %469 = vector.shape_cast %468 : vector<1x32x32xbf16> to vector<32x32xbf16>
    %c0_213 = arith.constant 0 : index
    %c0_214 = arith.constant 0 : index
    %c0_215 = arith.constant 0 : index
    %470 = vector.load %arg29[%c0_213, %c0_214, %c0_215] : memref<1x1x32xf32, #tpu.memory_space<vmem>>, vector<1x1x32xf32>
    %471 = vector.shape_cast %470 : vector<1x1x32xf32> to vector<1x32xf32>
    %472 = arith.truncf %467 : vector<8x32xf32> to vector<8x32xbf16>
    %cst_216 = arith.constant dense<0.000000e+00> : vector<8x32xf32>
    %473 = tpu.matmul %472, %469, %cst_216 {dimension_numbers = #tpu.dot_dimension_numbers<[1], [0], [0], [1], [0, 0, 1, 1], [], []>} : vector<8x32xbf16>, vector<32x32xbf16>, vector<8x32xf32> -> vector<8x32xf32>
    %474 = vector.broadcast %471 : vector<1x32xf32> to vector<8x32xf32>
    %475 = arith.addf %473, %474 : vector<8x32xf32>
    %cst_217 = arith.constant 0.999994993 : f32
    %476 = vector.broadcast %cst_217 : f32 to vector<8x32xf32>
    %477 = arith.mulf %475, %476 : vector<8x32xf32>
    %478 = arith.addf %3, %477 : vector<8x32xf32>
    %cst_218 = arith.constant 0.000000e+00 : f32
    %479 = vector.broadcast %cst_218 : f32 to vector<8x32xf32>
    %480 = arith.maximumf %478, %479 : vector<8x32xf32>
    %481 = math.absf %478 : vector<8x32xf32>
    %cst_219 = arith.constant 0.000000e+00 : f32
    %482 = vector.broadcast %cst_219 : f32 to vector<8x32xf32>
    %483 = arith.subf %482, %481 : vector<8x32xf32>
    %484 = math.exp %483 : vector<8x32xf32>
    %cst_220 = arith.constant 1.000000e+00 : f32
    %485 = vector.broadcast %cst_220 : f32 to vector<8x32xf32>
    %486 = arith.addf %485, %484 : vector<8x32xf32>
    %487 = math.log %486 : vector<8x32xf32>
    %488 = arith.addf %480, %487 : vector<8x32xf32>
    %c3_i32_221 = arith.constant 3 : i32
    %489 = arith.cmpi slt, %arg0, %c3_i32_221 : i32
    %490 = arith.extui %489 : i1 to i32
    %c0_i32_222 = arith.constant 0 : i32
    %491 = arith.cmpi ne, %490, %c0_i32_222 : i32
    scf.if %491 {
      %c0_227 = arith.constant 0 : index
      %c0_228 = arith.constant 0 : index
      %498 = vector.load %arg44[%c0_227, %c0_228] : memref<8x32xf32, #tpu.memory_space<vmem>>, vector<8x32xf32>
      %499 = arith.addf %498, %488 : vector<8x32xf32>
      %cst_229 = arith.constant 0.999994993 : f32
      %500 = vector.broadcast %cst_229 : f32 to vector<8x32xf32>
      %501 = arith.mulf %499, %500 : vector<8x32xf32>
      %c0_230 = arith.constant 0 : index
      %c0_231 = arith.constant 0 : index
      %c0_232 = arith.constant 0 : index
      %502 = vector.load %arg30[%c0_230, %c0_231, %c0_232] : memref<1x32x64xbf16, #tpu.memory_space<vmem>>, vector<1x32x64xbf16>
      %503 = vector.shape_cast %502 : vector<1x32x64xbf16> to vector<32x64xbf16>
      %c0_233 = arith.constant 0 : index
      %c0_234 = arith.constant 0 : index
      %c0_235 = arith.constant 0 : index
      %504 = vector.load %arg31[%c0_233, %c0_234, %c0_235] : memref<1x1x64xf32, #tpu.memory_space<vmem>>, vector<1x1x64xf32>
      %505 = vector.shape_cast %504 : vector<1x1x64xf32> to vector<1x64xf32>
      %506 = arith.truncf %501 : vector<8x32xf32> to vector<8x32xbf16>
      %cst_236 = arith.constant dense<0.000000e+00> : vector<8x64xf32>
      %507 = tpu.matmul %506, %503, %cst_236 {dimension_numbers = #tpu.dot_dimension_numbers<[1], [0], [0], [1], [0, 0, 1, 1], [], []>} : vector<8x32xbf16>, vector<32x64xbf16>, vector<8x64xf32> -> vector<8x64xf32>
      %508 = vector.broadcast %505 : vector<1x64xf32> to vector<8x64xf32>
      %509 = arith.addf %507, %508 : vector<8x64xf32>
      %510 = vector.extract_strided_slice %509 {offsets = [0, 0], sizes = [8, 32], strides = [1, 1]} : vector<8x64xf32> to vector<8x32xf32>
      %c0_237 = arith.constant 0 : index
      %c0_238 = arith.constant 0 : index
      %c0_239 = arith.constant 0 : index
      %511 = vector.load %arg32[%c0_237, %c0_238, %c0_239] : memref<1x32x32xbf16, #tpu.memory_space<vmem>>, vector<1x32x32xbf16>
      %512 = vector.shape_cast %511 : vector<1x32x32xbf16> to vector<32x32xbf16>
      %c0_240 = arith.constant 0 : index
      %c0_241 = arith.constant 0 : index
      %c0_242 = arith.constant 0 : index
      %513 = vector.load %arg33[%c0_240, %c0_241, %c0_242] : memref<1x1x32xf32, #tpu.memory_space<vmem>>, vector<1x1x32xf32>
      %514 = vector.shape_cast %513 : vector<1x1x32xf32> to vector<1x32xf32>
      %515 = arith.truncf %510 : vector<8x32xf32> to vector<8x32xbf16>
      %cst_243 = arith.constant dense<0.000000e+00> : vector<8x32xf32>
      %516 = tpu.matmul %515, %512, %cst_243 {dimension_numbers = #tpu.dot_dimension_numbers<[1], [0], [0], [1], [0, 0, 1, 1], [], []>} : vector<8x32xbf16>, vector<32x32xbf16>, vector<8x32xf32> -> vector<8x32xf32>
      %517 = vector.broadcast %514 : vector<1x32xf32> to vector<8x32xf32>
      %518 = arith.addf %516, %517 : vector<8x32xf32>
      %519 = vector.extract_strided_slice %509 {offsets = [0, 32], sizes = [8, 32], strides = [1, 1]} : vector<8x64xf32> to vector<8x32xf32>
      %cst_244 = arith.constant 5.000000e-01 : f32
      %520 = vector.broadcast %cst_244 : f32 to vector<8x32xf32>
      %521 = arith.mulf %520, %519 : vector<8x32xf32>
      %cst_245 = arith.constant 0.707106769 : f32
      %522 = vector.broadcast %cst_245 : f32 to vector<8x32xf32>
      %523 = arith.mulf %519, %522 : vector<8x32xf32>
      %cst_246 = arith.constant 0.000000e+00 : f32
      %524 = vector.broadcast %cst_246 : f32 to vector<8x32xf32>
      %525 = arith.cmpf olt, %523, %524 : vector<8x32xf32>
      %cst_247 = arith.constant -1.000000e+00 : f32
      %cst_248 = arith.constant 1.000000e+00 : f32
      %526 = vector.broadcast %cst_247 : f32 to vector<8x32xf32>
      %527 = vector.broadcast %cst_248 : f32 to vector<8x32xf32>
      %528 = arith.select %525, %526, %527 : vector<8x32xi1>, vector<8x32xf32>
      %529 = math.absf %523 : vector<8x32xf32>
      %cst_249 = arith.constant 0.327591091 : f32
      %530 = vector.broadcast %cst_249 : f32 to vector<8x32xf32>
      %531 = arith.mulf %530, %529 : vector<8x32xf32>
      %cst_250 = arith.constant 1.000000e+00 : f32
      %532 = vector.broadcast %cst_250 : f32 to vector<8x32xf32>
      %533 = arith.addf %532, %531 : vector<8x32xf32>
      %cst_251 = arith.constant 1.000000e+00 : f32
      %534 = vector.broadcast %cst_251 : f32 to vector<8x32xf32>
      %535 = arith.divf %534, %533 : vector<8x32xf32>
      %cst_252 = arith.constant 1.06140542 : f32
      %536 = vector.broadcast %cst_252 : f32 to vector<8x32xf32>
      %537 = arith.mulf %536, %535 : vector<8x32xf32>
      %cst_253 = arith.constant -1.45315206 : f32
      %538 = vector.broadcast %cst_253 : f32 to vector<8x32xf32>
      %539 = arith.addf %537, %538 : vector<8x32xf32>
      %540 = arith.mulf %539, %535 : vector<8x32xf32>
      %cst_254 = arith.constant 1.42141378 : f32
      %541 = vector.broadcast %cst_254 : f32 to vector<8x32xf32>
      %542 = arith.addf %540, %541 : vector<8x32xf32>
      %543 = arith.mulf %542, %535 : vector<8x32xf32>
      %cst_255 = arith.constant -0.284496725 : f32
      %544 = vector.broadcast %cst_255 : f32 to vector<8x32xf32>
      %545 = arith.addf %543, %544 : vector<8x32xf32>
      %546 = arith.mulf %545, %535 : vector<8x32xf32>
      %cst_256 = arith.constant 0.254829586 : f32
      %547 = vector.broadcast %cst_256 : f32 to vector<8x32xf32>
      %548 = arith.addf %546, %547 : vector<8x32xf32>
      %549 = arith.mulf %548, %535 : vector<8x32xf32>
      %cst_257 = arith.constant 0.000000e+00 : f32
      %550 = vector.broadcast %cst_257 : f32 to vector<8x32xf32>
      %551 = arith.subf %550, %529 : vector<8x32xf32>
      %552 = arith.mulf %551, %529 : vector<8x32xf32>
      %553 = math.exp %552 : vector<8x32xf32>
      %554 = arith.mulf %549, %553 : vector<8x32xf32>
      %cst_258 = arith.constant 1.000000e+00 : f32
      %555 = vector.broadcast %cst_258 : f32 to vector<8x32xf32>
      %556 = arith.subf %555, %554 : vector<8x32xf32>
      %557 = arith.mulf %528, %556 : vector<8x32xf32>
      %cst_259 = arith.constant 1.000000e+00 : f32
      %558 = vector.broadcast %cst_259 : f32 to vector<8x32xf32>
      %559 = arith.addf %558, %557 : vector<8x32xf32>
      %560 = arith.mulf %521, %559 : vector<8x32xf32>
      %561 = arith.mulf %518, %560 : vector<8x32xf32>
      %c0_260 = arith.constant 0 : index
      %c0_261 = arith.constant 0 : index
      %c0_262 = arith.constant 0 : index
      %562 = vector.load %arg34[%c0_260, %c0_261, %c0_262] : memref<1x32x32xbf16, #tpu.memory_space<vmem>>, vector<1x32x32xbf16>
      %563 = vector.shape_cast %562 : vector<1x32x32xbf16> to vector<32x32xbf16>
      %c0_263 = arith.constant 0 : index
      %c0_264 = arith.constant 0 : index
      %c0_265 = arith.constant 0 : index
      %564 = vector.load %arg35[%c0_263, %c0_264, %c0_265] : memref<1x1x32xf32, #tpu.memory_space<vmem>>, vector<1x1x32xf32>
      %565 = vector.shape_cast %564 : vector<1x1x32xf32> to vector<1x32xf32>
      %566 = arith.truncf %561 : vector<8x32xf32> to vector<8x32xbf16>
      %cst_266 = arith.constant dense<0.000000e+00> : vector<8x32xf32>
      %567 = tpu.matmul %566, %563, %cst_266 {dimension_numbers = #tpu.dot_dimension_numbers<[1], [0], [0], [1], [0, 0, 1, 1], [], []>} : vector<8x32xbf16>, vector<32x32xbf16>, vector<8x32xf32> -> vector<8x32xf32>
      %568 = vector.broadcast %565 : vector<1x32xf32> to vector<8x32xf32>
      %569 = arith.addf %567, %568 : vector<8x32xf32>
      %570 = arith.addf %569, %488 : vector<8x32xf32>
      %c0_267 = arith.constant 0 : index
      %c0_268 = arith.constant 0 : index
      %571 = vector.load %arg43[%c0_267, %c0_268] : memref<8x32xf32, #tpu.memory_space<vmem>>, vector<8x32xf32>
      tpu.vector_store %arg43[%c0_267, %c0_268], %570 {strides = array<i32>} : memref<8x32xf32, #tpu.memory_space<vmem>>, vector<8x32xf32>,
      %c0_269 = arith.constant 0 : index
      %c0_270 = arith.constant 0 : index
      %572 = vector.load %arg44[%c0_269, %c0_270] : memref<8x32xf32, #tpu.memory_space<vmem>>, vector<8x32xf32>
      tpu.vector_store %arg44[%c0_269, %c0_270], %499 {strides = array<i32>} : memref<8x32xf32, #tpu.memory_space<vmem>>, vector<8x32xf32>,
    } else {
    }
    %c3_i32_223 = arith.constant 3 : i32
    %492 = arith.cmpi sge, %arg0, %c3_i32_223 : i32
    %493 = arith.extui %492 : i1 to i32
    %c0_i32_224 = arith.constant 0 : i32
    %494 = arith.cmpi ne, %493, %c0_i32_224 : i32
    scf.if %494 {
      %c0_227 = arith.constant 0 : index
      %c0_228 = arith.constant 0 : index
      %498 = vector.load %arg43[%c0_227, %c0_228] : memref<8x32xf32, #tpu.memory_space<vmem>>, vector<8x32xf32>
      tpu.vector_store %arg43[%c0_227, %c0_228], %488 {strides = array<i32>} : memref<8x32xf32, #tpu.memory_space<vmem>>, vector<8x32xf32>,
    } else {
    }
    %c3_i32_225 = arith.constant 3 : i32
    %495 = arith.cmpi eq, %arg0, %c3_i32_225 : i32
    %496 = arith.extui %495 : i1 to i32
    %c0_i32_226 = arith.constant 0 : i32
    %497 = arith.cmpi ne, %496, %c0_i32_226 : i32
    scf.if %497 {
      %c0_227 = arith.constant 0 : index
      %c0_228 = arith.constant 0 : index
      %498 = vector.load %arg43[%c0_227, %c0_228] : memref<8x32xf32, #tpu.memory_space<vmem>>, vector<8x32xf32>
      %c0_229 = arith.constant 0 : index
      %c0_230 = arith.constant 0 : index
      %499 = vector.load %arg36[%c0_229, %c0_230] : memref<2x8xf32, #tpu.memory_space<vmem>>, vector<2x8xf32>
      %cst_231 = arith.constant dense<0.000000e+00> : vector<2x32xf32>
      %500 = tpu.matmul %499, %498, %cst_231 {dimension_numbers = #tpu.dot_dimension_numbers<[1], [0], [0], [1], [0, 0, 1, 1], [], []>} : vector<2x8xf32>, vector<8x32xf32>, vector<2x32xf32> -> vector<2x32xf32>
      %c0_232 = arith.constant 0 : index
      %c0_233 = arith.constant 0 : index
      %501 = vector.load %arg37[%c0_232, %c0_233] : memref<32x32xbf16, #tpu.memory_space<vmem>>, vector<32x32xbf16>
      %c0_234 = arith.constant 0 : index
      %c0_235 = arith.constant 0 : index
      %502 = vector.load %arg38[%c0_234, %c0_235] : memref<1x32xf32, #tpu.memory_space<vmem>>, vector<1x32xf32>
      %503 = arith.truncf %500 : vector<2x32xf32> to vector<2x32xbf16>
      %cst_236 = arith.constant dense<0.000000e+00> : vector<2x32xf32>
      %504 = tpu.matmul %503, %501, %cst_236 {dimension_numbers = #tpu.dot_dimension_numbers<[1], [0], [0], [1], [0, 0, 1, 1], [], []>} : vector<2x32xbf16>, vector<32x32xbf16>, vector<2x32xf32> -> vector<2x32xf32>
      %505 = vector.broadcast %502 : vector<1x32xf32> to vector<2x32xf32>
      %506 = arith.addf %504, %505 : vector<2x32xf32>
      %cst_237 = arith.constant 0.000000e+00 : f32
      %507 = vector.broadcast %cst_237 : f32 to vector<2x32xf32>
      %508 = arith.subf %507, %506 : vector<2x32xf32>
      %509 = math.exp %508 : vector<2x32xf32>
      %cst_238 = arith.constant 1.000000e+00 : f32
      %510 = vector.broadcast %cst_238 : f32 to vector<2x32xf32>
      %511 = arith.addf %510, %509 : vector<2x32xf32>
      %cst_239 = arith.constant 1.000000e+00 : f32
      %512 = vector.broadcast %cst_239 : f32 to vector<2x32xf32>
      %513 = arith.divf %512, %511 : vector<2x32xf32>
      %514 = arith.mulf %506, %513 : vector<2x32xf32>
      %515 = arith.addf %500, %514 : vector<2x32xf32>
      %c0_240 = arith.constant 0 : index
      %c0_241 = arith.constant 0 : index
      %516 = vector.load %arg39[%c0_240, %c0_241] : memref<32x1xf32, #tpu.memory_space<vmem>>, vector<32x1xf32>
      %cst_242 = arith.constant dense<0.000000e+00> : vector<2x1xf32>
      %517 = tpu.matmul %515, %516, %cst_242 {dimension_numbers = #tpu.dot_dimension_numbers<[1], [0], [0], [1], [0, 0, 1, 1], [], []>} : vector<2x32xf32>, vector<32x1xf32>, vector<2x1xf32> -> vector<2x1xf32>
      %c0_243 = arith.constant 0 : index
      %c0_244 = arith.constant 0 : index
      %518 = vector.load %arg40[%c0_243, %c0_244] : memref<1x1xf32, #tpu.memory_space<vmem>>, vector<1x1xf32>
      %519 = vector.broadcast %518 : vector<1x1xf32> to vector<2x1xf32>
      %520 = arith.addf %517, %519 : vector<2x1xf32>
      %c0_245 = arith.constant 0 : index
      %c0_246 = arith.constant 0 : index
      %521 = vector.load %arg41[%c0_245, %c0_246] : memref<2x1xf32, #tpu.memory_space<vmem>>, vector<2x1xf32>
      %522 = arith.divf %520, %521 : vector<2x1xf32>
      %c0_247 = arith.constant 0 : index
      %c0_248 = arith.constant 0 : index
      %523 = vector.load %arg42[%c0_247, %c0_248] : memref<2x1xf32, #tpu.memory_space<vmem>>, vector<2x1xf32>
      tpu.vector_store %arg42[%c0_247, %c0_248], %522 {strides = array<i32>} : memref<2x1xf32, #tpu.memory_space<vmem>>, vector<2x1xf32>,
    } else {
    }
    return
  }
  func.func @transform_0(%arg0: i32, %arg1: memref<16xi32, #tpu.memory_space<smem>>, %arg2: memref<16xi32, #tpu.memory_space<smem>>) -> (i32, i32) {
    %c0_i32 = arith.constant 0 : i32
    %c0_i32_0 = arith.constant 0 : i32
    %c0_i32_1 = arith.constant 0 : i32
    return %c0_i32, %c0_i32_0 : i32, i32
  }
  func.func @transform_1(%arg0: i32, %arg1: memref<16xi32, #tpu.memory_space<smem>>, %arg2: memref<16xi32, #tpu.memory_space<smem>>) -> (i32, i32) {
    %c0_i32 = arith.constant 0 : i32
    %c0_i32_0 = arith.constant 0 : i32
    %c0_i32_1 = arith.constant 0 : i32
    return %c0_i32, %c0_i32_0 : i32, i32
  }
  func.func @transform_2(%arg0: i32, %arg1: memref<16xi32, #tpu.memory_space<smem>>, %arg2: memref<16xi32, #tpu.memory_space<smem>>) -> (i32, i32) {
    %c0_i32 = arith.constant 0 : i32
    %c0_i32_0 = arith.constant 0 : i32
    %c0_i32_1 = arith.constant 0 : i32
    return %c0_i32, %c0_i32_0 : i32, i32
  }
  func.func @transform_3(%arg0: i32, %arg1: memref<16xi32, #tpu.memory_space<smem>>, %arg2: memref<16xi32, #tpu.memory_space<smem>>) -> (i32, i32) {
    %c0_i32 = arith.constant 0 : i32
    %c0_i32_0 = arith.constant 0 : i32
    %c0_i32_1 = arith.constant 0 : i32
    return %c0_i32, %c0_i32_0 : i32, i32
  }
  func.func @transform_4(%arg0: i32, %arg1: memref<16xi32, #tpu.memory_space<smem>>, %arg2: memref<16xi32, #tpu.memory_space<smem>>) -> (i32, i32) {
    %c0_i32 = arith.constant 0 : i32
    %c0_i32_0 = arith.constant 0 : i32
    %c0_i32_1 = arith.constant 0 : i32
    return %c0_i32, %c0_i32_0 : i32, i32
  }
  func.func @transform_5(%arg0: i32, %arg1: memref<16xi32, #tpu.memory_space<smem>>, %arg2: memref<16xi32, #tpu.memory_space<smem>>) -> (i32, i32) {
    %c0_i32 = arith.constant 0 : i32
    %c0_i32_0 = arith.constant 0 : i32
    %c0_i32_1 = arith.constant 0 : i32
    return %c0_i32, %c0_i32_0 : i32, i32
  }
  func.func @transform_6(%arg0: i32, %arg1: memref<16xi32, #tpu.memory_space<smem>>, %arg2: memref<16xi32, #tpu.memory_space<smem>>) -> (i32, i32) {
    %c0_i32 = arith.constant 0 : i32
    %c0_i32_0 = arith.constant 0 : i32
    %c0_i32_1 = arith.constant 0 : i32
    return %c0_i32, %c0_i32_0 : i32, i32
  }
  func.func @transform_7(%arg0: i32, %arg1: memref<16xi32, #tpu.memory_space<smem>>, %arg2: memref<16xi32, #tpu.memory_space<smem>>) -> (i32, i32) {
    %c0_i32 = arith.constant 0 : i32
    %c0_i32_0 = arith.constant 0 : i32
    %c0_i32_1 = arith.constant 0 : i32
    return %c0_i32, %c0_i32_0 : i32, i32
  }
  func.func @transform_8(%arg0: i32, %arg1: memref<16xi32, #tpu.memory_space<smem>>, %arg2: memref<16xi32, #tpu.memory_space<smem>>) -> (i32, i32) {
    %c0_i32 = arith.constant 0 : i32
    %c0_i32_0 = arith.constant 0 : i32
    %c0_i32_1 = arith.constant 0 : i32
    return %c0_i32, %c0_i32_0 : i32, i32
  }
  func.func @transform_9(%arg0: i32, %arg1: memref<16xi32, #tpu.memory_space<smem>>, %arg2: memref<16xi32, #tpu.memory_space<smem>>) -> (i32, i32) {
    %c0_i32 = arith.constant 0 : i32
    %c0_i32_0 = arith.constant 0 : i32
    %c0_i32_1 = arith.constant 0 : i32
    return %c0_i32, %c0_i32_0 : i32, i32
  }
  func.func @transform_10(%arg0: i32, %arg1: memref<16xi32, #tpu.memory_space<smem>>, %arg2: memref<16xi32, #tpu.memory_space<smem>>) -> (i32, i32) {
    %c0_i32 = arith.constant 0 : i32
    %c0_i32_0 = arith.constant 0 : i32
    %c0_i32_1 = arith.constant 0 : i32
    return %c0_i32, %c0_i32_0 : i32, i32
  }
  func.func @transform_11(%arg0: i32, %arg1: memref<16xi32, #tpu.memory_space<smem>>, %arg2: memref<16xi32, #tpu.memory_space<smem>>) -> (i32, i32, i32) {
    %c0_i32 = arith.constant 0 : i32
    %c0_i32_0 = arith.constant 0 : i32
    %c0_i32_1 = arith.constant 0 : i32
    return %arg0, %c0_i32, %c0_i32_0 : i32, i32, i32
  }
  func.func @transform_12(%arg0: i32, %arg1: memref<16xi32, #tpu.memory_space<smem>>, %arg2: memref<16xi32, #tpu.memory_space<smem>>) -> (i32, i32, i32) {
    %c0_i32 = arith.constant 0 : i32
    %c0_i32_0 = arith.constant 0 : i32
    %c0_i32_1 = arith.constant 0 : i32
    return %arg0, %c0_i32, %c0_i32_0 : i32, i32, i32
  }
  func.func @transform_13(%arg0: i32, %arg1: memref<16xi32, #tpu.memory_space<smem>>, %arg2: memref<16xi32, #tpu.memory_space<smem>>) -> (i32, i32, i32) {
    %c0_i32 = arith.constant 0 : i32
    %c0_i32_0 = arith.constant 0 : i32
    %c0_i32_1 = arith.constant 0 : i32
    return %arg0, %c0_i32, %c0_i32_0 : i32, i32, i32
  }
  func.func @transform_14(%arg0: i32, %arg1: memref<16xi32, #tpu.memory_space<smem>>, %arg2: memref<16xi32, #tpu.memory_space<smem>>) -> (i32, i32, i32) {
    %c0_i32 = arith.constant 0 : i32
    %c0_i32_0 = arith.constant 0 : i32
    %c0_i32_1 = arith.constant 0 : i32
    return %arg0, %c0_i32, %c0_i32_0 : i32, i32, i32
  }
  func.func @transform_15(%arg0: i32, %arg1: memref<16xi32, #tpu.memory_space<smem>>, %arg2: memref<16xi32, #tpu.memory_space<smem>>) -> (i32, i32, i32) {
    %c0_i32 = arith.constant 0 : i32
    %c0_i32_0 = arith.constant 0 : i32
    %c0_i32_1 = arith.constant 0 : i32
    return %arg0, %c0_i32, %c0_i32_0 : i32, i32, i32
  }
  func.func @transform_16(%arg0: i32, %arg1: memref<16xi32, #tpu.memory_space<smem>>, %arg2: memref<16xi32, #tpu.memory_space<smem>>) -> (i32, i32, i32) {
    %c0_i32 = arith.constant 0 : i32
    %c0_i32_0 = arith.constant 0 : i32
    %c0_i32_1 = arith.constant 0 : i32
    return %arg0, %c0_i32, %c0_i32_0 : i32, i32, i32
  }
  func.func @transform_17(%arg0: i32, %arg1: memref<16xi32, #tpu.memory_space<smem>>, %arg2: memref<16xi32, #tpu.memory_space<smem>>) -> (i32, i32, i32) {
    %c0_i32 = arith.constant 0 : i32
    %c0_i32_0 = arith.constant 0 : i32
    %c0_i32_1 = arith.constant 0 : i32
    return %arg0, %c0_i32, %c0_i32_0 : i32, i32, i32
  }
  func.func @transform_18(%arg0: i32, %arg1: memref<16xi32, #tpu.memory_space<smem>>, %arg2: memref<16xi32, #tpu.memory_space<smem>>) -> (i32, i32, i32) {
    %c0_i32 = arith.constant 0 : i32
    %c0_i32_0 = arith.constant 0 : i32
    %c0_i32_1 = arith.constant 0 : i32
    return %arg0, %c0_i32, %c0_i32_0 : i32, i32, i32
  }
  func.func @transform_19(%arg0: i32, %arg1: memref<16xi32, #tpu.memory_space<smem>>, %arg2: memref<16xi32, #tpu.memory_space<smem>>) -> (i32, i32, i32) {
    %c0_i32 = arith.constant 0 : i32
    %c0_i32_0 = arith.constant 0 : i32
    %c0_i32_1 = arith.constant 0 : i32
    return %arg0, %c0_i32, %c0_i32_0 : i32, i32, i32
  }
  func.func @transform_20(%arg0: i32, %arg1: memref<16xi32, #tpu.memory_space<smem>>, %arg2: memref<16xi32, #tpu.memory_space<smem>>) -> (i32, i32, i32) {
    %c0_i32 = arith.constant 0 : i32
    %c0_i32_0 = arith.constant 0 : i32
    %c0_i32_1 = arith.constant 0 : i32
    return %arg0, %c0_i32, %c0_i32_0 : i32, i32, i32
  }
  func.func @transform_21(%arg0: i32, %arg1: memref<16xi32, #tpu.memory_space<smem>>, %arg2: memref<16xi32, #tpu.memory_space<smem>>) -> (i32, i32, i32) {
    %c0_i32 = arith.constant 0 : i32
    %c0_i32_0 = arith.constant 0 : i32
    %c0_i32_1 = arith.constant 0 : i32
    return %arg0, %c0_i32, %c0_i32_0 : i32, i32, i32
  }
  func.func @transform_22(%arg0: i32, %arg1: memref<16xi32, #tpu.memory_space<smem>>, %arg2: memref<16xi32, #tpu.memory_space<smem>>) -> (i32, i32, i32) {
    %c0_i32 = arith.constant 0 : i32
    %c0_i32_0 = arith.constant 0 : i32
    %c0_i32_1 = arith.constant 0 : i32
    return %arg0, %c0_i32, %c0_i32_0 : i32, i32, i32
  }
  func.func @transform_23(%arg0: i32, %arg1: memref<16xi32, #tpu.memory_space<smem>>, %arg2: memref<16xi32, #tpu.memory_space<smem>>) -> (i32, i32, i32) {
    %c0_i32 = arith.constant 0 : i32
    %c0_i32_0 = arith.constant 0 : i32
    %c0_i32_1 = arith.constant 0 : i32
    return %arg0, %c0_i32, %c0_i32_0 : i32, i32, i32
  }
  func.func @transform_24(%arg0: i32, %arg1: memref<16xi32, #tpu.memory_space<smem>>, %arg2: memref<16xi32, #tpu.memory_space<smem>>) -> (i32, i32, i32) {
    %c0_i32 = arith.constant 0 : i32
    %c0_i32_0 = arith.constant 0 : i32
    %c0_i32_1 = arith.constant 0 : i32
    return %arg0, %c0_i32, %c0_i32_0 : i32, i32, i32
  }
  func.func @transform_25(%arg0: i32, %arg1: memref<16xi32, #tpu.memory_space<smem>>, %arg2: memref<16xi32, #tpu.memory_space<smem>>) -> (i32, i32, i32) {
    %c0_i32 = arith.constant 0 : i32
    %c0_i32_0 = arith.constant 0 : i32
    %c0_i32_1 = arith.constant 0 : i32
    return %arg0, %c0_i32, %c0_i32_0 : i32, i32, i32
  }
  func.func @transform_26(%arg0: i32, %arg1: memref<16xi32, #tpu.memory_space<smem>>, %arg2: memref<16xi32, #tpu.memory_space<smem>>) -> (i32, i32, i32) {
    %c0_i32 = arith.constant 0 : i32
    %c0_i32_0 = arith.constant 0 : i32
    %c0_i32_1 = arith.constant 0 : i32
    return %arg0, %c0_i32, %c0_i32_0 : i32, i32, i32
  }
  func.func @transform_27(%arg0: i32, %arg1: memref<16xi32, #tpu.memory_space<smem>>, %arg2: memref<16xi32, #tpu.memory_space<smem>>) -> (i32, i32, i32) {
    %c0_i32 = arith.constant 0 : i32
    %c0_i32_0 = arith.constant 0 : i32
    %c0_i32_1 = arith.constant 0 : i32
    return %arg0, %c0_i32, %c0_i32_0 : i32, i32, i32
  }
  func.func @transform_28(%arg0: i32, %arg1: memref<16xi32, #tpu.memory_space<smem>>, %arg2: memref<16xi32, #tpu.memory_space<smem>>) -> (i32, i32, i32) {
    %c0_i32 = arith.constant 0 : i32
    %c0_i32_0 = arith.constant 0 : i32
    %c0_i32_1 = arith.constant 0 : i32
    return %arg0, %c0_i32, %c0_i32_0 : i32, i32, i32
  }
  func.func @transform_29(%arg0: i32, %arg1: memref<16xi32, #tpu.memory_space<smem>>, %arg2: memref<16xi32, #tpu.memory_space<smem>>) -> (i32, i32, i32) {
    %c0_i32 = arith.constant 0 : i32
    %c0_i32_0 = arith.constant 0 : i32
    %c0_i32_1 = arith.constant 0 : i32
    return %arg0, %c0_i32, %c0_i32_0 : i32, i32, i32
  }
  func.func @transform_30(%arg0: i32, %arg1: memref<16xi32, #tpu.memory_space<smem>>, %arg2: memref<16xi32, #tpu.memory_space<smem>>) -> (i32, i32, i32) {
    %c0_i32 = arith.constant 0 : i32
    %c0_i32_0 = arith.constant 0 : i32
    %c0_i32_1 = arith.constant 0 : i32
    return %arg0, %c0_i32, %c0_i32_0 : i32, i32, i32
  }
  func.func @transform_31(%arg0: i32, %arg1: memref<16xi32, #tpu.memory_space<smem>>, %arg2: memref<16xi32, #tpu.memory_space<smem>>) -> (i32, i32, i32) {
    %c0_i32 = arith.constant 0 : i32
    %c0_i32_0 = arith.constant 0 : i32
    %c0_i32_1 = arith.constant 0 : i32
    return %arg0, %c0_i32, %c0_i32_0 : i32, i32, i32
  }
  func.func @transform_32(%arg0: i32, %arg1: memref<16xi32, #tpu.memory_space<smem>>, %arg2: memref<16xi32, #tpu.memory_space<smem>>) -> (i32, i32, i32) {
    %c0_i32 = arith.constant 0 : i32
    %c0_i32_0 = arith.constant 0 : i32
    %c0_i32_1 = arith.constant 0 : i32
    return %arg0, %c0_i32, %c0_i32_0 : i32, i32, i32
  }
  func.func @transform_33(%arg0: i32, %arg1: memref<16xi32, #tpu.memory_space<smem>>, %arg2: memref<16xi32, #tpu.memory_space<smem>>) -> (i32, i32) {
    %c0_i32 = arith.constant 0 : i32
    %c0_i32_0 = arith.constant 0 : i32
    %c0_i32_1 = arith.constant 0 : i32
    return %c0_i32, %c0_i32_0 : i32, i32
  }
  func.func @transform_34(%arg0: i32, %arg1: memref<16xi32, #tpu.memory_space<smem>>, %arg2: memref<16xi32, #tpu.memory_space<smem>>) -> (i32, i32) {
    %c0_i32 = arith.constant 0 : i32
    %c0_i32_0 = arith.constant 0 : i32
    %c0_i32_1 = arith.constant 0 : i32
    return %c0_i32, %c0_i32_0 : i32, i32
  }
  func.func @transform_35(%arg0: i32, %arg1: memref<16xi32, #tpu.memory_space<smem>>, %arg2: memref<16xi32, #tpu.memory_space<smem>>) -> (i32, i32) {
    %c0_i32 = arith.constant 0 : i32
    %c0_i32_0 = arith.constant 0 : i32
    %c0_i32_1 = arith.constant 0 : i32
    return %c0_i32, %c0_i32_0 : i32, i32
  }
  func.func @transform_36(%arg0: i32, %arg1: memref<16xi32, #tpu.memory_space<smem>>, %arg2: memref<16xi32, #tpu.memory_space<smem>>) -> (i32, i32) {
    %c0_i32 = arith.constant 0 : i32
    %c0_i32_0 = arith.constant 0 : i32
    %c0_i32_1 = arith.constant 0 : i32
    return %c0_i32, %c0_i32_0 : i32, i32
  }
  func.func @transform_37(%arg0: i32, %arg1: memref<16xi32, #tpu.memory_space<smem>>, %arg2: memref<16xi32, #tpu.memory_space<smem>>) -> (i32, i32) {
    %c0_i32 = arith.constant 0 : i32
    %c0_i32_0 = arith.constant 0 : i32
    %c0_i32_1 = arith.constant 0 : i32
    return %c0_i32, %c0_i32_0 : i32, i32
  }
  func.func @transform_38(%arg0: i32, %arg1: memref<16xi32, #tpu.memory_space<smem>>, %arg2: memref<16xi32, #tpu.memory_space<smem>>) -> (i32, i32) {
    %c0_i32 = arith.constant 0 : i32
    %c0_i32_0 = arith.constant 0 : i32
    %c0_i32_1 = arith.constant 0 : i32
    return %c0_i32, %c0_i32_0 : i32, i32
  }
  func.func @transform_39(%arg0: i32, %arg1: memref<16xi32, #tpu.memory_space<smem>>, %arg2: memref<16xi32, #tpu.memory_space<smem>>) -> (i32, i32) {
    %c0_i32 = arith.constant 0 : i32
    %c0_i32_0 = arith.constant 0 : i32
    %c0_i32_1 = arith.constant 0 : i32
    return %c0_i32, %c0_i32_0 : i32, i32
  }
}

</mosaic_0001>

<bundles_post_ra>
// kernel: zeoformer_forward.1
= control target key start
LH: loop header
LB: loop body
LE: loop exit
PB: predicated region body
PF: predicated region fallthrough
CT: control target
= control target key end

     0   :  { %s5918_s6 = smov 2   ;;  %s5919_s10 = smov 3   ;;  %s7317_s0 = inlined_call_operand.smem [shape: u32[42], index: -1, kind: input, shape index: {}] }
   0x1   :  { %s6015_s5 = sld [smem:[%s7317_s0]]   ;;  %s5920_s14 = smov 4  }
   0x2   :  { %s6020_s9 = sld [smem:[%s7317_s0 + %s5918_s6]]   ;;  %s5921_s18 = smov 5  }
   0x3   :  { %s6025_s13 = sld [smem:[%s7317_s0 + %s5919_s10]]   ;;  %s5922_s22 = smov 6  }
   0x4   :  { %s6030_s17 = sld [smem:[%s7317_s0 + %s5920_s14]]   ;;  %s5923_s26 = smov 7  }
   0x5   :  { %s6035_s21 = sld [smem:[%s7317_s0 + %s5921_s18]]   ;;  %s5924_s30 = smov 8  }
   0x6   :  { %s6040_s25 = sld [smem:[%s7317_s0 + %s5922_s22]]   ;;  %s5925_s4 = smov 9  }
   0x7   :  { %s6045_s29 = sld [smem:[%s7317_s0 + %s5923_s26]]   ;;  %s5926_s10 = smov 10  }
   0x8   :  { %7389 = sst [smem:[#allocation70_spill]] %s6020_s9  ;;  %s5927_s15 = smov 11  }
   0x9   :  { %7390 = sst [smem:[#allocation71_spill]] %s6025_s13  ;;  %s5928_s20 = smov 12  }
   0xa   :  { %7391 = sst [smem:[#allocation72_spill]] %s6030_s17  ;;  %s5929_s26 = smov 13  }
   0xb   :  { %7392 = sst [smem:[#allocation73_spill]] %s6035_s21  ;;  %s5930_s1 = smov 14  }
   0xc   :  { %7393 = sst [smem:[#allocation74_spill]] %s6040_s25  ;;  %s5931_s7 = smov 15  }
   0xd   :  { %7394 = sst [smem:[#allocation75_spill]] %s6045_s29  ;;  %s5933_s22 = smov 17  }
   0xe   :  { %s6050_s3 = sld [smem:[%s7317_s0 + %s5924_s30]]   ;;  %s5934_s28 = smov 18  }
   0xf   :  { %s6055_s8 = sld [smem:[%s7317_s0 + %s5925_s4]]  }
  0x10   :  { %s6060_s14 = sld [smem:[%s7317_s0 + %s5926_s10]]  }
  0x11   :  { %s6065_s19 = sld [smem:[%s7317_s0 + %s5927_s15]]   ;;  %s5932_s15 = smov 16  }
  0x12   :  { %s6070_s24 = sld [smem:[%s7317_s0 + %s5928_s20]]  }
  0x13   :  { %s6075_s30 = sld [smem:[%s7317_s0 + %s5929_s26]]  }
  0x14   :  { %7395 = sst [smem:[#allocation76_spill]] %s6050_s3 }
  0x15   :  { %7396 = sst [smem:[#allocation77_spill]] %s6055_s8 }
  0x16   :  { %7397 = sst [smem:[#allocation78_spill]] %s6060_s14 }
  0x17   :  { %7398 = sst [smem:[#allocation79_spill]] %s6065_s19 }
  0x18   :  { %7399 = sst [smem:[#allocation80_spill]] %s6070_s24 }
  0x19   :  { %7400 = sst [smem:[#allocation81_spill]] %s6075_s30 }
  0x1a   :  { %s6080_s6 = sld [smem:[%s7317_s0 + %s5930_s1]]  }
  0x1b   :  { %s6085_s12 = sld [smem:[%s7317_s0 + %s5931_s7]]   ;;  %s5935_s7 = smov 19  }
  0x1c   :  { %s6090_s20 = sld [smem:[%s7317_s0 + %s5932_s15]]   ;;  %s5936_s15 = smov 20  }
  0x1d   :  { %s6095_s27 = sld [smem:[%s7317_s0 + %s5933_s22]]   ;;  %s5937_s22 = smov 21  }
  0x1e   :  { %s6100_s4 = sld [smem:[%s7317_s0 + %s5934_s28]]   ;;  %s5938_s28 = smov 22  }
  0x1f   :  { %s6105_s17 = sld [smem:[%s7317_s0 + %s5935_s7]]   ;;  %s5939_s7 = smov 23  }
  0x20   :  { %7401 = sst [smem:[#allocation82_spill]] %s6080_s6 }
  0x21   :  { %7402 = sst [smem:[#allocation83_spill]] %s6085_s12 }
  0x22   :  { %7403 = sst [smem:[#allocation84_spill]] %s6090_s20 }
  0x23   :  { %7404 = sst [smem:[#allocation85_spill]] %s6095_s27 }
  0x24   :  { %7405 = sst [smem:[#allocation86_spill]] %s6100_s4 }
  0x25   :  { %7406 = sst [smem:[#allocation87_spill]] %s6105_s17 }
  0x26   :  { %s6110_s19 = sld [smem:[%s7317_s0 + %s5936_s15]]   ;;  %s5940_s15 = smov 24  }
  0x27   :  { %s6115_s13 = sld [smem:[%s7317_s0 + %s5937_s22]]   ;;  %s5941_s22 = smov 25  }
  0x28   :  { %s6120_s9 = sld [smem:[%s7317_s0 + %s5938_s28]]   ;;  %s5942_s28 = smov 26  }
  0x29   :  { %s6125_s17 = sld [smem:[%s7317_s0 + %s5939_s7]]   ;;  %s5943_s7 = smov 27  }
  0x2a   :  { %s6130_s27 = sld [smem:[%s7317_s0 + %s5940_s15]]   ;;  %s5944_s15 = smov 28  }
  0x2b   :  { %s6150_s20 = sld [smem:[%s7317_s0 + %s5944_s15]]   ;;  %s5948_s15 = smov 32  }
  0x2c   :  { %7407 = sst [smem:[#allocation88_spill]] %s6110_s19 }
  0x2d   :  { %7408 = sst [smem:[#allocation89_spill]] %s6115_s13 }
  0x2e   :  { %7409 = sst [smem:[#allocation90_spill]] %s6120_s9 }
  0x2f   :  { %7410 = sst [smem:[#allocation91_spill]] %s6125_s17 }
  0x30   :  { %7411 = sst [smem:[#allocation92_spill]] %s6130_s27 }
  0x31   :  { %s6135_s19 = sld [smem:[%s7317_s0 + %s5941_s22]]   ;;  %s5945_s22 = smov 29  }
  0x32   :  { %s6140_s9 = sld [smem:[%s7317_s0 + %s5942_s28]]   ;;  %s5946_s28 = smov 30  }
  0x33   :  { %s6145_s17 = sld [smem:[%s7317_s0 + %s5943_s7]]   ;;  %s5947_s7 = smov 31  }
  0x34   :  { %7415 = sst [smem:[#allocation96_spill]] %s6150_s20 }
  0x35   :  { %s6160_s6 = sld [smem:[%s7317_s0 + %s5946_s28]]   ;;  %s5950_s28 = smov 34  }
  0x36   :  { %s6170_s20 = sld [smem:[%s7317_s0 + %s5948_s15]]   ;;  %s5952_s15 = smov 36  }
  0x37   :  { %7412 = sst [smem:[#allocation93_spill]] %s6135_s19 }
  0x38   :  { %7413 = sst [smem:[#allocation94_spill]] %s6140_s9 }
  0x39   :  { %7414 = sst [smem:[#allocation95_spill]] %s6145_s17 }
  0x3a   :  { %s6155_s19 = sld [smem:[%s7317_s0 + %s5945_s22]]   ;;  %s5949_s22 = smov 33  }
  0x3b   :  { %7417 = sst [smem:[#allocation98_spill]] %s6160_s6  ;;  %s5955_s6 = smov 40  }
  0x3c   :  { %s6165_s17 = sld [smem:[%s7317_s0 + %s5947_s7]]   ;;  %s5951_s7 = smov 35  }
  0x3d   :  { %7419 = sst [smem:[#allocation100_spill]] %s6170_s20  ;;  %s5956_s20 = smov 41  }
  0x3e   :  { %s6175_s1 = sld [smem:[%s7317_s0 + %s5949_s22]]   ;;  %s5953_s22 = smov 37  }
  0x3f   :  { %s6180_s10 = sld [smem:[%s7317_s0 + %s5950_s28]]  }
  0x40   :  { %7416 = sst [smem:[#allocation97_spill]] %s6155_s19  ;;  %s5954_s19 = smov 38  }
  0x41   :  { %s6185_s16 = sld [smem:[%s7317_s0 + %s5951_s7]]  }
  0x42   :  { %7418 = sst [smem:[#allocation99_spill]] %s6165_s17 }
  0x43   :  { %s6190_s23 = sld [smem:[%s7317_s0 + %s5952_s15]]  }
  0x44   :  { %7420 = sst [smem:[#allocation101_spill]] %s6175_s1  ;;  %s88_s1 = sshll.u32 %s6015_s5, 4  ;;  %s89_s1 = int_to_ptr.vmem [resolvable:$true] %s88_s1 }
  0x45   :  { %7421 = sst [smem:[#allocation102_spill]] %s6180_s10  ;;  %p5053_p1 = scmp.lt.s32.totalorder %s89_s1, %s89_s1 }
  0x46   :  { %s6195_s17 = sld [smem:[%s7317_s0 + %s5953_s22]]   ;;  %s5048_s22 = scalar_lea.vmem %s89_s1, 16 }
  0x47   :  { %7422 = sst [smem:[#allocation103_spill]] %s6185_s16  ;;  %p5049_p0 = scmp.ne.s32.totalorder %s89_s1, %s5048_s22 }
  0x48   :  { %s6200_s10 = sld [smem:[%s7317_s0 + %s5954_s19]]   ;;  %p5054_p2 = scmp.lt.s32.totalorder %s5048_s22, %s5048_s22 }
  0x49   :  { %7423 = sst [smem:[#allocation104_spill]] %s6190_s23 }
  0x4a   :  { %s6205_s16 = sld [smem:[%s7317_s0 + %s5955_s6]]   ;;  %p5055_p3 = por %p5054_p2, %p5053_p1 }
  0x4b   :  { %s6210_s9 = sld [smem:[%s7317_s0 + %s5956_s20]]  }
  0x4c   :  { %7424 = sst [smem:[#allocation105_spill]] %s6195_s17  ;;  %p5056_p4 = pnand %p5055_p3, %p5049_p0 }
  0x4e   :  { %7425 = sst [smem:[#allocation106_spill]] %s6200_s10 }
  0x50   :  { %7426 = sst [smem:[#allocation107_spill]] %s6205_s16 }
  0x51   :  { %7427 = sst [smem:[#allocation108_spill]] %s6210_s9 }
  0x52   :  { %5059 = shalt.err (!%p5056_p4)  }
  0x53   :  { %s5957_s26 = smov [#allocation11]   ;;  %s5958_s19 = smov 1  }
  0x54   :  { %91 = dma.vmem_to_smem %s89_s1, 16, %s5957_s26, [#allocation10] }
  0x55   :  { %s4277_s6 = sld [smem:[%s7317_s0 + %s5958_s19]]   ;;  %s5959_s7 = smov 39  }
  0x56   :  { %s4315_s5 = sld [smem:[%s7317_s0 + %s5959_s7]]  }
  0x5b   :  { %s92_s15 = sshll.u32 %s4277_s6, 4  ;;  %s93_s15 = int_to_ptr.vmem [resolvable:$true] %s92_s15 }
  0x5c   :  { %v96_v0 = vstv %s4315_s5  ;;  %s5060_s18 = scalar_lea.vmem %s93_s15, 16  ;;  %p5065_p6 = scmp.lt.s32.totalorder %s93_s15, %s93_s15 }
  0x5d   :  { %p5061_p5 = scmp.ne.s32.totalorder %s93_s15, %s5060_s18  ;;  %p5066_p7 = scmp.lt.s32.totalorder %s5060_s18, %s5060_s18 }
  0x5f   :  { %p5067_p8 = por %p5066_p7, %p5065_p6 }
  0x61   :  { %p5068_p9 = pnand %p5067_p8, %p5061_p5 }
  0x63   :  { %5071 = shalt.err (!%p5068_p9)  }
  0x64   :  { %s5960_s1 = smov [#allocation12]   ;;  %97 = vst [vmem:[#allocation13] sm:$0x1] %v96_v0 }
  0x65   :  { %95 = dma.vmem_to_smem %s93_s15, 16, %s5960_s1, [#allocation10] }
  0x66   :  { %5844 = dma.done.wait [#allocation10], 32 }
  0x67   :  { %5845 = vsyncadd [#allocation10], 4294967264 }
  0x68   :  { %99 = sfence }
  0x69   :  { %100 = vsyncpa [#allocation15], 0 }
  0x6a   :  { %101 = vsyncpa [#allocation17], 0 }
  0x6b   :  { %102 = vsyncpa [#allocation20], 0 }
  0x6c   :  { %103 = vsyncpa [#allocation23], 0 }
  0x6d   :  { %104 = vsyncpa [#allocation26], 0 }
  0x6e   :  { %106 = vsyncpa [#allocation26 + $0x1], 0 }
  0x6f   :  { %107 = vsyncpa [#allocation29], 0 }
  0x70   :  { %109 = vsyncpa [#allocation29 + $0x1], 0 }
  0x71   :  { %110 = vsyncpa [#allocation32], 0 }
  0x72   :  { %112 = vsyncpa [#allocation32 + $0x1], 0 }
  0x73   :  { %113 = vsyncpa [#allocation35], 0 }
  0x74   :  { %115 = vsyncpa [#allocation35 + $0x1], 0 }
  0x75   :  { %116 = vsyncpa [#allocation38], 0 }
  0x76   :  { %118 = vsyncpa [#allocation38 + $0x1], 0 }
  0x77   :  { %119 = vsyncpa [#allocation41], 0 }
  0x78   :  { %121 = vsyncpa [#allocation41 + $0x1], 0 }
  0x79   :  { %122 = vsyncpa [#allocation44], 0 }
  0x7a   :  { %124 = vsyncpa [#allocation44 + $0x1], 0 }
  0x7b   :  { %125 = vsyncpa [#allocation47], 0 }
  0x7c   :  { %127 = vsyncpa [#allocation47 + $0x1], 0 }
  0x7d   :  { %128 = vsyncpa [#allocation50], 0 }
  0x7e   :  { %130 = vsyncpa [#allocation50 + $0x1], 0 }
  0x7f   :  { %131 = vsyncpa [#allocation53], 0  ;;  %s6219_s0 = smov 0   ;;  %s6221_s22 = smov 0  }
  0x80   :  { %s6223_s26 = smov 0   ;;  %s6225_s19 = smov 0  }
  0x81 LB: > { %s7428_s30 = sld [smem:[#allocation81_spill]]  ;;  %s7429_s29 = sld [smem:[#allocation75_spill]]  ;;  %s5908_s22 = sphi %s6221_s22, %s7556_s22   ;;  %s5904_s0 = sphi %s6219_s0, %s7555_s0   ;;  %s5916_s19 = sphi %s6225_s19, %s7554_s19   ;;  %s5912_s26 = sphi %s6223_s26, %s7557_s26  }
  0x82   : > { %s7430_s27 = sld [smem:[#allocation92_spill]]  ;;  %s7431_s13 = sld [smem:[#allocation89_spill]] }
  0x83   : > { %s7432_s12 = sld [smem:[#allocation83_spill]]  ;;  %s7433_s4 = sld [smem:[#allocation86_spill]] }
  0x84   : > { %s7434_s24 = sld [smem:[#allocation80_spill]]  ;;  %s7436_s21 = sld [smem:[#allocation73_spill]] }
  0x85   : > { %s7435_s23 = sld [smem:[#allocation104_spill]]  ;;  %s7437_s17 = sld [smem:[#allocation105_spill]] }
  0x86   : > { %s7438_s8 = sld [smem:[#allocation77_spill]]  ;;  %s7439_s14 = sld [smem:[#allocation78_spill]] }
  0x87   : > { %s7440_s25 = sld [smem:[#allocation74_spill]]  ;;  %s7441_s3 = sld [smem:[#allocation76_spill]] }
  0x88   : > { %7442 = sst [smem:[#allocation109_spill]] %s5908_s22  ;;  %s6238_s28 = sadd.s32 4294967295, %s5916_s19  }
  0x89   : > { %7443 = sst [smem:[#allocation110_spill]] %s5912_s26  ;;  %s6241_s2 = sadd.s32 1, %s5916_s19  }
  0x8a   : > { %7444 = sst [smem:[#allocation111_spill]] %s6238_s28  ;;  %s372_s6 = ssub.s32 %s5916_s19, %s6241_s2 }
  0x8b   : > { %7445 = sst [smem:[#allocation112_spill]] %s6241_s2  ;;  %s375_s7 = sadd.s32 1, %s5912_s26 }
  0x8c   : > { %p373_p10 = scmp.eq.s32.totalorder %s372_s6, 0  ;;  %p382_p11 = scmp.ne.s32.totalorder %s5912_s26, %s5908_s22 }
  0x8d   : > { %p383_p12 = scmp.eq.s32.totalorder %s5916_s19, 0  ;;  %p388_p13 = scmp.ne.s32.totalorder %s5908_s22, %s5904_s0 }
  0x8e   : > { %s6251_s11 = scalar_select %p373_p10, %s5912_s26, %s375_s7  }
  0x8f   : > { %p6253_p0 = por %p383_p12, %p382_p11  ;;  %p7334_p1 = scmp.eq.s32.totalorder %s6238_s28, 0 }
  0x90   : > { %7446 = sst [smem:[#allocation113_spill]] %s6251_s11  ;;  %p4319_p2 = scmp.ge.s32.totalorder %s5916_s19, 1 }
  0x91   : > { %s7447_s20 = scalar_select %p6253_p0, 1, 0 }
  0x92   : > { %p1092_p3 = scmp.lt.s32.totalorder %s5916_s19, 5  ;;  %p6262_p4 = por %p7334_p1, %p388_p13 }
  0x93   : > { %s5961_s18 = smov [#allocation16]   ;;  %s5962_s0 = smov [#allocation19]  }
  0x94   : > { %s7448_s5 = scalar_select %p6262_p4, 1, 0 }
  0x95   : > { %p6267_p6 = pnand %p4319_p2, %p1092_p3  ;;  %s1127_s1 = sshll.u32 %s5961_s18, 4  ;;  %s1128_s1 = int_to_ptr.vmem [resolvable:$true] %s1127_s1 }
  0x96   : > { %s1151_s6 = sshll.u32 %s5962_s0, 4  ;;  %s5963_s11 = smov [#allocation22]   ;;  %s6279_s6 = int_to_ptr.vmem [resolvable:$true] %s1151_s6 }
  0x97   : > { %s7449_s15 = scalar_select %p6267_p6, 1, 0 }
  0x98   : > { %p4795_p7 = pneg %p6267_p6  ;;  %s1175_s2 = sshll.u32 %s5963_s11, 4  ;;  %s6281_s2 = int_to_ptr.vmem [resolvable:$true] %s1175_s2 }
  0x99   : > { %s5072_s9 = scalar_lea.hbm %s7440_s25, 16 }
  0x9a   : > { %p6275_p8 = pnand %p4795_p7, %p7334_p1  ;;  %p5073_p9 = scmp.ne.s32.totalorder %s7440_s25, %s5072_s9 }
  0x9b   : > { %p5079_p13 = scmp.lt.u32.totalorder %s5072_s9, %s7440_s25 }
  0x9c   : > { %p6287_p10 = pneg %p6275_p8 }
  0x9e   : > { %p5075_p11 = pnand %p6287_p10, %p5073_p9 }
  0xa0   : > { %p5076_p12 = pneg %p5075_p11 }
  0xa2   : > { %p5081_p2 = pnand %p5079_p13, %p5076_p12 }
  0xa4   : > { %5084 = shalt.err (!%p5081_p2)
}
  0xa5   : > { %s5085_s0 = scalar_lea.vmem %s1128_s1, 16  ;;  %s5092_s11 = scalar_lea.vmem %s1128_s1, 32 }
  0xa6   : > { %p5086_p3 = scmp.ne.s32.totalorder %s1128_s1, %s5085_s0  ;;  %p5093_p1 = scmp.lt.s32.totalorder %s1128_s1, %s1128_s1 }
  0xa7   : > { %p5094_p4 = scmp.lt.s32.totalorder %s5092_s11, %s5085_s0 }
  0xa8   : > { %p5088_p7 = pnand %p5086_p3, %p6287_p10 }
  0xa9   : > { %p5095_p6 = por %p5094_p4, %p5093_p1 }
  0xaa   : > { %p5089_p5 = pneg %p5088_p7 }
  0xac   : > { %p5096_p0 = pnand %p5095_p6, %p5089_p5 }
  0xae   : > { %5099 = shalt.err (!%p5096_p0)
}
  0xaf   : > { %4801 = dma.hbm_to_vmem [thread:$0]  (!%p6275_p8), %s7440_s25, 16, %s1128_s1, [#allocation17]  }
  0xb0   : > { %s5100_s9 = scalar_lea.hbm %s7441_s3, 16 }
  0xb1   : > { %p5101_p9 = scmp.ne.s32.totalorder %s7441_s3, %s5100_s9  ;;  %p5107_p13 = scmp.lt.u32.totalorder %s5100_s9, %s7441_s3 }
  0xb3   : > { %p5103_p11 = pnand %p5101_p9, %p6287_p10 }
  0xb5   : > { %p5104_p12 = pneg %p5103_p11 }
  0xb7   : > { %p5109_p2 = pnand %p5107_p13, %p5104_p12 }
  0xb9   : > { %5112 = shalt.err (!%p5109_p2)
}
  0xba   : > { %s5113_s0 = scalar_lea.vmem %s6279_s6, 16  ;;  %s5120_s11 = scalar_lea.vmem %s6279_s6, 32 }
  0xbb   : > { %p5114_p0 = scmp.ne.s32.totalorder %s6279_s6, %s5113_s0  ;;  %p5121_p5 = scmp.lt.s32.totalorder %s6279_s6, %s6279_s6 }
  0xbc   : > { %p5122_p6 = scmp.lt.s32.totalorder %s5120_s11, %s5113_s0 }
  0xbd   : > { %p5116_p1 = pnand %p5114_p0, %p6287_p10 }
  0xbe   : > { %p5123_p3 = por %p5122_p6, %p5121_p5 }
  0xbf   : > { %p5117_p4 = pneg %p5116_p1 }
  0xc1   : > { %p5124_p7 = pnand %p5123_p3, %p5117_p4 }
  0xc3   : > { %5127 = shalt.err (!%p5124_p7)
}
  0xc4   : > { %4807 = dma.hbm_to_vmem [thread:$0]  (!%p6275_p8), %s7441_s3, 16, %s6279_s6, [#allocation20]  }
  0xc5   : > { %s5128_s1 = scalar_lea.hbm %s7439_s14, 16 }
  0xc6   : > { %p5129_p9 = scmp.ne.s32.totalorder %s7439_s14, %s5128_s1  ;;  %p5135_p13 = scmp.lt.u32.totalorder %s5128_s1, %s7439_s14 }
  0xc8   : > { %p5131_p11 = pnand %p5129_p9, %p6287_p10 }
  0xca   : > { %p5132_p12 = pneg %p5131_p11 }
  0xcc   : > { %p5137_p2 = pnand %p5135_p13, %p5132_p12 }
  0xce   : > { %5140 = shalt.err (!%p5137_p2)
}
  0xcf   : > { %s5141_s9 = scalar_lea.vmem %s6281_s2, 16  ;;  %s5148_s0 = scalar_lea.vmem %s6281_s2, 32 }
  0xd0   : > { %p5142_p0 = scmp.ne.s32.totalorder %s6281_s2, %s5141_s9  ;;  %p5149_p5 = scmp.lt.s32.totalorder %s6281_s2, %s6281_s2 }
  0xd1   : > { %p5150_p6 = scmp.lt.s32.totalorder %s5148_s0, %s5141_s9 }
  0xd2   : > { %p5144_p1 = pnand %p5142_p0, %p6287_p10 }
  0xd3   : > { %p5151_p3 = por %p5150_p6, %p5149_p5 }
  0xd4   : > { %p5145_p4 = pneg %p5144_p1 }
  0xd6   : > { %p5152_p7 = pnand %p5151_p3, %p5145_p4 }
  0xd8   : > { %5155 = shalt.err (!%p5152_p7)
}
  0xd9   : > { %4813 = dma.hbm_to_vmem [thread:$0]  (!%p6275_p8), %s7439_s14, 16, %s6281_s2, [#allocation23]  }
  0xda   : > { %s5964_s6 = smov [#allocation52]   ;;  %s5965_s1 = smov [#allocation14]  }
  0xdb   : > { %s1202_s11 = sshll.u32 %s5964_s6, 4  ;;  %s1113_s3 = sshll.u32 %s5965_s1, 4  ;;  %s1203_s11 = int_to_ptr.vmem [resolvable:$true] %s1202_s11  ;;  %s1114_s3 = int_to_ptr.vmem [resolvable:$true] %s1113_s3 }
  0xdc   : > { %s5156_s25 = scalar_lea.hbm %s7435_s23, 256 }
  0xdd   : > { %p5157_p9 = scmp.ne.s32.totalorder %s7435_s23, %s5156_s25  ;;  %p5163_p13 = scmp.lt.u32.totalorder %s5156_s25, %s7435_s23 }
  0xdf   : > { %p5159_p11 = pnand %p5157_p9, %p6287_p10 }
  0xe1   : > { %p5160_p12 = pneg %p5159_p11 }
  0xe3   : > { %p5165_p2 = pnand %p5163_p13, %p5160_p12 }
  0xe5   : > { %5168 = shalt.err (!%p5165_p2)
}
  0xe6   : > { %s5169_s9 = scalar_lea.vmem %s1203_s11, 256  ;;  %p5177_p5 = scmp.lt.s32.totalorder %s1203_s11, %s1203_s11 }
  0xe7   : > { %p5170_p0 = scmp.ne.s32.totalorder %s1203_s11, %s5169_s9  ;;  %p5178_p6 = scmp.lt.s32.totalorder %s5169_s9, %s5169_s9 }
  0xe9   : > { %p5172_p1 = pnand %p5170_p0, %p6287_p10  ;;  %p5179_p3 = por %p5178_p6, %p5177_p5 }
  0xeb   : > { %p5173_p4 = pneg %p5172_p1 }
  0xed   : > { %p5180_p7 = pnand %p5179_p3, %p5173_p4 }
  0xef   : > { %5183 = shalt.err (!%p5180_p7)
}
  0xf0   : > { %s5966_s2 = smov 64   ;;  %s5967_s25 = smov 4  }
  0xf1   : > { %4819 = dma.hbm_to_vmem [thread:$0]  (!%p6275_p8), %s7435_s23, 256, %s1203_s11, [#allocation53], %s5966_s2, %s5966_s2, %s5967_s25  }
  0xf2   : > { %s5184_s0 = scalar_lea.hbm %s7436_s21, 128 }
  0xf3   : > { %p5185_p9 = scmp.ne.s32.totalorder %s7436_s21, %s5184_s0  ;;  %p5191_p13 = scmp.lt.u32.totalorder %s5184_s0, %s7436_s21 }
  0xf5   : > { %p5187_p11 = pnand %p5185_p9, %p6287_p10 }
  0xf7   : > { %p5188_p12 = pneg %p5187_p11 }
  0xf9   : > { %p5193_p2 = pnand %p5191_p13, %p5188_p12 }
  0xfb   : > { %5196 = shalt.err (!%p5193_p2)
}
  0xfc   : > { %s5197_s6 = scalar_lea.vmem %s1114_s3, 128  ;;  %p5205_p5 = scmp.lt.s32.totalorder %s1114_s3, %s1114_s3 }
  0xfd   : > { %p5198_p0 = scmp.ne.s32.totalorder %s1114_s3, %s5197_s6  ;;  %p5206_p6 = scmp.lt.s32.totalorder %s5197_s6, %s5197_s6 }
  0xff   : > { %p5200_p1 = pnand %p5198_p0, %p6287_p10  ;;  %p5207_p3 = por %p5206_p6, %p5205_p5 }
 0x101   : > { %p5201_p4 = pneg %p5200_p1 }
 0x103   : > { %p5208_p7 = pnand %p5207_p3, %p5201_p4 }
 0x105   : > { %5211 = shalt.err (!%p5208_p7)
}
 0x106   : > { %4798 = dma.hbm_to_vmem [thread:$0]  (!%p6275_p8), %s7436_s21, 128, %s1114_s3, [#allocation15], %s5966_s2, %s5966_s2, %s5967_s25  }
 0x107   : > { %s5968_s11 = smov [#allocation18]   ;;  %s5969_s9 = smov [#allocation21]  }
 0x108   : > { %s1137_s1 = sshll.u32 %s5968_s11, 4  ;;  %s1161_s0 = sshll.u32 %s5969_s9, 4  ;;  %s1138_s1 = int_to_ptr.vmem [resolvable:$true] %s1137_s1  ;;  %s1162_s0 = int_to_ptr.vmem [resolvable:$true] %s1161_s0 }
 0x109   : > { %s5212_s6 = scalar_lea.hbm %s7429_s29, 256 }
 0x10a   : > { %p5213_p9 = scmp.ne.s32.totalorder %s7429_s29, %s5212_s6  ;;  %p5219_p13 = scmp.lt.u32.totalorder %s5212_s6, %s7429_s29 }
 0x10c   : > { %p5215_p11 = pnand %p5213_p9, %p6287_p10 }
 0x10e   : > { %p5216_p12 = pneg %p5215_p11 }
 0x110   : > { %p5221_p2 = pnand %p5219_p13, %p5216_p12 }
 0x112   : > { %5224 = shalt.err (!%p5221_p2)
}
 0x113   : > { %s5225_s14 = scalar_lea.vmem %s1138_s1, 256  ;;  %p5233_p5 = scmp.lt.s32.totalorder %s1138_s1, %s1138_s1 }
 0x114   : > { %p5226_p0 = scmp.ne.s32.totalorder %s1138_s1, %s5225_s14  ;;  %p5234_p6 = scmp.lt.s32.totalorder %s5225_s14, %s5225_s14 }
 0x116   : > { %p5228_p1 = pnand %p5226_p0, %p6287_p10  ;;  %p5235_p3 = por %p5234_p6, %p5233_p5 }
 0x118   : > { %p5229_p4 = pneg %p5228_p1 }
 0x11a   : > { %p5236_p7 = pnand %p5235_p3, %p5229_p4 }
 0x11c   : > { %5239 = shalt.err (!%p5236_p7)
}
 0x11d   : > { %4804 = dma.hbm_to_vmem [thread:$0]  (!%p6275_p8), %s7429_s29, 256, %s1138_s1, [#allocation17], %s5966_s2, %s5966_s2, %s5967_s25  }
 0x11e   : > { %s5240_s3 = scalar_lea.hbm %s7438_s8, 256 }
 0x11f   : > { %p5241_p9 = scmp.ne.s32.totalorder %s7438_s8, %s5240_s3  ;;  %p5247_p13 = scmp.lt.u32.totalorder %s5240_s3, %s7438_s8 }
 0x121   : > { %p5243_p11 = pnand %p5241_p9, %p6287_p10 }
 0x123   : > { %p5244_p12 = pneg %p5243_p11 }
 0x125   : > { %p5249_p2 = pnand %p5247_p13, %p5244_p12 }
 0x127   : > { %5252 = shalt.err (!%p5249_p2)
}
 0x128   : > { %s5253_s14 = scalar_lea.vmem %s1162_s0, 256  ;;  %p5261_p5 = scmp.lt.s32.totalorder %s1162_s0, %s1162_s0 }
 0x129   : > { %p5254_p0 = scmp.ne.s32.totalorder %s1162_s0, %s5253_s14  ;;  %p5262_p6 = scmp.lt.s32.totalorder %s5253_s14, %s5253_s14 }
 0x12b   : > { %p5256_p1 = pnand %p5254_p0, %p6287_p10  ;;  %p5263_p3 = por %p5262_p6, %p5261_p5 }
 0x12d   : > { %p5257_p4 = pneg %p5256_p1 }
 0x12f   : > { %p5264_p7 = pnand %p5263_p3, %p5257_p4 }
 0x131   : > { %5267 = shalt.err (!%p5264_p7)
}
 0x132   : > { %4810 = dma.hbm_to_vmem [thread:$0]  (!%p6275_p8), %s7438_s8, 256, %s1162_s0, [#allocation20], %s5966_s2, %s5966_s2, %s5967_s25  }
 0x133   : > { %s5970_s11 = smov [#allocation24]   ;;  %s5971_s9 = smov [#allocation54]  }
 0x134   : > { %s1189_s1 = sshll.u32 %s5970_s11, 4  ;;  %s1216_s6 = sshll.u32 %s5971_s9, 4  ;;  %s1190_s1 = int_to_ptr.vmem [resolvable:$true] %s1189_s1  ;;  %s1217_s6 = int_to_ptr.vmem [resolvable:$true] %s1216_s6 }
 0x135   : > { %s5268_s3 = scalar_lea.hbm %s7434_s24, 16 }
 0x136   : > { %p5269_p9 = scmp.ne.s32.totalorder %s7434_s24, %s5268_s3  ;;  %p5275_p13 = scmp.lt.u32.totalorder %s5268_s3, %s7434_s24 }
 0x138   : > { %p5271_p11 = pnand %p5269_p9, %p6287_p10 }
 0x13a   : > { %p5272_p12 = pneg %p5271_p11 }
 0x13c   : > { %p5277_p2 = pnand %p5275_p13, %p5272_p12 }
 0x13e   : > { %5280 = shalt.err (!%p5277_p2)
}
 0x13f   : > { %s5281_s14 = scalar_lea.vmem %s1190_s1, 16  ;;  %s5288_s2 = scalar_lea.vmem %s1190_s1, 32 }
 0x140   : > { %p5282_p0 = scmp.ne.s32.totalorder %s1190_s1, %s5281_s14  ;;  %p5289_p5 = scmp.lt.s32.totalorder %s1190_s1, %s1190_s1 }
 0x141   : > { %p5290_p6 = scmp.lt.s32.totalorder %s5288_s2, %s5281_s14 }
 0x142   : > { %p5284_p1 = pnand %p5282_p0, %p6287_p10 }
 0x143   : > { %p5291_p3 = por %p5290_p6, %p5289_p5 }
 0x144   : > { %p5285_p4 = pneg %p5284_p1 }
 0x146   : > { %p5292_p7 = pnand %p5291_p3, %p5285_p4 }
 0x148   : > { %5295 = shalt.err (!%p5292_p7)
}
 0x149   : > { %4816 = dma.hbm_to_vmem [thread:$0]  (!%p6275_p8), %s7434_s24, 16, %s1190_s1, [#allocation23]  }
 0x14a   : > { %s5296_s25 = scalar_lea.hbm %s7437_s17, 16 }
 0x14b   : > { %p5297_p9 = scmp.ne.s32.totalorder %s7437_s17, %s5296_s25  ;;  %p5303_p13 = scmp.lt.u32.totalorder %s5296_s25, %s7437_s17 }
 0x14d   : > { %p5299_p11 = pnand %p5297_p9, %p6287_p10 }
 0x14f   : > { %p5300_p12 = pneg %p5299_p11 }
 0x151   : > { %p5305_p2 = pnand %p5303_p13, %p5300_p12 }
 0x153   : > { %5308 = shalt.err (!%p5305_p2)
}
 0x154   : > { %s5309_s0 = scalar_lea.vmem %s1217_s6, 16  ;;  %s5316_s11 = scalar_lea.vmem %s1217_s6, 32 }
 0x155   : > { %p5310_p0 = scmp.ne.s32.totalorder %s1217_s6, %s5309_s0  ;;  %p5317_p5 = scmp.lt.s32.totalorder %s1217_s6, %s1217_s6 }
 0x156   : > { %p5318_p6 = scmp.lt.s32.totalorder %s5316_s11, %s5309_s0 }
 0x157   : > { %p5312_p1 = pnand %p5310_p0, %p6287_p10 }
 0x158   : > { %p5319_p3 = por %p5318_p6, %p5317_p5 }
 0x159   : > { %p5313_p4 = pneg %p5312_p1 }
 0x15b   : > { %p5320_p7 = pnand %p5319_p3, %p5313_p4 }
 0x15d   : > { %5323 = shalt.err (!%p5320_p7)
}
 0x15e   : > { %4822 = dma.hbm_to_vmem [thread:$0]  (!%p6275_p8), %s7437_s17, 16, %s1217_s6, [#allocation53]  }
 0x15f   : > { %p4329_p9 = scmp.ge.s32.totalorder %s5916_s19, 4 }
 0x160   : > { %s6405_s18 = sand.u32 (!%p4329_p9), 1, %s5916_s19   ;;  %s6408_s1 = sand.u32 (!%p4329_p9), 1, %s5912_s26  }
 0x161   : > { %1232 = sbr.rel (%p4329_p9) target bundleno = 803 (0x323), region = 84  ;;  %s6411_s9 = sshll.u32 (!%p4329_p9), %s6408_s1, 4 }
 0x162   : > { %s6414_s7 = sshll.u32 (!%p4329_p9), %s5916_s19, 8  ;;  %s1240_s3 = scalar_lea.vmem (!%p4329_p9), [#allocation25], %s6411_s9 }
 0x163   : > { %s6418_s6 = scalar_lea.hbm (!%p4329_p9), %s7428_s30, %s6414_s7  ;;  %s1247_s14 = sshll.u32 (!%p4329_p9), %s1240_s3, 4  ;;  %s6421_s14 = int_to_ptr.vmem [resolvable:$true] %s1247_s14 }
 0x164   : > { %s5324_s25 = scalar_lea.hbm (!%p4329_p9), %s6418_s6, 256  ;;  %p7452_p10 = scmp.ne.s32.totalorder (!%p4329_p9), %s7447_s20, 0 }
 0x165   : > { %p5325_p8 = scmp.ne.s32.totalorder (!%p4329_p9), %s6418_s6, %s5324_s25  ;;  %s5328_s0 = scalar_lea.hbm (!%p4329_p9), %s7428_s30, 1024 }
 0x166   : > { %p5329_p13 = scmp.lt.u32.totalorder (!%p4329_p9), %s6418_s6, %s7428_s30  ;;  %p5330_p2 = scmp.lt.u32.totalorder (!%p4329_p9), %s5328_s0, %s5324_s25 }
 0x167   : > { %p5326_p11 = pnand (!%p4329_p9), %p5325_p8, %p7452_p10  ;;  %p5332_p1 = scmp.lt.u32.totalorder (!%p4329_p9), %s5324_s25, %s6418_s6 }
 0x168   : > { %p5331_p0 = por %p5330_p2, %p5329_p13 }
 0x169   : > { %p5327_p12 = pneg %p5326_p11 }
 0x16a   : > { %p5333_p4 = por %p5332_p1, %p5331_p0 }
 0x16c   : > { %p5334_p5 = pnand %p5333_p4, %p5327_p12 }
 0x16e   : > { %5337 = shalt.err (!%p5334_p5)
}
 0x16f   : > { %s5338_s11 = scalar_lea.vmem %s6421_s14, 256  ;;  %s5972_s3 = smov [#allocation25]  }
 0x170   : > { %p5339_p6 = scmp.ne.s32.totalorder %s6421_s14, %s5338_s11  ;;  %s5342_s2 = sshll.u32 %s5972_s3, 4  ;;  %s5343_s2 = int_to_ptr.vmem [resolvable:$false] %s5342_s2 }
 0x171   : > { %s5344_s8 = scalar_lea.vmem %s5343_s2, 512  ;;  %p5345_p9 = scmp.lt.s32.totalorder %s6421_s14, %s5343_s2 }
 0x172   : > { %p5340_p3 = pnand %p5339_p6, %p7452_p10  ;;  %p5346_p8 = scmp.lt.s32.totalorder %s5344_s8, %s5338_s11 }
 0x174   : > { %p5341_p7 = pneg %p5340_p3  ;;  %p5347_p11 = por %p5346_p8, %p5345_p9 }
 0x176   : > { %p5348_p13 = pnand %p5347_p11, %p5341_p7 }
 0x178   : > { %5351 = shalt.err (!%p5348_p13)
}
 0x179   : > { %s7350_s25 = smov 64   ;;  %s7353_s0 = smov 4  }
 0x17a   : > { %s7453_s8 = scalar_lea.sflag [#allocation26], %s6405_s18  ;;  %s6448_s2 = scalar_lea.hbm %s7432_s12, %s6414_s7 }
 0x17b   : > { %4741 = dma.hbm_to_vmem [thread:$0]  (%p7452_p10), %s6418_s6, 256, %s6421_s14, %s7453_s8, %s7350_s25, %s7350_s25, %s7353_s0  }
 0x17c   : > { %s1278_s11 = scalar_lea.vmem [#allocation28], %s6411_s9  ;;  %s6452_s17 = sshll.u32 %s5916_s19, 4 }
 0x17d   : > { %s1285_s3 = sshll.u32 %s1278_s11, 4  ;;  %s7348_s21 = scalar_lea.sflag [#allocation29], %s6405_s18  ;;  %s6454_s3 = int_to_ptr.vmem [resolvable:$true] %s1285_s3 }
 0x17e   : > { %s5352_s23 = scalar_lea.hbm %s6448_s2, 256  ;;  %s5356_s24 = scalar_lea.hbm %s7432_s12, 1024 }
 0x17f   : > { %p5353_p12 = scmp.ne.s32.totalorder %s6448_s2, %s5352_s23  ;;  %p5357_p1 = scmp.lt.u32.totalorder %s6448_s2, %s7432_s12 }
 0x180   : > { %p5358_p4 = scmp.lt.u32.totalorder %s5356_s24, %s5352_s23  ;;  %p5360_p6 = scmp.lt.u32.totalorder %s5352_s23, %s6448_s2 }
 0x181   : > { %p5354_p2 = pnand %p5353_p12, %p7452_p10 }
 0x182   : > { %p5359_p5 = por %p5358_p4, %p5357_p1 }
 0x183   : > { %p5355_p0 = pneg %p5354_p2 }
 0x184   : > { %p5361_p3 = por %p5360_p6, %p5359_p5 }
 0x186   : > { %p5362_p7 = pnand %p5361_p3, %p5355_p0 }
 0x188   : > { %5365 = shalt.err (!%p5362_p7)
}
 0x189   : > { %s5366_s19 = scalar_lea.vmem %s6454_s3, 256  ;;  %s5975_s6 = smov [#allocation28]  }
 0x18a   : > { %p5367_p9 = scmp.ne.s32.totalorder %s6454_s3, %s5366_s19  ;;  %s5370_s14 = sshll.u32 %s5975_s6, 4  ;;  %s5371_s14 = int_to_ptr.vmem [resolvable:$false] %s5370_s14 }
 0x18b   : > { %s5372_s8 = scalar_lea.vmem %s5371_s14, 512  ;;  %p5373_p13 = scmp.lt.s32.totalorder %s6454_s3, %s5371_s14 }
 0x18c   : > { %p5368_p8 = pnand %p5367_p9, %p7452_p10  ;;  %p5374_p12 = scmp.lt.s32.totalorder %s5372_s8, %s5366_s19 }
 0x18e   : > { %p5369_p11 = pneg %p5368_p8  ;;  %p5375_p2 = por %p5374_p12, %p5373_p13 }
 0x190   : > { %p5376_p1 = pnand %p5375_p2, %p5369_p11 }
 0x192   : > { %5379 = shalt.err (!%p5376_p1)
}
 0x193   : > { %4743 = dma.hbm_to_vmem [thread:$0]  (%p7452_p10), %s6448_s2, 256, %s6454_s3, %s7348_s21, %s7350_s25, %s7350_s25, %s7353_s0  }
 0x194   : > { %s6481_s24 = scalar_lea.hbm %s7433_s4, %s6452_s17  ;;  %s1323_s23 = scalar_lea.vmem [#allocation31], %s6408_s1 }
 0x195   : > { %s1330_s11 = sshll.u32 %s1323_s23, 4  ;;  %s7346_s19 = scalar_lea.sflag [#allocation32], %s6405_s18  ;;  %s1331_s11 = int_to_ptr.vmem [resolvable:$true] %s1330_s11 }
 0x196   : > { %s5380_s6 = scalar_lea.hbm %s6481_s24, 16  ;;  %s5384_s14 = scalar_lea.hbm %s7433_s4, 64 }
 0x197   : > { %p5381_p0 = scmp.ne.s32.totalorder %s6481_s24, %s5380_s6  ;;  %p5385_p6 = scmp.lt.u32.totalorder %s6481_s24, %s7433_s4 }
 0x198   : > { %p5386_p3 = scmp.lt.u32.totalorder %s5384_s14, %s5380_s6  ;;  %p5388_p9 = scmp.lt.u32.totalorder %s5380_s6, %s6481_s24 }
 0x199   : > { %p5382_p4 = pnand %p5381_p0, %p7452_p10 }
 0x19a   : > { %p5387_p7 = por %p5386_p3, %p5385_p6 }
 0x19b   : > { %p5383_p5 = pneg %p5382_p4 }
 0x19c   : > { %p5389_p8 = por %p5388_p9, %p5387_p7 }
 0x19e   : > { %p5390_p11 = pnand %p5389_p8, %p5383_p5 }
 0x1a0   : > { %5393 = shalt.err (!%p5390_p11)
}
 0x1a1   : > { %s5394_s2 = scalar_lea.vmem %s1331_s11, 16  ;;  %s5976_s3 = smov [#allocation31]  }
 0x1a2   : > { %p5395_p13 = scmp.ne.s32.totalorder %s1331_s11, %s5394_s2  ;;  %s5398_s8 = sshll.u32 %s5976_s3, 4  ;;  %s5399_s8 = int_to_ptr.vmem [resolvable:$false] %s5398_s8 }
 0x1a3   : > { %s5400_s23 = scalar_lea.vmem %s5399_s8, 32  ;;  %p5401_p1 = scmp.lt.s32.totalorder %s1331_s11, %s5399_s8 }
 0x1a4   : > { %p5396_p12 = pnand %p5395_p13, %p7452_p10  ;;  %p5402_p0 = scmp.lt.s32.totalorder %s5400_s23, %s5394_s2 }
 0x1a6   : > { %p5397_p2 = pneg %p5396_p12  ;;  %p5403_p4 = por %p5402_p0, %p5401_p1 }
 0x1a8   : > { %p5404_p3 = pnand %p5403_p4, %p5397_p2 }
 0x1aa   : > { %5407 = shalt.err (!%p5404_p3)
}
 0x1ab   : > { %4745 = dma.hbm_to_vmem [thread:$0]  (%p7452_p10), %s6481_s24, 16, %s1331_s11, %s7346_s19  }
 0x1ac   : > { %s6502_s6 = scalar_lea.hbm %s7431_s13, %s6452_s17  ;;  %s1365_s14 = scalar_lea.vmem [#allocation34], %s6408_s1 }
 0x1ad   : > { %s1372_s2 = sshll.u32 %s1365_s14, 4  ;;  %s7347_s3 = scalar_lea.sflag [#allocation35], %s6405_s18  ;;  %s1373_s2 = int_to_ptr.vmem [resolvable:$true] %s1372_s2 }
 0x1ae   : > { %s5408_s8 = scalar_lea.hbm %s6502_s6, 16  ;;  %s5412_s23 = scalar_lea.hbm %s7431_s13, 64 }
 0x1af   : > { %p5409_p5 = scmp.ne.s32.totalorder %s6502_s6, %s5408_s8  ;;  %p5413_p9 = scmp.lt.u32.totalorder %s6502_s6, %s7431_s13 }
 0x1b0   : > { %p5414_p8 = scmp.lt.u32.totalorder %s5412_s23, %s5408_s8  ;;  %p5416_p13 = scmp.lt.u32.totalorder %s5408_s8, %s6502_s6 }
 0x1b1   : > { %p5410_p6 = pnand %p5409_p5, %p7452_p10 }
 0x1b2   : > { %p5415_p11 = por %p5414_p8, %p5413_p9 }
 0x1b3   : > { %p5411_p7 = pneg %p5410_p6 }
 0x1b4   : > { %p5417_p12 = por %p5416_p13, %p5415_p11 }
 0x1b6   : > { %p5418_p2 = pnand %p5417_p12, %p5411_p7 }
 0x1b8   : > { %5421 = shalt.err (!%p5418_p2)
}
 0x1b9   : > { %s5422_s24 = scalar_lea.vmem %s1373_s2, 16  ;;  %s5977_s11 = smov [#allocation34]  }
 0x1ba   : > { %p5423_p1 = scmp.ne.s32.totalorder %s1373_s2, %s5422_s24  ;;  %s5426_s14 = sshll.u32 %s5977_s11, 4  ;;  %s5427_s14 = int_to_ptr.vmem [resolvable:$false] %s5426_s14 }
 0x1bb   : > { %s5428_s19 = scalar_lea.vmem %s5427_s14, 32  ;;  %p5429_p3 = scmp.lt.s32.totalorder %s1373_s2, %s5427_s14 }
 0x1bc   : > { %p5424_p0 = pnand %p5423_p1, %p7452_p10  ;;  %p5430_p5 = scmp.lt.s32.totalorder %s5428_s19, %s5422_s24 }
 0x1be   : > { %p5425_p4 = pneg %p5424_p0  ;;  %p5431_p6 = por %p5430_p5, %p5429_p3 }
 0x1c0   : > { %p5432_p8 = pnand %p5431_p6, %p5425_p4 }
 0x1c2   : > { %5435 = shalt.err (!%p5432_p8)
}
 0x1c3   : > { %4747 = dma.hbm_to_vmem [thread:$0]  (%p7452_p10), %s6502_s6, 16, %s1373_s2, %s7347_s3  }
 0x1c4   : > { %s6523_s8 = scalar_lea.hbm %s7430_s27, %s6452_s17  ;;  %s1407_s19 = scalar_lea.vmem [#allocation37], %s6408_s1 }
 0x1c5   : > { %s1414_s23 = sshll.u32 %s1407_s19, 4  ;;  %s7349_s24 = scalar_lea.sflag [#allocation38], %s6405_s18  ;;  %s1415_s23 = int_to_ptr.vmem [resolvable:$true] %s1414_s23 }
 0x1c6   : > { %s5436_s11 = scalar_lea.hbm %s6523_s8, 16  ;;  %s5440_s14 = scalar_lea.hbm %s7430_s27, 64 }
 0x1c7   : > { %p5437_p7 = scmp.ne.s32.totalorder %s6523_s8, %s5436_s11  ;;  %p5441_p13 = scmp.lt.u32.totalorder %s6523_s8, %s7430_s27 }
 0x1c8   : > { %p5442_p12 = scmp.lt.u32.totalorder %s5440_s14, %s5436_s11  ;;  %p5444_p1 = scmp.lt.u32.totalorder %s5436_s11, %s6523_s8 }
 0x1c9   : > { %p5438_p9 = pnand %p5437_p7, %p7452_p10 }
 0x1ca   : > { %p5443_p2 = por %p5442_p12, %p5441_p13 }
 0x1cb   : > { %p5439_p11 = pneg %p5438_p9 }
 0x1cc   : > { %p5445_p0 = por %p5444_p1, %p5443_p2 }
 0x1ce   : > { %p5446_p4 = pnand %p5445_p0, %p5439_p11 }
 0x1d0   : > { %5449 = shalt.err (!%p5446_p4)
}
 0x1d1   : > { %s5450_s6 = scalar_lea.vmem %s1415_s23, 16  ;;  %s5978_s2 = smov [#allocation37]  }
 0x1d2   : > { %p5451_p3 = scmp.ne.s32.totalorder %s1415_s23, %s5450_s6  ;;  %s5454_s19 = sshll.u32 %s5978_s2, 4  ;;  %s5455_s19 = int_to_ptr.vmem [resolvable:$false] %s5454_s19 }
 0x1d3   : > { %s5456_s3 = scalar_lea.vmem %s5455_s19, 32  ;;  %p5457_p8 = scmp.lt.s32.totalorder %s1415_s23, %s5455_s19 }
 0x1d4   : > { %p5452_p5 = pnand %p5451_p3, %p7452_p10  ;;  %p5458_p7 = scmp.lt.s32.totalorder %s5456_s3, %s5450_s6 }
 0x1d6   : > { %p5453_p6 = pneg %p5452_p5  ;;  %p5459_p9 = por %p5458_p7, %p5457_p8 }
 0x1d8   : > { %p5460_p12 = pnand %p5459_p9, %p5453_p6 }
 0x1da   : > { %5463 = shalt.err (!%p5460_p12)
}
 0x1db   : > { %s7454_s11 = sld [smem:[#allocation94_spill]]  ;;  %s1441_s3 = scalar_lea.vmem [#allocation40], %s6408_s1 }
 0x1dc   : > { %4749 = dma.hbm_to_vmem [thread:$0]  (%p7452_p10), %s6523_s8, 16, %s1415_s23, %s7349_s24  }
 0x1dd   : > { %s1448_s6 = sshll.u32 %s1441_s3, 4  ;;  %s7352_s2 = scalar_lea.sflag [#allocation41], %s6405_s18  ;;  %s1449_s6 = int_to_ptr.vmem [resolvable:$true] %s1448_s6 }
 0x1e1   : > { %s6544_s14 = scalar_lea.hbm %s7454_s11, %s6452_s17  ;;  %s5468_s21 = scalar_lea.hbm %s7454_s11, 64 }
 0x1e2   : > { %s5464_s19 = scalar_lea.hbm %s6544_s14, 16  ;;  %p5469_p1 = scmp.lt.u32.totalorder %s6544_s14, %s7454_s11 }
 0x1e3   : > { %p5465_p11 = scmp.ne.s32.totalorder %s6544_s14, %s5464_s19  ;;  %p5470_p0 = scmp.lt.u32.totalorder %s5468_s21, %s5464_s19 }
 0x1e4   : > { %p5472_p3 = scmp.lt.u32.totalorder %s5464_s19, %s6544_s14 }
 0x1e5   : > { %p5466_p13 = pnand %p5465_p11, %p7452_p10  ;;  %p5471_p4 = por %p5470_p0, %p5469_p1 }
 0x1e7   : > { %p5467_p2 = pneg %p5466_p13  ;;  %p5473_p5 = por %p5472_p3, %p5471_p4 }
 0x1e9   : > { %p5474_p6 = pnand %p5473_p5, %p5467_p2 }
 0x1eb   : > { %5477 = shalt.err (!%p5474_p6)
}
 0x1ec   : > { %s5478_s8 = scalar_lea.vmem %s1449_s6, 16  ;;  %s5979_s23 = smov [#allocation40]  }
 0x1ed   : > { %p5479_p8 = scmp.ne.s32.totalorder %s1449_s6, %s5478_s8  ;;  %s5482_s3 = sshll.u32 %s5979_s23, 4  ;;  %s5483_s3 = int_to_ptr.vmem [resolvable:$false] %s5482_s3 }
 0x1ee   : > { %s5484_s24 = scalar_lea.vmem %s5483_s3, 32  ;;  %p5485_p12 = scmp.lt.s32.totalorder %s1449_s6, %s5483_s3 }
 0x1ef   : > { %p5480_p7 = pnand %p5479_p8, %p7452_p10  ;;  %p5486_p11 = scmp.lt.s32.totalorder %s5484_s24, %s5478_s8 }
 0x1f1   : > { %p5481_p9 = pneg %p5480_p7  ;;  %p5487_p13 = por %p5486_p11, %p5485_p12 }
 0x1f3   : > { %p5488_p0 = pnand %p5487_p13, %p5481_p9 }
 0x1f5   : > { %5491 = shalt.err (!%p5488_p0)
}
 0x1f6   : > { %s7455_s21 = sld [smem:[#allocation96_spill]]  ;;  %s1479_s24 = scalar_lea.vmem [#allocation43], %s6408_s1 }
 0x1f7   : > { %4751 = dma.hbm_to_vmem [thread:$0]  (%p7452_p10), %s6544_s14, 16, %s1449_s6, %s7352_s2  }
 0x1f8   : > { %s1486_s8 = sshll.u32 %s1479_s24, 4  ;;  %s7355_s23 = scalar_lea.sflag [#allocation44], %s6405_s18  ;;  %s1487_s8 = int_to_ptr.vmem [resolvable:$true] %s1486_s8 }
 0x1fc   : > { %s6565_s19 = scalar_lea.hbm %s7455_s21, %s6452_s17  ;;  %s5496_s25 = scalar_lea.hbm %s7455_s21, 64 }
 0x1fd   : > { %s5492_s3 = scalar_lea.hbm %s6565_s19, 16  ;;  %p5497_p3 = scmp.lt.u32.totalorder %s6565_s19, %s7455_s21 }
 0x1fe   : > { %p5493_p2 = scmp.ne.s32.totalorder %s6565_s19, %s5492_s3  ;;  %p5498_p5 = scmp.lt.u32.totalorder %s5496_s25, %s5492_s3 }
 0x1ff   : > { %p5500_p8 = scmp.lt.u32.totalorder %s5492_s3, %s6565_s19 }
 0x200   : > { %p5494_p1 = pnand %p5493_p2, %p7452_p10  ;;  %p5499_p6 = por %p5498_p5, %p5497_p3 }
 0x202   : > { %p5495_p4 = pneg %p5494_p1  ;;  %p5501_p7 = por %p5500_p8, %p5499_p6 }
 0x204   : > { %p5502_p9 = pnand %p5501_p7, %p5495_p4 }
 0x206   : > { %5505 = shalt.err (!%p5502_p9)
}
 0x207   : > { %s5506_s14 = scalar_lea.vmem %s1487_s8, 16  ;;  %s5980_s6 = smov [#allocation43]  }
 0x208   : > { %p5507_p12 = scmp.ne.s32.totalorder %s1487_s8, %s5506_s14  ;;  %s5510_s24 = sshll.u32 %s5980_s6, 4  ;;  %s5511_s24 = int_to_ptr.vmem [resolvable:$false] %s5510_s24 }
 0x209   : > { %s5512_s2 = scalar_lea.vmem %s5511_s24, 32  ;;  %p5513_p0 = scmp.lt.s32.totalorder %s1487_s8, %s5511_s24 }
 0x20a   : > { %p5508_p11 = pnand %p5507_p12, %p7452_p10  ;;  %p5514_p2 = scmp.lt.s32.totalorder %s5512_s2, %s5506_s14 }
 0x20c   : > { %p5509_p13 = pneg %p5508_p11  ;;  %p5515_p1 = por %p5514_p2, %p5513_p0 }
 0x20e   : > { %p5516_p3 = pnand %p5515_p1, %p5509_p13 }
 0x210   : > { %5519 = shalt.err (!%p5516_p3)
}
 0x211   : > { %s7456_s25 = sld [smem:[#allocation99_spill]]  ;;  %s1522_s2 = scalar_lea.vmem [#allocation46], %s6411_s9 }
 0x212   : > { %4753 = dma.hbm_to_vmem [thread:$0]  (%p7452_p10), %s6565_s19, 16, %s1487_s8, %s7355_s23  }
 0x213   : > { %s1529_s14 = sshll.u32 %s1522_s2, 4  ;;  %s7361_s6 = scalar_lea.sflag [#allocation47], %s6405_s18  ;;  %s6589_s14 = int_to_ptr.vmem [resolvable:$true] %s1529_s14 }
 0x217   : > { %s6586_s3 = scalar_lea.hbm %s7456_s25, %s6414_s7  ;;  %s5524_s0 = scalar_lea.hbm %s7456_s25, 1024 }
 0x218   : > { %s5520_s24 = scalar_lea.hbm %s6586_s3, 256  ;;  %p5525_p8 = scmp.lt.u32.totalorder %s6586_s3, %s7456_s25 }
 0x219   : > { %p5521_p4 = scmp.ne.s32.totalorder %s6586_s3, %s5520_s24  ;;  %p5526_p7 = scmp.lt.u32.totalorder %s5524_s0, %s5520_s24 }
 0x21a   : > { %p5528_p12 = scmp.lt.u32.totalorder %s5520_s24, %s6586_s3 }
 0x21b   : > { %p5522_p5 = pnand %p5521_p4, %p7452_p10  ;;  %p5527_p9 = por %p5526_p7, %p5525_p8 }
 0x21d   : > { %p5523_p6 = pneg %p5522_p5  ;;  %p5529_p11 = por %p5528_p12, %p5527_p9 }
 0x21f   : > { %p5530_p13 = pnand %p5529_p11, %p5523_p6 }
 0x221   : > { %5533 = shalt.err (!%p5530_p13)
}
 0x222   : > { %s5534_s19 = scalar_lea.vmem %s6589_s14, 256  ;;  %s5981_s8 = smov [#allocation46]  }
 0x223   : > { %p5535_p0 = scmp.ne.s32.totalorder %s6589_s14, %s5534_s19  ;;  %s5538_s2 = sshll.u32 %s5981_s8, 4  ;;  %s5539_s2 = int_to_ptr.vmem [resolvable:$false] %s5538_s2 }
 0x224   : > { %s5540_s23 = scalar_lea.vmem %s5539_s2, 512  ;;  %p5541_p3 = scmp.lt.s32.totalorder %s6589_s14, %s5539_s2 }
 0x225   : > { %p5536_p2 = pnand %p5535_p0, %p7452_p10  ;;  %p5542_p4 = scmp.lt.s32.totalorder %s5540_s23, %s5534_s19 }
 0x227   : > { %p5537_p1 = pneg %p5536_p2  ;;  %p5543_p5 = por %p5542_p4, %p5541_p3 }
 0x229   : > { %p5544_p8 = pnand %p5543_p5, %p5537_p1 }
 0x22b   : > { %5547 = shalt.err (!%p5544_p8)
}
 0x22c   : > { %s7457_s0 = smov 4   ;;  %s7458_s24 = smov 64  }
 0x22d   : > { %s7459_s4 = sld [smem:[#allocation101_spill]]  ;;  %s7460_s8 = sld [smem:[#allocation82_spill]] }
 0x22e   : > { %4755 = dma.hbm_to_vmem [thread:$0]  (%p7452_p10), %s6586_s3, 256, %s6589_s14, %s7361_s6, %s7458_s24, %s7458_s24, %s7457_s0  }
 0x22f   : > { %s1560_s19 = scalar_lea.vmem [#allocation49], %s6411_s9  ;;  %s7363_s12 = scalar_lea.sflag [#allocation50], %s6405_s18 }
 0x230   : > { %s1567_s2 = sshll.u32 %s1560_s19, 4  ;;  %s6619_s2 = int_to_ptr.vmem [resolvable:$true] %s1567_s2 }
 0x233   : > { %s6616_s23 = scalar_lea.hbm %s7459_s4, %s6414_s7  ;;  %s6623_s11 = scalar_lea.hbm %s7460_s8, %s6452_s17 }
 0x234   : > { %s5548_s13 = scalar_lea.hbm %s6616_s23, 256  ;;  %s5552_s21 = scalar_lea.hbm %s7459_s4, 1024 }
 0x235   : > { %p5549_p6 = scmp.ne.s32.totalorder %s6616_s23, %s5548_s13  ;;  %p5553_p12 = scmp.lt.u32.totalorder %s6616_s23, %s7459_s4 }
 0x236   : > { %p5554_p11 = scmp.lt.u32.totalorder %s5552_s21, %s5548_s13  ;;  %p5556_p0 = scmp.lt.u32.totalorder %s5548_s13, %s6616_s23 }
 0x237   : > { %p5550_p7 = pnand %p5549_p6, %p7452_p10 }
 0x238   : > { %p5555_p13 = por %p5554_p11, %p5553_p12 }
 0x239   : > { %p5551_p9 = pneg %p5550_p7 }
 0x23a   : > { %p5557_p2 = por %p5556_p0, %p5555_p13 }
 0x23c   : > { %p5558_p1 = pnand %p5557_p2, %p5551_p9 }
 0x23e   : > { %5561 = shalt.err (!%p5558_p1)
}
 0x23f   : > { %s5562_s3 = scalar_lea.vmem %s6619_s2, 256  ;;  %s5982_s14 = smov [#allocation49]  }
 0x240   : > { %p5563_p3 = scmp.ne.s32.totalorder %s6619_s2, %s5562_s3  ;;  %s5566_s19 = sshll.u32 %s5982_s14, 4  ;;  %s5567_s19 = int_to_ptr.vmem [resolvable:$false] %s5566_s19 }
 0x241   : > { %s5568_s6 = scalar_lea.vmem %s5567_s19, 512  ;;  %p5569_p8 = scmp.lt.s32.totalorder %s6619_s2, %s5567_s19 }
 0x242   : > { %p5564_p4 = pnand %p5563_p3, %p7452_p10  ;;  %p5570_p6 = scmp.lt.s32.totalorder %s5568_s6, %s5562_s3 }
 0x244   : > { %p5565_p5 = pneg %p5564_p4  ;;  %p5571_p7 = por %p5570_p6, %p5569_p8 }
 0x246   : > { %p5572_p12 = pnand %p5571_p7, %p5565_p5 }
 0x248   : > { %5575 = shalt.err (!%p5572_p12)
}
 0x249   : > { %s7461_s13 = sld [smem:[#allocation84_spill]]  ;;  %s1260_s21 = scalar_lea.vmem [#allocation27], %s6408_s1 }
 0x24a   : > { %4757 = dma.hbm_to_vmem [thread:$0]  (%p7452_p10), %s6616_s23, 256, %s6619_s2, %s7363_s12, %s7458_s24, %s7458_s24, %s7457_s0  }
 0x24b   : > { %s1267_s6 = sshll.u32 %s1260_s21, 4  ;;  %s5576_s14 = scalar_lea.hbm %s6623_s11, 16  ;;  %s1268_s6 = int_to_ptr.vmem [resolvable:$true] %s1267_s6 }
 0x24c   : > { %p5577_p9 = scmp.ne.s32.totalorder %s6623_s11, %s5576_s14  ;;  %s5580_s19 = scalar_lea.hbm %s7460_s8, 64 }
 0x24d   : > { %p5581_p0 = scmp.lt.u32.totalorder %s6623_s11, %s7460_s8  ;;  %p5582_p2 = scmp.lt.u32.totalorder %s5580_s19, %s5576_s14 }
 0x24e   : > { %p5578_p11 = pnand %p5577_p9, %p7452_p10  ;;  %p5584_p3 = scmp.lt.u32.totalorder %s5576_s14, %s6623_s11 }
 0x24f   : > { %s6651_s3 = scalar_lea.hbm %s7461_s13, %s6452_s17  ;;  %p5583_p1 = por %p5582_p2, %p5581_p0 }
 0x250   : > { %p5579_p13 = pneg %p5578_p11 }
 0x251   : > { %p5585_p4 = por %p5584_p3, %p5583_p1 }
 0x253   : > { %p5586_p5 = pnand %p5585_p4, %p5579_p13 }
 0x255   : > { %5589 = shalt.err (!%p5586_p5)
}
 0x256   : > { %s5590_s4 = scalar_lea.vmem %s1268_s6, 16  ;;  %s5983_s23 = smov [#allocation27]  }
 0x257   : > { %p5591_p8 = scmp.ne.s32.totalorder %s1268_s6, %s5590_s4  ;;  %s5594_s2 = sshll.u32 %s5983_s23, 4  ;;  %s5595_s2 = int_to_ptr.vmem [resolvable:$false] %s5594_s2 }
 0x258   : > { %s5596_s21 = scalar_lea.vmem %s5595_s2, 32  ;;  %p5597_p12 = scmp.lt.s32.totalorder %s1268_s6, %s5595_s2 }
 0x259   : > { %p5592_p6 = pnand %p5591_p8, %p7452_p10  ;;  %p5598_p9 = scmp.lt.s32.totalorder %s5596_s21, %s5590_s4 }
 0x25b   : > { %p5593_p7 = pneg %p5592_p6  ;;  %p5599_p11 = por %p5598_p9, %p5597_p12 }
 0x25d   : > { %p5600_p0 = pnand %p5599_p11, %p5593_p7 }
 0x25f   : > { %5603 = shalt.err (!%p5600_p0)
}
 0x260   : > { %s7462_s14 = scalar_lea.sflag [#allocation26], %s6405_s18  ;;  %s7463_s19 = sld [smem:[#allocation88_spill]] }
 0x261   : > { %4742 = dma.hbm_to_vmem [thread:$0]  (%p7452_p10), %s6623_s11, 16, %s1268_s6, %s7462_s14  }
 0x262   : > { %s1298_s4 = scalar_lea.vmem [#allocation30], %s6408_s1  ;;  %s5604_s21 = scalar_lea.hbm %s6651_s3, 16 }
 0x263   : > { %s1305_s23 = sshll.u32 %s1298_s4, 4  ;;  %p5605_p13 = scmp.ne.s32.totalorder %s6651_s3, %s5604_s21  ;;  %s1306_s23 = int_to_ptr.vmem [resolvable:$true] %s1305_s23 }
 0x264   : > { %s5608_s8 = scalar_lea.hbm %s7461_s13, 64  ;;  %p5609_p3 = scmp.lt.u32.totalorder %s6651_s3, %s7461_s13 }
 0x265   : > { %p5606_p2 = pnand %p5605_p13, %p7452_p10  ;;  %p5610_p4 = scmp.lt.u32.totalorder %s5608_s8, %s5604_s21 }
 0x266   : > { %s7464_s12 = smov %s7463_s19  ;;  %s6671_s2 = scalar_lea.hbm %s7463_s19, %s6452_s17 }
 0x267   : > { %p5607_p1 = pneg %p5606_p2  ;;  %p5611_p5 = por %p5610_p4, %p5609_p3 }
 0x268   : > { %p5612_p8 = scmp.lt.u32.totalorder %s5604_s21, %s6651_s3 }
 0x26a   : > { %p5613_p6 = por %p5612_p8, %p5611_p5 }
 0x26c   : > { %p5614_p7 = pnand %p5613_p6, %p5607_p1 }
 0x26e   : > { %5617 = shalt.err (!%p5614_p7)
}
 0x26f   : > { %s5618_s25 = scalar_lea.vmem %s1306_s23, 16  ;;  %s5984_s11 = smov [#allocation30]  }
 0x270   : > { %p5619_p12 = scmp.ne.s32.totalorder %s1306_s23, %s5618_s25  ;;  %s5622_s6 = sshll.u32 %s5984_s11, 4  ;;  %s5623_s6 = int_to_ptr.vmem [resolvable:$false] %s5622_s6 }
 0x271   : > { %s5624_s14 = scalar_lea.vmem %s5623_s6, 32  ;;  %p5625_p0 = scmp.lt.s32.totalorder %s1306_s23, %s5623_s6 }
 0x272   : > { %p5620_p9 = pnand %p5619_p12, %p7452_p10  ;;  %p5626_p13 = scmp.lt.s32.totalorder %s5624_s14, %s5618_s25 }
 0x274   : > { %p5621_p11 = pneg %p5620_p9  ;;  %p5627_p2 = por %p5626_p13, %p5625_p0 }
 0x276   : > { %p5628_p3 = pnand %p5627_p2, %p5621_p11 }
 0x278   : > { %5631 = shalt.err (!%p5628_p3)
}
 0x279   : > { %s7465_s8 = scalar_lea.sflag [#allocation29], %s6405_s18  ;;  %s7466_s19 = sld [smem:[#allocation90_spill]] }
 0x27a   : > { %4744 = dma.hbm_to_vmem [thread:$0]  (%p7452_p10), %s6651_s3, 16, %s1306_s23, %s7465_s8  }
 0x27b   : > { %s1348_s25 = scalar_lea.vmem [#allocation33], %s6408_s1  ;;  %s5632_s6 = scalar_lea.hbm %s6671_s2, 16 }
 0x27c   : > { %s1355_s21 = sshll.u32 %s1348_s25, 4  ;;  %p5633_p1 = scmp.ne.s32.totalorder %s6671_s2, %s5632_s6  ;;  %s1356_s21 = int_to_ptr.vmem [resolvable:$true] %s1355_s21 }
 0x27d   : > { %s5636_s14 = scalar_lea.hbm %s7464_s12, 64  ;;  %p5637_p8 = scmp.lt.u32.totalorder %s6671_s2, %s7464_s12 }
 0x27e   : > { %p5634_p4 = pnand %p5633_p1, %p7452_p10  ;;  %p5638_p6 = scmp.lt.u32.totalorder %s5636_s14, %s5632_s6 }
 0x27f   : > { %s7467_s4 = smov %s7466_s19  ;;  %s6691_s11 = scalar_lea.hbm %s7466_s19, %s6452_s17 }
 0x280   : > { %p5635_p5 = pneg %p5634_p4  ;;  %p5639_p7 = por %p5638_p6, %p5637_p8 }
 0x281   : > { %p5640_p12 = scmp.lt.u32.totalorder %s5632_s6, %s6671_s2 }
 0x283   : > { %p5641_p9 = por %p5640_p12, %p5639_p7 }
 0x285   : > { %p5642_p11 = pnand %p5641_p9, %p5635_p5 }
 0x287   : > { %5645 = shalt.err (!%p5642_p11)
}
 0x288   : > { %s5646_s13 = scalar_lea.vmem %s1356_s21, 16  ;;  %s5985_s3 = smov [#allocation33]  }
 0x289   : > { %p5647_p0 = scmp.ne.s32.totalorder %s1356_s21, %s5646_s13  ;;  %s5650_s23 = sshll.u32 %s5985_s3, 4  ;;  %s5651_s23 = int_to_ptr.vmem [resolvable:$false] %s5650_s23 }
 0x28a   : > { %s5652_s8 = scalar_lea.vmem %s5651_s23, 32  ;;  %p5653_p3 = scmp.lt.s32.totalorder %s1356_s21, %s5651_s23 }
 0x28b   : > { %p5648_p13 = pnand %p5647_p0, %p7452_p10  ;;  %p5654_p1 = scmp.lt.s32.totalorder %s5652_s8, %s5646_s13 }
 0x28d   : > { %p5649_p2 = pneg %p5648_p13  ;;  %p5655_p4 = por %p5654_p1, %p5653_p3 }
 0x28f   : > { %p5656_p6 = pnand %p5655_p4, %p5649_p2 }
 0x291   : > { %5659 = shalt.err (!%p5656_p6)
}
 0x292   : > { %s7468_s19 = scalar_lea.sflag [#allocation32], %s6405_s18  ;;  %s7469_s25 = sld [smem:[#allocation93_spill]] }
 0x293   : > { %4746 = dma.hbm_to_vmem [thread:$0]  (%p7452_p10), %s6671_s2, 16, %s1356_s21, %s7468_s19  }
 0x294   : > { %s1382_s13 = scalar_lea.vmem [#allocation36], %s6408_s1  ;;  %s5660_s3 = scalar_lea.hbm %s6691_s11, 16 }
 0x295   : > { %s1389_s6 = sshll.u32 %s1382_s13, 4  ;;  %p5661_p5 = scmp.ne.s32.totalorder %s6691_s11, %s5660_s3  ;;  %s1390_s6 = int_to_ptr.vmem [resolvable:$true] %s1389_s6 }
 0x296   : > { %s5664_s23 = scalar_lea.hbm %s7467_s4, 64  ;;  %p5665_p12 = scmp.lt.u32.totalorder %s6691_s11, %s7467_s4 }
 0x297   : > { %p5662_p8 = pnand %p5661_p5, %p7452_p10  ;;  %p5666_p9 = scmp.lt.u32.totalorder %s5664_s23, %s5660_s3 }
 0x298   : > { %s6711_s14 = scalar_lea.hbm %s7469_s25, %s6452_s17  ;;  %p5668_p0 = scmp.lt.u32.totalorder %s5660_s3, %s6691_s11 }
 0x299   : > { %p5663_p7 = pneg %p5662_p8  ;;  %p5667_p11 = por %p5666_p9, %p5665_p12 }
 0x29b   : > { %p5669_p13 = por %p5668_p0, %p5667_p11 }
 0x29d   : > { %p5670_p2 = pnand %p5669_p13, %p5663_p7 }
 0x29f   : > { %5673 = shalt.err (!%p5670_p2)
}
 0x2a0   : > { %s5674_s8 = scalar_lea.vmem %s1390_s6, 16  ;;  %s5986_s2 = smov [#allocation36]  }
 0x2a1   : > { %p5675_p3 = scmp.ne.s32.totalorder %s1390_s6, %s5674_s8  ;;  %s5678_s21 = sshll.u32 %s5986_s2, 4  ;;  %s5679_s21 = int_to_ptr.vmem [resolvable:$false] %s5678_s21 }
 0x2a2   : > { %s5680_s19 = scalar_lea.vmem %s5679_s21, 32  ;;  %p5681_p6 = scmp.lt.s32.totalorder %s1390_s6, %s5679_s21 }
 0x2a3   : > { %p5676_p1 = pnand %p5675_p3, %p7452_p10  ;;  %p5682_p5 = scmp.lt.s32.totalorder %s5680_s19, %s5674_s8 }
 0x2a5   : > { %p5677_p4 = pneg %p5676_p1  ;;  %p5683_p8 = por %p5682_p5, %p5681_p6 }
 0x2a7   : > { %p5684_p9 = pnand %p5683_p8, %p5677_p4 }
 0x2a9   : > { %5687 = shalt.err (!%p5684_p9)
}
 0x2aa   : > { %s7470_s13 = scalar_lea.sflag [#allocation35], %s6405_s18  ;;  %s7471_s3 = sld [smem:[#allocation95_spill]] }
 0x2ab   : > { %4748 = dma.hbm_to_vmem [thread:$0]  (%p7452_p10), %s6691_s11, 16, %s1390_s6, %s7470_s13  }
 0x2ac   : > { %s1424_s23 = scalar_lea.vmem [#allocation39], %s6408_s1  ;;  %s5688_s21 = scalar_lea.hbm %s6711_s14, 16 }
 0x2ad   : > { %s1431_s8 = sshll.u32 %s1424_s23, 4  ;;  %p5689_p7 = scmp.ne.s32.totalorder %s6711_s14, %s5688_s21  ;;  %s1432_s8 = int_to_ptr.vmem [resolvable:$true] %s1431_s8 }
 0x2ae   : > { %s5692_s19 = scalar_lea.hbm %s7469_s25, 64  ;;  %p5693_p0 = scmp.lt.u32.totalorder %s6711_s14, %s7469_s25 }
 0x2af   : > { %p5690_p12 = pnand %p5689_p7, %p7452_p10  ;;  %p5694_p13 = scmp.lt.u32.totalorder %s5692_s19, %s5688_s21 }
 0x2b0   : > { %s6731_s2 = scalar_lea.hbm %s7471_s3, %s6414_s7  ;;  %p5696_p3 = scmp.lt.u32.totalorder %s5688_s21, %s6711_s14 }
 0x2b1   : > { %p5691_p11 = pneg %p5690_p12  ;;  %p5695_p2 = por %p5694_p13, %p5693_p0 }
 0x2b3   : > { %p5697_p1 = por %p5696_p3, %p5695_p2 }
 0x2b5   : > { %p5698_p4 = pnand %p5697_p1, %p5691_p11 }
 0x2b7   : > { %5701 = shalt.err (!%p5698_p4)
}
 0x2b8   : > { %s5702_s4 = scalar_lea.vmem %s1432_s8, 16  ;;  %s5987_s7 = smov [#allocation39]  }
 0x2b9   : > { %p5703_p6 = scmp.ne.s32.totalorder %s1432_s8, %s5702_s4  ;;  %s5706_s11 = sshll.u32 %s5987_s7, 4  ;;  %s5707_s11 = int_to_ptr.vmem [resolvable:$false] %s5706_s11 }
 0x2ba   : > { %s5708_s6 = scalar_lea.vmem %s5707_s11, 32  ;;  %p5709_p9 = scmp.lt.s32.totalorder %s1432_s8, %s5707_s11 }
 0x2bb   : > { %p5704_p5 = pnand %p5703_p6, %p7452_p10  ;;  %p5710_p7 = scmp.lt.s32.totalorder %s5708_s6, %s5702_s4 }
 0x2bd   : > { %p5705_p8 = pneg %p5704_p5  ;;  %p5711_p12 = por %p5710_p7, %p5709_p9 }
 0x2bf   : > { %p5712_p0 = pnand %p5711_p12, %p5705_p8 }
 0x2c1   : > { %5715 = shalt.err (!%p5712_p0)
}
 0x2c2   : > { %s7472_s13 = scalar_lea.sflag [#allocation38], %s6405_s18  ;;  %s7473_s23 = sld [smem:[#allocation98_spill]] }
 0x2c3   : > { %4750 = dma.hbm_to_vmem [thread:$0]  (%p7452_p10), %s6711_s14, 16, %s1432_s8, %s7472_s13  }
 0x2c4   : > { %s1459_s4 = scalar_lea.vmem [#allocation42], %s6411_s9  ;;  %s5716_s7 = scalar_lea.hbm %s6731_s2, 256 }
 0x2c5   : > { %s1466_s21 = sshll.u32 %s1459_s4, 4  ;;  %p5717_p11 = scmp.ne.s32.totalorder %s6731_s2, %s5716_s7  ;;  %s6749_s21 = int_to_ptr.vmem [resolvable:$true] %s1466_s21 }
 0x2c6   : > { %s5720_s11 = scalar_lea.hbm %s7471_s3, 1024  ;;  %p5721_p3 = scmp.lt.u32.totalorder %s6731_s2, %s7471_s3 }
 0x2c7   : > { %p5718_p13 = pnand %p5717_p11, %p7452_p10  ;;  %p5722_p1 = scmp.lt.u32.totalorder %s5720_s11, %s5716_s7 }
 0x2c8   : > { %s6753_s19 = scalar_lea.hbm %s7473_s23, %s6452_s17  ;;  %p5724_p6 = scmp.lt.u32.totalorder %s5716_s7, %s6731_s2 }
 0x2c9   : > { %p5719_p2 = pneg %p5718_p13  ;;  %p5723_p4 = por %p5722_p1, %p5721_p3 }
 0x2cb   : > { %p5725_p5 = por %p5724_p6, %p5723_p4 }
 0x2cd   : > { %p5726_p8 = pnand %p5725_p5, %p5719_p2 }
 0x2cf   : > { %5729 = shalt.err (!%p5726_p8)
}
 0x2d0   : > { %s5730_s9 = scalar_lea.vmem %s6749_s21, 256  ;;  %s5988_s14 = smov [#allocation42]  }
 0x2d1   : > { %p5731_p9 = scmp.ne.s32.totalorder %s6749_s21, %s5730_s9  ;;  %s5734_s8 = sshll.u32 %s5988_s14, 4  ;;  %s5735_s8 = int_to_ptr.vmem [resolvable:$false] %s5734_s8 }
 0x2d2   : > { %s5736_s6 = scalar_lea.vmem %s5735_s8, 512  ;;  %p5737_p0 = scmp.lt.s32.totalorder %s6749_s21, %s5735_s8 }
 0x2d3   : > { %p5732_p7 = pnand %p5731_p9, %p7452_p10  ;;  %p5738_p11 = scmp.lt.s32.totalorder %s5736_s6, %s5730_s9 }
 0x2d5   : > { %p5733_p12 = pneg %p5732_p7  ;;  %p5739_p13 = por %p5738_p11, %p5737_p0 }
 0x2d7   : > { %p5740_p3 = pnand %p5739_p13, %p5733_p12 }
 0x2d9   : > { %5743 = shalt.err (!%p5740_p3)
}
 0x2da   : > { %s7474_s13 = scalar_lea.sflag [#allocation41], %s6405_s18  ;;  %s7475_s4 = sld [smem:[#allocation100_spill]] }
 0x2db   : > { %4752 = dma.hbm_to_vmem [thread:$0]  (%p7452_p10), %s6731_s2, 256, %s6749_s21, %s7474_s13, %s7458_s24, %s7458_s24, %s7457_s0  }
 0x2dc   : > { %s1504_s7 = scalar_lea.vmem [#allocation45], %s6408_s1  ;;  %s5744_s14 = scalar_lea.hbm %s6753_s19, 16 }
 0x2dd   : > { %s1511_s11 = sshll.u32 %s1504_s7, 4  ;;  %p5745_p2 = scmp.ne.s32.totalorder %s6753_s19, %s5744_s14  ;;  %s1512_s11 = int_to_ptr.vmem [resolvable:$true] %s1511_s11 }
 0x2de   : > { %s5748_s8 = scalar_lea.hbm %s7473_s23, 64  ;;  %p5749_p6 = scmp.lt.u32.totalorder %s6753_s19, %s7473_s23 }
 0x2df   : > { %p5746_p1 = pnand %p5745_p2, %p7452_p10  ;;  %p5750_p5 = scmp.lt.u32.totalorder %s5748_s8, %s5744_s14 }
 0x2e0   : > { %s6780_s9 = scalar_lea.hbm %s7475_s4, %s6452_s17  ;;  %p5752_p9 = scmp.lt.u32.totalorder %s5744_s14, %s6753_s19 }
 0x2e1   : > { %p5747_p4 = pneg %p5746_p1  ;;  %p5751_p8 = por %p5750_p5, %p5749_p6 }
 0x2e3   : > { %p5753_p7 = por %p5752_p9, %p5751_p8 }
 0x2e5   : > { %p5754_p12 = pnand %p5753_p7, %p5747_p4 }
 0x2e7   : > { %5757 = shalt.err (!%p5754_p12)
}
 0x2e8   : > { %s5758_s6 = scalar_lea.vmem %s1512_s11, 16  ;;  %s5989_s0 = smov [#allocation45]  }
 0x2e9   : > { %p5759_p0 = scmp.ne.s32.totalorder %s1512_s11, %s5758_s6  ;;  %s5762_s24 = sshll.u32 %s5989_s0, 4  ;;  %s5763_s24 = int_to_ptr.vmem [resolvable:$false] %s5762_s24 }
 0x2ea   : > { %s5764_s2 = scalar_lea.vmem %s5763_s24, 32  ;;  %p5765_p3 = scmp.lt.s32.totalorder %s1512_s11, %s5763_s24 }
 0x2eb   : > { %p5760_p11 = pnand %p5759_p0, %p7452_p10  ;;  %p5766_p2 = scmp.lt.s32.totalorder %s5764_s2, %s5758_s6 }
 0x2ed   : > { %p5761_p13 = pneg %p5760_p11  ;;  %p5767_p1 = por %p5766_p2, %p5765_p3 }
 0x2ef   : > { %p5768_p5 = pnand %p5767_p1, %p5761_p13 }
 0x2f1   : > { %5771 = shalt.err (!%p5768_p5)
}
 0x2f2   : > { %s7476_s21 = scalar_lea.sflag [#allocation44], %s6405_s18  ;;  %s7477_s13 = sld [smem:[#allocation102_spill]] }
 0x2f3   : > { %4754 = dma.hbm_to_vmem [thread:$0]  (%p7452_p10), %s6753_s19, 16, %s1512_s11, %s7476_s21  }
 0x2f4   : > { %s1542_s7 = scalar_lea.vmem [#allocation48], %s6408_s1  ;;  %s5772_s6 = scalar_lea.hbm %s6780_s9, 16 }
 0x2f5   : > { %s1549_s14 = sshll.u32 %s1542_s7, 4  ;;  %p5773_p4 = scmp.ne.s32.totalorder %s6780_s9, %s5772_s6  ;;  %s1550_s14 = int_to_ptr.vmem [resolvable:$true] %s1549_s14 }
 0x2f6   : > { %s5776_s0 = scalar_lea.hbm %s7475_s4, 64  ;;  %p5777_p9 = scmp.lt.u32.totalorder %s6780_s9, %s7475_s4 }
 0x2f7   : > { %p5774_p6 = pnand %p5773_p4, %p7452_p10  ;;  %p5778_p7 = scmp.lt.u32.totalorder %s5776_s0, %s5772_s6 }
 0x2f8   : > { %s6800_s8 = scalar_lea.hbm %s7477_s13, %s6452_s17  ;;  %p5780_p0 = scmp.lt.u32.totalorder %s5772_s6, %s6780_s9 }
 0x2f9   : > { %p5775_p8 = pneg %p5774_p6  ;;  %p5779_p12 = por %p5778_p7, %p5777_p9 }
 0x2fb   : > { %p5781_p11 = por %p5780_p0, %p5779_p12 }
 0x2fd   : > { %p5782_p13 = pnand %p5781_p11, %p5775_p8 }
 0x2ff   : > { %5785 = shalt.err (!%p5782_p13)
}
 0x300   : > { %s5786_s24 = scalar_lea.vmem %s1550_s14, 16  ;;  %s5990_s17 = smov [#allocation48]  }
 0x301   : > { %p5787_p3 = scmp.ne.s32.totalorder %s1550_s14, %s5786_s24  ;;  %s5790_s19 = sshll.u32 %s5990_s17, 4  ;;  %s5791_s19 = int_to_ptr.vmem [resolvable:$false] %s5790_s19 }
 0x302   : > { %s5792_s11 = scalar_lea.vmem %s5791_s19, 32  ;;  %p5793_p5 = scmp.lt.s32.totalorder %s1550_s14, %s5791_s19 }
 0x303   : > { %p5788_p2 = pnand %p5787_p3, %p7452_p10  ;;  %p5794_p4 = scmp.lt.s32.totalorder %s5792_s11, %s5786_s24 }
 0x305   : > { %p5789_p1 = pneg %p5788_p2  ;;  %p5795_p6 = por %p5794_p4, %p5793_p5 }
 0x307   : > { %p5796_p7 = pnand %p5795_p6, %p5789_p1 }
 0x309   : > { %5799 = shalt.err (!%p5796_p7)
}
 0x30a   : > { %s7478_s2 = scalar_lea.sflag [#allocation47], %s6405_s18  ;;  %s1580_s21 = scalar_lea.vmem [#allocation51], %s6408_s1 }
 0x30b   : > { %4756 = dma.hbm_to_vmem [thread:$0]  (%p7452_p10), %s6780_s9, 16, %s1550_s14, %s7478_s2  }
 0x30c   : > { %s1587_s7 = sshll.u32 %s1580_s21, 4  ;;  %s5800_s6 = scalar_lea.hbm %s6800_s8, 16  ;;  %s1588_s7 = int_to_ptr.vmem [resolvable:$true] %s1587_s7 }
 0x30d   : > { %p5801_p8 = scmp.ne.s32.totalorder %s6800_s8, %s5800_s6  ;;  %s5804_s0 = scalar_lea.hbm %s7477_s13, 64 }
 0x30e   : > { %p5805_p0 = scmp.lt.u32.totalorder %s6800_s8, %s7477_s13  ;;  %p5806_p11 = scmp.lt.u32.totalorder %s5804_s0, %s5800_s6 }
 0x30f   : > { %p5802_p9 = pnand %p5801_p8, %p7452_p10  ;;  %p5808_p3 = scmp.lt.u32.totalorder %s5800_s6, %s6800_s8 }
 0x310   : > { %p5807_p13 = por %p5806_p11, %p5805_p0 }
 0x311   : > { %p5803_p12 = pneg %p5802_p9 }
 0x312   : > { %p5809_p2 = por %p5808_p3, %p5807_p13 }
 0x314   : > { %p5810_p1 = pnand %p5809_p2, %p5803_p12 }
 0x316   : > { %5813 = shalt.err (!%p5810_p1)
}
 0x317   : > { %s5814_s24 = scalar_lea.vmem %s1588_s7, 16  ;;  %s5991_s1 = smov [#allocation51]  }
 0x318   : > { %p5815_p5 = scmp.ne.s32.totalorder %s1588_s7, %s5814_s24  ;;  %s5818_s9 = sshll.u32 %s5991_s1, 4  ;;  %s5819_s9 = int_to_ptr.vmem [resolvable:$false] %s5818_s9 }
 0x319   : > { %s5820_s14 = scalar_lea.vmem %s5819_s9, 32  ;;  %p5821_p7 = scmp.lt.s32.totalorder %s1588_s7, %s5819_s9 }
 0x31a   : > { %p5816_p4 = pnand %p5815_p5, %p7452_p10  ;;  %p5822_p8 = scmp.lt.s32.totalorder %s5820_s14, %s5814_s24 }
 0x31c   : > { %p5817_p6 = pneg %p5816_p4  ;;  %p5823_p9 = por %p5822_p8, %p5821_p7 }
 0x31e   : > { %p5824_p0 = pnand %p5823_p9, %p5817_p6 }
 0x320   : > { %5827 = shalt.err (!%p5824_p0)
}
 0x321   : > { %s7479_s17 = scalar_lea.sflag [#allocation50], %s6405_s18 }
 0x322   : > { %4758 = dma.hbm_to_vmem [thread:$0]  (%p7452_p10), %s6800_s8, 16, %s1588_s7, %s7479_s17  }
 0x323 PF: > { %p7480_p12 = scmp.ne.s32.totalorder %s7449_s15, 0 }
 0x325   : > { %1596 = sbr.rel (%p7480_p12) target bundleno = 4527 (0x11af), region = 176 }
 0x32c   : > { %p7481_p11 = scmp.eq.s32.totalorder %s6238_s28, 0 }
 0x32e   : > { %5847 = dma.done.wait (%p7481_p11), [#allocation15], 128   ;;  %p7482_p13 = pmov %p7481_p11 }
 0x32f   : > { %p7483_p3 = pmov %p7481_p11 }
 0x330   : > { %5849 = vsyncadd (%p7482_p13), [#allocation15], 4294967168 }
 0x331   : > { %5851 = dma.done.wait (%p7483_p3), [#allocation17], 272   ;;  %p7484_p2 = pmov %p7483_p3 }
 0x333   : > { %5853 = vsyncadd (%p7484_p2), [#allocation17], 4294967024  ;;  %p7485_p1 = pmov %p7484_p2 }
 0x335   : > { %5855 = dma.done.wait (%p7485_p1), [#allocation20], 272   ;;  %p7486_p10 = pmov %p7485_p1 }
 0x336   : > { %p7487_p5 = pmov %p7485_p1 }
 0x337   : > { %5857 = vsyncadd (%p7486_p10), [#allocation20], 4294967024 }
 0x338   : > { %5859 = dma.done.wait (%p7487_p5), [#allocation23], 32   ;;  %p7488_p4 = pmov %p7485_p1 }
 0x339   : > { %s6852_s20 = sand.u32 1, %s6238_s28   ;;  %s6855_s15 = sand.u32 1, %s5908_s22  }
 0x33a   : > { %5861 = vsyncadd (%p7488_p4), [#allocation23], 4294967264  ;;  %s6858_s18 = sshll.u32 %s6855_s15, 4  ;;  %s1627_s8 = scalar_lea.sflag [#allocation26], %s6852_s20 }
 0x33b   : > { %7489 = sst [smem:[#allocation114_spill]] %s6858_s18  ;;  %s1630_s19 = scalar_lea.vmem [#allocation25], %s6858_s18 }
 0x33c   : > { %p7490_p6 = scmp.ne.s32.totalorder %s7448_s5, 0 }
 0x33e   : > { %5863 = dma.done.wait (%p7490_p6), %s1627_s8, 272  }
 0x33f   : > { %5865 = vsyncadd (%p7490_p6), %s1627_s8, 4294967024  ;;  %s1644_s2 = scalar_lea.sflag [#allocation29], %s6852_s20  ;;  %s1647_s21 = scalar_lea.vmem [#allocation28], %s6858_s18 }
 0x340   : > { %5867 = dma.done.wait (%p7490_p6), %s1644_s2, 272  }
 0x341   : > { %5869 = vsyncadd (%p7490_p6), %s1644_s2, 4294967024  ;;  %s1661_s6 = scalar_lea.sflag [#allocation32], %s6852_s20 }
 0x342   : > { %5871 = dma.done.wait (%p7490_p6), %s1661_s6, 32  }
 0x343   : > { %5873 = vsyncadd (%p7490_p6), %s1661_s6, 4294967264  ;;  %s1677_s1 = scalar_lea.sflag [#allocation35], %s6852_s20 }
 0x344   : > { %5875 = dma.done.wait (%p7490_p6), %s1677_s1, 32  }
 0x345   : > { %5877 = vsyncadd (%p7490_p6), %s1677_s1, 4294967264  ;;  %s1693_s17 = scalar_lea.sflag [#allocation38], %s6852_s20 }
 0x346   : > { %5879 = dma.done.wait (%p7490_p6), %s1693_s17, 32  }
 0x347   : > { %5881 = vsyncadd (%p7490_p6), %s1693_s17, 4294967264  ;;  %s1709_s6 = scalar_lea.sflag [#allocation41], %s6852_s20 }
 0x348   : > { %5883 = dma.done.wait (%p7490_p6), %s1709_s6, 272  }
 0x349   : > { %5885 = vsyncadd (%p7490_p6), %s1709_s6, 4294967024  ;;  %s1726_s8 = scalar_lea.sflag [#allocation44], %s6852_s20 }
 0x34a   : > { %5887 = dma.done.wait (%p7490_p6), %s1726_s8, 32  }
 0x34b   : > { %5889 = vsyncadd (%p7490_p6), %s1726_s8, 4294967264  ;;  %s1742_s24 = scalar_lea.sflag [#allocation47], %s6852_s20 }
 0x34c   : > { %5891 = dma.done.wait (%p7490_p6), %s1742_s24, 272  }
 0x34d   : > { %5893 = vsyncadd (%p7490_p6), %s1742_s24, 4294967024  ;;  %s1759_s14 = scalar_lea.sflag [#allocation50], %s6852_s20 }
 0x34e   : > { %5895 = dma.done.wait (%p7490_p6), %s1759_s14, 272  }
 0x34f   : > { %5897 = vsyncadd (%p7490_p6), %s1759_s14, 4294967024  ;;  %p7491_p7 = pmov %p7485_p1 }
 0x350   : > { %p7492_p8 = pmov %p7485_p1 }
 0x351   : > { %5899 = dma.done.wait (%p7491_p7), [#allocation53], 272  }
 0x352   : > { %5901 = vsyncadd (%p7492_p8), [#allocation53], 4294967024  ;;  %s7493_s24 = sld [smem:[#allocation97_spill]]  ;;  %s7494_s6 = sld [smem:[#allocation85_spill]] }
 0x353   : > { %s7495_s20 = sld [smem:[#allocation87_spill]]  ;;  %s7496_s1 = sld [smem:[#allocation91_spill]] }
 0x354   : > { %p1960_p9 = scmp.lt.s32.totalorder %s6238_s28, 3  ;;  %p7500_p0 = scmp.ne.s32.totalorder %s6238_s28, 0 }
 0x355   : > { %v4945_v1 = vld [vmem:[#allocation14] sm:$0xff] (!%p7500_p0)   ;;  %s7501_s7 = sld [smem:[#allocation70_spill]] (!%p7500_p0)  ;;  %s7502_s11 = sld [smem:[#allocation71_spill]] (!%p7500_p0)  ;;  %v5992_v2 = vmov (!%p7500_p0), 0.0   ;;  %vm5993_vm0 = vmmov (!%p7500_p0), 0   ;;  %vm2010_vm1 = vcmask (!%p7500_p0), 130048  }
 0x356   : > { %s1961_s17 = scalar_select %p1960_p9, %s6238_s28, 3 }
 0x357   : > { %1984 = sbr.rel (%p7500_p0) target bundleno = 1365 (0x555), region = 288  ;;  %4568 = vmatprep.subr.bf16.mxu0 (!%p7500_p0), %v5992_v2  ;;  %4574 = vmatprep.subr.bf16.mxu1 (!%p7500_p0), %v5992_v2  ;;  %v5994_v6 = vmov (!%p7500_p0), 0   ;;  %v4946_v9 = vld [vmem:[#allocation18] sm:$0xff] (!%p7500_p0)   ;;  %v4947_v10 = vld [vmem:[#allocation18 + $0x8] sm:$0xff] (!%p7500_p0)   ;;  %v4379_v19 = vld [vmem:[#allocation16] ss:$0 sm:$0xff] (!%p7500_p0) }
 0x358   : > { %s4722_s5 = smul.u32 48, %s1961_s17  ;;  %s4508_s14 = sshll.u32 %s1961_s17, 4  ;;  %4569 = vmatpush3.bf16.msra.mxu0 (!%p7500_p0), %v4945_v1  ;;  %4570 = vmatprep.mubr.msk.bf16.mxu0 (!%p7500_p0), %vm5993_vm0, %v5992_v2  ;;  %vm2085_vm3 = vcmask (!%p7500_p0), 261120   ;;  %v4948_v42 = vld [vmem:[#allocation21] sm:$0xff] (!%p7500_p0)   ;;  %v4949_v44 = vld [vmem:[#allocation21 + $0x8] sm:$0xff] (!%p7500_p0)  }
 0x359   : > { %s6932_s2 = scalar_lea.vmem %s7493_s24, %s4508_s14  ;;  %4944 = vset.pattern.permute.xlu0 (!%p7500_p0), %v5994_v6  ;;  %4578 = vmatprep.mubr.msk.bf16.mxu1 (!%p7500_p0), %vm5993_vm0, %v5992_v2  ;;  %v4386_v51 = vld [vmem:[#allocation24] ss:$0 sm:$0xff] (!%p7500_p0)  ;;  %v4382_v54 = vld [vmem:[#allocation19] ss:$0 sm:$0xff] (!%p7500_p0)  ;;  %v4390_v60 = vld [vmem:[#allocation22] ss:$0 sm:$0xff] (!%p7500_p0) }
 0x35a   : > { %7497 = sst [smem:[#allocation115_spill]] %s6932_s2  ;;  %s6935_s8 = scalar_lea.vmem %s7494_s6, %s4722_s5  ;;  %4582 = vmatprep.subr.bf16.mxu0 (!%p7500_p0), %v5992_v2  ;;  %4575 = vmatpush3.bf16.msra.mxu1 (!%p7500_p0), %v4946_v9 }
 0x35b   : > { %s6938_s9 = scalar_lea.vmem %s7495_s20, %s4722_s5  ;;  %s6941_s0 = scalar_lea.vmem %s7496_s1, %s4722_s5  ;;  %v1985_v3 = vld [vmem:[%s7501_s7] sm:$0xff] (!%p7500_p0)  ;;  %v2191_v7 = vld [vmem:[%s7502_s11 + $0x8] sm:$0xff] (!%p7500_p0)  ;;  %4576 = vmatprep.subr.bf16.mxu1 (!%p7500_p0), %v5992_v2 }
 0x35c   : > { %7498 = sst [smem:[#allocation116_spill]] %s6938_s9  ;;  %v2190_v4 = vld [vmem:[%s7502_s11] sm:$0xff] (!%p7500_p0)  ;;  %v1986_v5 = vfloor.f32 (!%p7500_p0), %v1985_v3  ;;  %s7503_s1 = sld [smem:[#allocation79_spill]] (!%p7500_p0)  ;;  %v1988_v11 = vsub.f32 (!%p7500_p0), 0.0, %v1985_v3  ;;  %vm1987_vm2 = vcmp.ge.f32.partialorder (!%p7500_p0), %v1985_v3, 0.0 }
 0x35d   : > { %7499 = sst [smem:[#allocation117_spill]] %s6941_s0  ;;  %2195 = vperm.xlu0 (!%p7500_p0), %4944, %v2190_v4   ;;  %s7504_s7 = sld [smem:[#allocation72_spill]] (!%p7500_p0) }
 0x35e   : > { %v1997_v8 = vpack.c.bf16 %v1986_v5, %v1986_v5  ;;  %4577 = vmatpush3.bf16.msra.mxu1 %v4947_v10  ;;  %v1989_v12 = vfloor.f32 %v1988_v11 }
 0x35f   : > { %4588 = vmatprep.subr.bf16.mxu1 %v5992_v2 }
 0x360   : > { %4571 = vmatmul.mubr.msk.bf16.vlgmr.msra.gmra.mrb[0].mxu0 %vm2010_vm1, %v1997_v8  ;;  %v1990_v14 = vsub.f32 0.0, %v1989_v12 }
 0x361   : > { %4584 = vmatprep.mubr.msk.bf16.mxu0 %vm5993_vm0, %v5992_v2  ;;  %2200 = vperm.xlu0 %4944, %v2191_v7  }
 0x362   : > { %v4950_v13 = vld [vmem:[%s7503_s1] sm:$0xff]   ;;  %v1991_v15 = vsel %vm1987_vm2, %v1986_v5, %v1990_v14 }
 0x363   : > { %4583 = vmatpush3.bf16.msra.mxu0 %v4950_v13  ;;  %v1992_v16 = vsub.f32 %v1985_v3, %v1991_v15  ;;  %v4389_v28 = vld [vmem:[%s7504_s7] ss:$0 sm:$0xff] }
 0x365   : > { %v1993_v17 = vmul.f32 1000.0, %v1992_v16 }
 0x367   : > { %v2133_v18 = vpack.c.bf16 %v1993_v17, %v1993_v17 }
 0x369   : > { %4585 = vmatmul.mubr.msk.bf16.vlgmr.msra.gmra.mrb[4].mxu0 %vm2010_vm1, %v2133_v18 }
 0x3dc   : > { %v2196_v26 = vpop.permute.xlu0 %2195 }
 0x3dd   : > { %v2209_v30 = vsub.f32 %v2196_v26, %v4389_v28 }
 0x3df   : > { %v2211_v32 = vmul.f32 -5.1666665, %v2209_v30 }
 0x3e0   : > { %v2201_v29 = vpop.permute.xlu0 %2200 }
 0x3e1   : > { %v2210_v31 = vsub.f32 %v2201_v29, %v4389_v28  ;;  %v2213_v36 = vmul.f32 %v2211_v32, %v2209_v30 }
 0x3e3   : > { %v2212_v33 = vmul.f32 -5.1666665, %v2210_v31  ;;  %v2215_v38 = vmul.f32 1.442695, %v2213_v36 }
 0x3e5   : > { %v2214_v37 = vmul.f32 %v2212_v33, %v2210_v31 }
 0x3e7   : > { %v2217_v39 = vmul.f32 1.442695, %v2214_v37 }
 0x433   : > { %v2048_v20 = vpop.f32.mrb[0].mxu0 }
 0x434   : > { %v2049_v21 = vadd.f32 %v4379_v19, %v2048_v20  ;;  %v4572_v22 = vpop.f32.mrb[1].mxu0 }
 0x435   : > { %v2051_v23 = vpop.f32.mrb[2].mxu0 }
 0x436   : > { %v2054_v24 = vsub.f32 0.0, %v2049_v21  ;;  %v4573_v25 = vpop.f32.mrb[3].mxu0 }
 0x438   : > { %v2055_v27 = vmul.f32 1.442695, %v2054_v24 }
 0x43a   : > { %4951 = vpow2.f32 %v2055_v27 }
 0x43c   : > { %v2183_v48 = vpop.f32.mrb[4].mxu0 }
 0x43d   : > { %v4586_v49 = vpop.f32.mrb[5].mxu0  ;;  %v2184_v53 = vadd.f32 %v4386_v51, %v2183_v48 }
 0x43e   : > { %v2186_v50 = vpop.f32.mrb[6].mxu0 }
 0x43f   : > { %v4587_v52 = vpop.f32.mrb[7].mxu0  ;;  %2189 = vst.msk [vmem:[#allocation3] sm:$0xff] %vm2085_vm3, %v2184_v53 }
 0x444   : > { %v4952_v34 = vpop.eup %4951 }
 0x445   : > { %v2057_v35 = vadd.f32 1.0, %v4952_v34 }
 0x447   : > { %4953 = vrcp.f32 %v2057_v35 }
 0x448   : > { %4955 = vpow2.f32 %v2215_v38 }
 0x449   : > { %4957 = vpow2.f32 %v2217_v39 }
 0x451   : > { %v4954_v40 = vpop.eup %4953 }
 0x452   : > { %v2060_v41 = vmul.f32 %v4954_v40, %v2049_v21  ;;  %v4956_v45 = vpop.eup %4955 }
 0x453   : > { %v4958_v46 = vpop.eup %4957 }
 0x454   : > { %v2066_v43 = vpack.c.bf16 %v2060_v41, %v2060_v41  ;;  %v2224_v47 = vpack.c.bf16 %v4958_v46, %v4956_v45 }
 0x456   : > { %4579 = vmatmul.mubr.msk.bf16.vlgmr.msra.gmra.mrb[0].mxu1 %vm2085_vm3, %v2066_v43 }
 0x457   : > { %4589 = vmatpush3.bf16.msra.mxu1 %v4948_v42  ;;  %4592 = vmatprep.mubr.msk.bf16.mxu1 %vm5993_vm0, %v5992_v2 }
 0x458   : > { %4590 = vmatprep.subr.bf16.mxu1 %v5992_v2 }
 0x45b   : > { %4591 = vmatpush3.bf16.msra.mxu1 %v4949_v44 }
 0x45e   : > { %4593 = vmatmul.mubr.msk.bf16.vlgmr.msra.gmra.mrb[4].mxu1 %vm2085_vm3, %v2224_v47 }
 0x529   : > { %v2123_v55 = vpop.f32.mrb[0].mxu1 }
 0x52a   : > { %v2124_v56 = vadd.f32 %v4382_v54, %v2123_v55  ;;  %v4580_v57 = vpop.f32.mrb[1].mxu1 }
 0x52b   : > { %v2126_v58 = vpop.f32.mrb[2].mxu1 }
 0x52c   : > { %2129 = vst.msk [vmem:[#allocation2] sm:$0xff] %vm2085_vm3, %v2124_v56  ;;  %v4581_v59 = vpop.f32.mrb[3].mxu1 }
 0x531   : > { %v2280_v61 = vpop.f32.mrb[4].mxu1 }
 0x532   : > { %v2281_v62 = vadd.f32 %v4390_v60, %v2280_v61  ;;  %v4594_v63 = vpop.f32.mrb[5].mxu1 }
 0x533   : > { %v2283_v0 = vpop.f32.mrb[6].mxu1 }
 0x534   : > { %v2287_v1 = vsub.f32 0.0, %v2281_v62  ;;  %v2284_v2 = vadd.f32 %v4390_v60, %v2283_v0  ;;  %v4595_v3 = vpop.f32.mrb[7].mxu1 }
 0x536   : > { %v2289_v4 = vmul.f32 1.442695, %v2287_v1  ;;  %v2288_v5 = vsub.f32 0.0, %v2284_v2 }
 0x538   : > { %4959 = vpow2.f32 %v2289_v4  ;;  %v2291_v6 = vmul.f32 1.442695, %v2288_v5 }
 0x53a   : > { %4961 = vpow2.f32 %v2291_v6 }
 0x542   : > { %v4960_v7 = vpop.eup %4959 }
 0x543   : > { %v2293_v8 = vadd.f32 1.0, %v4960_v7 }
 0x544   : > { %v4962_v9 = vpop.eup %4961 }
 0x545   : > { %4963 = vrcp.f32 %v2293_v8  ;;  %v2294_v10 = vadd.f32 1.0, %v4962_v9 }
 0x547   : > { %4965 = vrcp.f32 %v2294_v10 }
 0x54f   : > { %v4964_v11 = vpop.eup %4963 }
 0x550   : > { %v2299_v12 = vmul.f32 %v4964_v11, %v2281_v62 }
 0x551   : > { %v4966_v13 = vpop.eup %4965 }
 0x552   : > { %2301 = vst.msk [vmem:[#allocation4] sm:$0xff] %vm2085_vm3, %v2299_v12  ;;  %v2300_v14 = vmul.f32 %v4966_v13, %v2284_v2 }
 0x554   : > { %2302 = vst.msk [vmem:[#allocation4 + $0x8] sm:$0xff] %vm2085_vm3, %v2300_v14 }
 0x555 PF: > { %v4977_v15 = vld [vmem:[%s1630_s19] sm:$0xff]   ;;  %v5995_v16 = vmov 0.0   ;;  %v4978_v17 = vld [vmem:[%s1630_s19 + $0x8] sm:$0xff]   ;;  %vm5996_vm4 = vmmov 0   ;;  %vm2328_vm5 = vcmask 261120   ;;  %s7004_s19 = sld [smem:[#allocation12]] }
 0x556   : > { %4596 = vmatprep.subr.bf16.mxu1 %v5995_v16  ;;  %4612 = vmatprep.subr.bf16.mxu0 %v5995_v16  ;;  %v2303_v18 = vld [vmem:[#allocation2] sm:$0xff]  ;;  %3060 = vst.msk [vmem:[#allocation9] sm:$0xff] %vm2328_vm5, %v5995_v16  ;;  %v4982_v26 = vld [vmem:[%s6935_s8 + $0x8] sm:$0xff]   ;;  %v4983_v27 = vld [vmem:[%s6935_s8 + $0x10] sm:$0xff]   ;;  %s7008_s17 = sld [smem:[#allocation12 + $0x2]]  ;;  %s7010_s6 = sld [smem:[#allocation12 + $0x3]] }
 0x557   : > { %4597 = vmatpush3.bf16.msra.mxu1 %v4977_v15  ;;  %4600 = vmatprep.mubr.msk.bf16.mxu1 %vm5996_vm4, %v5995_v16  ;;  %v2309_v19 = vpack.c.bf16 %v2303_v18, %v2303_v18  ;;  %v4979_v20 = vld [vmem:[%s1647_s21] sm:$0xff]   ;;  %v4980_v21 = vld [vmem:[%s1647_s21 + $0x8] sm:$0xff]   ;;  %s7006_s21 = sld [smem:[#allocation12 + $0x1]]  ;;  %s7012_s24 = sld [smem:[#allocation12 + $0x4]]  ;;  %vm2372_vm6 = vcmask 785408   ;;  %vm2378_vm7 = vcmask 778240  }
 0x558   : > { %4598 = vmatprep.subr.bf16.mxu1 %v5995_v16  ;;  %4624 = vmatprep.mubr.msk.bf16.mxu0 %vm5996_vm4, %v5995_v16  ;;  %v4981_v25 = vld [vmem:[%s6935_s8] sm:$0xff]   ;;  %s7014_s20 = sld [smem:[#allocation12 + $0x5]]  ;;  %s7016_s5 = sld [smem:[#allocation12 + $0x6]]  ;;  %v4984_v55 = vld [vmem:[%s6935_s8 + $0x18] sm:$0xff]   ;;  %v4986_v14 = vld [vmem:[%s6935_s8 + $0x28] sm:$0xff]   ;;  %vm2617_vm8 = vcmask 523264  }
 0x559   : > { %v2507_v22 = vld [vmem:[#allocation4] sm:$0xff]  ;;  %4613 = vmatpush3.bf16.msra.mxu0 %v4981_v25  ;;  %s7018_s14 = sld [smem:[#allocation12 + $0x7]]  ;;  %s7020_s1 = sld [smem:[#allocation12 + $0x8]]  ;;  %v4985_v12 = vld [vmem:[%s6935_s8 + $0x20] sm:$0xff]   ;;  %vm3066_vm9 = vcmask 253952  }
 0x55a   : > { %4614 = vmatprep.subr.bf16.mxu0 %v5995_v16  ;;  %s7022_s7 = sld [smem:[#allocation12 + $0x9]]  ;;  %s7024_s3 = sld [smem:[#allocation12 + $0xa]] }
 0x55b   : > { %4599 = vmatpush3.bf16.msra.mxu1 %v4978_v17  ;;  %v2508_v23 = vld [vmem:[#allocation4 + $0x8] sm:$0xff]  ;;  %7505 = sst [smem:[#allocation118_spill]] %s7004_s19  ;;  %s7026_s4 = sld [smem:[#allocation12 + $0xb]] }
 0x55c   : > { %4604 = vmatprep.subr.bf16.mxu1 %v5995_v16  ;;  %v2514_v24 = vpack.c.bf16 %v2508_v23, %v2507_v22  ;;  %s7028_s11 = sld [smem:[#allocation12 + $0xc]]  ;;  %s7030_s12 = sld [smem:[#allocation12 + $0xd]] }
 0x55d   : > { %4615 = vmatpush3.bf16.msra.mxu0 %v4982_v26  ;;  %s7032_s13 = sld [smem:[#allocation12 + $0xe]]  ;;  %s7034_s23 = sld [smem:[#allocation12 + $0xf]] }
 0x55e   : > { %4601 = vmatmul.mubr.msk.bf16.vlgmr.msra.gmra.mrb[0].mxu1 %vm2328_vm5, %v2309_v19  ;;  %4616 = vmatprep.subr.bf16.mxu0 %v5995_v16  ;;  %s7036_s25 = sld [smem:[#allocation11]]  ;;  %s7038_s27 = sld [smem:[#allocation11 + $0x1]] }
 0x55f   : > { %4605 = vmatpush3.bf16.msra.mxu1 %v4979_v20  ;;  %4608 = vmatprep.mubr.msk.bf16.mxu1 %vm5996_vm4, %v5995_v16  ;;  %s7040_s29 = sld [smem:[#allocation11 + $0x2]]  ;;  %s7042_s30 = sld [smem:[#allocation11 + $0x3]] }
 0x560   : > { %4606 = vmatprep.subr.bf16.mxu1 %v5995_v16  ;;  %s7044_s26 = sld [smem:[#allocation11 + $0x4]]  ;;  %s7046_s22 = sld [smem:[#allocation11 + $0x5]] }
 0x561   : > { %4617 = vmatpush3.bf16.msra.mxu0 %v4983_v27  ;;  %s7048_s16 = sld [smem:[#allocation11 + $0x6]]  ;;  %s7050_s10 = sld [smem:[#allocation11 + $0x7]] }
 0x562   : > { %4618 = vmatprep.subr.bf16.mxu0 %v5995_v16  ;;  %s7508_s2 = scalar_lea.vmem [#allocation27], %s6855_s15  ;;  %s7054_s28 = sld [smem:[#allocation11 + $0x8]] }
 0x563   : > { %4607 = vmatpush3.bf16.msra.mxu1 %v4980_v21  ;;  %v4394_v28 = vld [vmem:[%s7508_s2] ss:$0 sm:$0xff]  ;;  %s7056_s18 = sld [smem:[#allocation11 + $0x9]]  ;;  %s7058_s0 = sld [smem:[#allocation11 + $0xa]] }
 0x564   : > { %4628 = vmatprep.subr.bf16.mxu1 %v5995_v16  ;;  %s7060_s9 = sld [smem:[#allocation11 + $0xb]]  ;;  %s7066_s2 = sld [smem:[#allocation11 + $0xe]] }
 0x565   : > { %4619 = vmatpush3.bf16.msra.mxu0 %v4984_v55  ;;  %s5999_s8 = smov 32  }
 0x566   : > { %4609 = vmatmul.mubr.msk.bf16.vlgmr.msra.gmra.mrb[4].mxu1 %vm2328_vm5, %v2514_v24  ;;  %7506 = sst [smem:[#allocation119_spill]] %s7044_s26  ;;  %s7062_s26 = sld [smem:[#allocation11 + $0xc]]  ;;  %4620 = vmatprep.subr.bf16.mxu0 %v5995_v16 }
 0x567   : > { %4640 = vmatprep.mubr.msk.bf16.mxu1 %vm5996_vm4, %v5995_v16  ;;  %7507 = sst [smem:[#allocation120_spill]] %s7050_s10  ;;  %s7064_s10 = sld [smem:[#allocation11 + $0xd]] }
 0x569   : > { %7509 = sst [smem:[#allocation121_spill]] %s7058_s0  ;;  %s7069_s0 = sld [smem:[#allocation11 + $0xf]]  ;;  %4621 = vmatpush3.bf16.msra.mxu0 %v4985_v12 }
 0x56a   : > { %7510 = sst [smem:[#allocation122_spill]] %s7060_s9  ;;  %s2385_s9 = scalar_lea.vmem [#allocation5], %s7006_s21  ;;  %4622 = vmatprep.subr.bf16.mxu0 %v5995_v16 }
 0x56b   : > { %7513 = sst [smem:[#allocation125_spill]] %s7066_s2  ;;  %s2409_s2 = scalar_lea.vmem [#allocation5], %s7012_s24 }
 0x56c   : > { %7511 = sst [smem:[#allocation123_spill]] %s7062_s26  ;;  %s2376_s26 = scalar_lea.vmem [#allocation5], %s7004_s19 }
 0x56d   : > { %7512 = sst [smem:[#allocation124_spill]] %s7064_s10  ;;  %s2393_s10 = scalar_lea.vmem [#allocation5], %s7008_s17  ;;  %4623 = vmatpush3.bf16.msra.mxu0 %v4986_v14 }
 0x56e   : > { %s2417_s19 = scalar_lea.vmem [#allocation5], %s7014_s20  ;;  %4644 = vmatprep.subr.bf16.mxu0 %v5995_v16 }
 0x56f   : > { %7514 = sst [smem:[#allocation126_spill]] %s7069_s0  ;;  %s2401_s0 = scalar_lea.vmem [#allocation5], %s7010_s6 }
 0x631   : > { %v2366_v29 = vpop.f32.mrb[0].mxu1 }
 0x632   : > { %v2367_v30 = vadd.f32 %v4394_v28, %v2366_v29  ;;  %v4602_v31 = vpop.f32.mrb[1].mxu1 }
 0x633   : > { %v2369_v32 = vpop.f32.mrb[2].mxu1 }
 0x634   : > { %2373 = vst.msk [vmem:[#allocation5] sm:$0xff] %vm2372_vm6, %v2367_v30  ;;  %v4603_v33 = vpop.f32.mrb[3].mxu1 }
 0x639   : > { %v2570_v34 = vpop.f32.mrb[4].mxu1 }
 0x63a   : > { %v4610_v35 = vpop.f32.mrb[5].mxu1 }
 0x63b   : > { %v2377_v36 = vld [vmem:[%s2376_s26] sm:$0x1]  ;;  %s7515_s26 = scalar_lea.vmem [#allocation30], %s6855_s15  ;;  %v2573_v53 = vpop.f32.mrb[6].mxu1 }
 0x63c   : > { %v2386_v37 = vld [vmem:[%s2385_s9] sm:$0x1]  ;;  %2379 = vst.msk [vmem:[#allocation6] sm:$0x1] %vm2378_vm7, %v2377_v36  ;;  %s2433_s9 = scalar_lea.vmem [#allocation5], %s7018_s14  ;;  %v4611_v58 = vpop.f32.mrb[7].mxu1 }
 0x63d   : > { %v2394_v38 = vld [vmem:[%s2393_s10] sm:$0x1]  ;;  %2387 = vst.msk [vmem:[#allocation6 + $0x1] sm:$0x1] %vm2378_vm7, %v2386_v37  ;;  %s2425_s10 = scalar_lea.vmem [#allocation5], %s7016_s5 }
 0x63e   : > { %2395 = vst.msk [vmem:[#allocation6 + $0x2] sm:$0x1] %vm2378_vm7, %v2394_v38  ;;  %v2402_v39 = vld [vmem:[%s2401_s0] sm:$0x1]  ;;  %s2441_s0 = scalar_lea.vmem [#allocation5], %s7020_s1 }
 0x63f   : > { %v2410_v40 = vld [vmem:[%s2409_s2] sm:$0x1]  ;;  %2403 = vst.msk [vmem:[#allocation6 + $0x3] sm:$0x1] %vm2378_vm7, %v2402_v39  ;;  %s2457_s2 = scalar_lea.vmem [#allocation5], %s7024_s3 }
 0x640   : > { %v2418_v41 = vld [vmem:[%s2417_s19] sm:$0x1]  ;;  %2411 = vst.msk [vmem:[#allocation6 + $0x4] sm:$0x1] %vm2378_vm7, %v2410_v40  ;;  %s2449_s19 = scalar_lea.vmem [#allocation5], %s7022_s7 }
 0x641   : > { %v4428_v42 = vld [vmem:[%s7515_s26] ss:$0 sm:$0xff]  ;;  %2419 = vst.msk [vmem:[#allocation6 + $0x5] sm:$0x1] %vm2378_vm7, %v2418_v41  ;;  %s2465_s26 = scalar_lea.vmem [#allocation5], %s7026_s4 }
 0x642   : > { %v2426_v43 = vld [vmem:[%s2425_s10] sm:$0x1]  ;;  %s2473_s10 = scalar_lea.vmem [#allocation5], %s7028_s11  ;;  %v7106_v56 = vadd.f32 %v4428_v42, %v2570_v34  ;;  %v7109_v57 = vadd.f32 %v4428_v42, %v2573_v53 }
 0x643   : > { %v2434_v44 = vld [vmem:[%s2433_s9] sm:$0x1]  ;;  %2427 = vst.msk [vmem:[#allocation6 + $0x6] sm:$0x1] %vm2378_vm7, %v2426_v43  ;;  %s2481_s9 = scalar_lea.vmem [#allocation5], %s7030_s12 }
 0x644   : > { %v2442_v45 = vld [vmem:[%s2441_s0] sm:$0x1]  ;;  %2435 = vst.msk [vmem:[#allocation6 + $0x7] sm:$0x1] %vm2378_vm7, %v2434_v44  ;;  %s2489_s0 = scalar_lea.vmem [#allocation5], %s7032_s13  ;;  %v4972_v0 = vpack.i.bf16 %v7109_v57, %v7106_v56 }
 0x645   : > { %2443 = vst.msk [vmem:[#allocation6 + $0x8] sm:$0x1] %vm2378_vm7, %v2442_v45  ;;  %v2450_v46 = vld [vmem:[%s2449_s19] sm:$0x1]  ;;  %s2497_s19 = scalar_lea.vmem [#allocation5], %s7034_s23 }
 0x646   : > { %v2458_v47 = vld [vmem:[%s2457_s2] sm:$0x1]  ;;  %2451 = vst.msk [vmem:[#allocation6 + $0x9] sm:$0x1] %vm2378_vm7, %v2450_v46  ;;  %s2380_s2 = scalar_lea.vmem [#allocation5], %s7036_s25  ;;  %s7517_s25 = sld [smem:[#allocation120_spill]] }
 0x647   : > { %v2466_v48 = vld [vmem:[%s2465_s26] sm:$0x1]  ;;  %2459 = vst.msk [vmem:[#allocation6 + $0xa] sm:$0x1] %vm2378_vm7, %v2458_v47  ;;  %s7516_s26 = sld [smem:[#allocation119_spill]] }
 0x648   : > { %2467 = vst.msk [vmem:[#allocation6 + $0xb] sm:$0x1] %vm2378_vm7, %v2466_v48  ;;  %v2474_v49 = vld [vmem:[%s2473_s10] sm:$0x1]  ;;  %s2388_s10 = scalar_lea.vmem [#allocation5], %s7038_s27  ;;  %s7519_s27 = sld [smem:[#allocation122_spill]] }
 0x649   : > { %v2482_v50 = vld [vmem:[%s2481_s9] sm:$0x1]  ;;  %2475 = vst.msk [vmem:[#allocation6 + $0xc] sm:$0x1] %vm2378_vm7, %v2474_v49  ;;  %s2396_s9 = scalar_lea.vmem [#allocation5], %s7040_s29  ;;  %s7518_s29 = sld [smem:[#allocation121_spill]] }
 0x64a   : > { %v2490_v51 = vld [vmem:[%s2489_s0] sm:$0x1]  ;;  %2483 = vst.msk [vmem:[#allocation6 + $0xd] sm:$0x1] %vm2378_vm7, %v2482_v50  ;;  %s2404_s0 = scalar_lea.vmem [#allocation5], %s7042_s30 }
 0x64b   : > { %2491 = vst.msk [vmem:[#allocation6 + $0xe] sm:$0x1] %vm2378_vm7, %v2490_v51  ;;  %v2498_v52 = vld [vmem:[%s2497_s19] sm:$0x1]  ;;  %v7134_v7 = vld [vmem:[#allocation6] sm:$0xff] }
 0x64c   : > { %v2381_v54 = vld [vmem:[%s2380_s2] sm:$0x1]  ;;  %2499 = vst.msk [vmem:[#allocation6 + $0xf] sm:$0x1] %vm2378_vm7, %v2498_v52  ;;  %s2420_s2 = scalar_lea.vmem [#allocation5], %s7046_s22  ;;  %s2436_s30 = scalar_lea.vmem [#allocation5], %s7517_s25  ;;  %v2597_v28 = vmul.f32 %v7106_v56, %v7134_v7 }
 0x64d   : > { %2382 = vst.msk [vmem:[#allocation7] sm:$0x1] %vm2378_vm7, %v2381_v54  ;;  %v2389_v59 = vld [vmem:[%s2388_s10] sm:$0x1]  ;;  %s2412_s19 = scalar_lea.vmem [#allocation5], %s7516_s26  ;;  %s2428_s10 = scalar_lea.vmem [#allocation5], %s7048_s16 }
 0x64e   : > { %v2397_v60 = vld [vmem:[%s2396_s9] sm:$0x1]  ;;  %2390 = vst.msk [vmem:[#allocation7 + $0x1] sm:$0x1] %vm2378_vm7, %v2389_v59  ;;  %s2444_s26 = scalar_lea.vmem [#allocation5], %s7054_s28  ;;  %s7520_s22 = sld [smem:[#allocation123_spill]] }
 0x64f   : > { %2398 = vst.msk [vmem:[#allocation7 + $0x2] sm:$0x1] %vm2378_vm7, %v2397_v60  ;;  %v2405_v61 = vld [vmem:[%s2404_s0] sm:$0x1]  ;;  %s7521_s9 = sld [smem:[#allocation124_spill]]  ;;  %s2452_s0 = scalar_lea.vmem [#allocation5], %s7056_s18 }
 0x650   : > { %v2413_v62 = vld [vmem:[%s2412_s19] sm:$0x1]  ;;  %2406 = vst.msk [vmem:[#allocation7 + $0x3] sm:$0x1] %vm2378_vm7, %v2405_v61  ;;  %s7522_s19 = sld [smem:[#allocation125_spill]]  ;;  %s7523_s16 = sld [smem:[#allocation126_spill]] }
 0x651   : > { %v2421_v63 = vld [vmem:[%s2420_s2] sm:$0x1]  ;;  %2414 = vst.msk [vmem:[#allocation7 + $0x4] sm:$0x1] %vm2378_vm7, %v2413_v62  ;;  %s2460_s2 = scalar_lea.vmem [#allocation5], %s7518_s29  ;;  %s2468_s25 = scalar_lea.vmem [#allocation5], %s7519_s27 }
 0x652   : > { %2422 = vst.msk [vmem:[#allocation7 + $0x5] sm:$0x1] %vm2378_vm7, %v2421_v63  ;;  %v2429_v1 = vld [vmem:[%s2428_s10] sm:$0x1]  ;;  %s5997_s10 = smov 64  }
 0x653   : > { %v2437_v2 = vld [vmem:[%s2436_s30] sm:$0x1]  ;;  %2430 = vst.msk [vmem:[#allocation7 + $0x6] sm:$0x1] %vm2378_vm7, %v2429_v1  ;;  %v2504_v13 = vld [vmem:[#allocation6 + $0x8] sm:$0xff]  ;;  %s5998_s30 = smov 96  }
 0x654   : > { %v2445_v3 = vld [vmem:[%s2444_s26] sm:$0x1]  ;;  %2438 = vst.msk [vmem:[#allocation7 + $0x7] sm:$0x1] %vm2378_vm7, %v2437_v2  ;;  %s2476_s28 = scalar_lea.vmem [#allocation5], %s7520_s22  ;;  %v4967_v15 = vpack.i.bf16 %v2504_v13, %v7134_v7  ;;  %s7524_s26 = sld [smem:[#allocation116_spill]]  ;;  %v2598_v35 = vmul.f32 %v7109_v57, %v2504_v13 }
 0x655   : > { %2446 = vst.msk [vmem:[#allocation7 + $0x8] sm:$0x1] %vm2378_vm7, %v2445_v3  ;;  %v2453_v4 = vld [vmem:[%s2452_s0] sm:$0x1]  ;;  %s2484_s18 = scalar_lea.vmem [#allocation5], %s7521_s9  ;;  %s7525_s22 = scalar_lea.vmem [#allocation31], %s6855_s15 }
 0x656   : > { %v2461_v5 = vld [vmem:[%s2460_s2] sm:$0x1]  ;;  %2454 = vst.msk [vmem:[#allocation7 + $0x9] sm:$0x1] %vm2378_vm7, %v2453_v4  ;;  %s2492_s29 = scalar_lea.vmem [#allocation5], %s7522_s19  ;;  %s2500_s27 = scalar_lea.vmem [#allocation5], %s7523_s16  ;;  %4968 = vrot.lane.b32.xlu1 %v4967_v15, %s5997_s10 }
 0x657   : > { %v2469_v6 = vld [vmem:[%s2468_s25] sm:$0x1]  ;;  %2462 = vst.msk [vmem:[#allocation7 + $0xa] sm:$0x1] %vm2378_vm7, %v2461_v5  ;;  %s7526_s9 = sld [smem:[#allocation117_spill]]  ;;  %s7527_s0 = scalar_lea.vmem [#allocation34], %s6855_s15 }
 0x658   : > { %2470 = vst.msk [vmem:[#allocation7 + $0xb] sm:$0x1] %vm2378_vm7, %v2469_v6  ;;  %v2477_v8 = vld [vmem:[%s2476_s28] sm:$0x1]  ;;  %s7528_s19 = scalar_lea.vmem [#allocation36], %s6855_s15  ;;  %s7529_s2 = scalar_lea.vmem [#allocation33], %s6855_s15 }
 0x659   : > { %v2485_v9 = vld [vmem:[%s2484_s18] sm:$0x1]  ;;  %2478 = vst.msk [vmem:[#allocation7 + $0xc] sm:$0x1] %vm2378_vm7, %v2477_v8  ;;  %s7530_s16 = scalar_lea.vmem [#allocation37], %s6855_s15  ;;  %s7531_s25 = sld [smem:[#allocation118_spill]] }
 0x65a   : > { %2486 = vst.msk [vmem:[#allocation7 + $0xd] sm:$0x1] %vm2378_vm7, %v2485_v9  ;;  %v2493_v10 = vld [vmem:[%s2492_s29] sm:$0x1]  ;;  %4973 = vrot.lane.b32.xlu1 %v4972_v0, %s5997_s10  ;;  %v4988_v38 = vld [vmem:[%s7524_s26 + $0x8] sm:$0xff]   ;;  %v4989_v41 = vld [vmem:[%s7524_s26 + $0x10] sm:$0xff]  }
 0x65b   : > { %v2501_v11 = vld [vmem:[%s2500_s27] sm:$0x1]  ;;  %2494 = vst.msk [vmem:[#allocation7 + $0xe] sm:$0x1] %vm2378_vm7, %v2493_v10  ;;  %v2505_v17 = vld [vmem:[#allocation7] sm:$0xff]  ;;  %v4992_v56 = vld [vmem:[%s7524_s26 + $0x28] sm:$0xff]  }
 0x65c   : > { %2502 = vst.msk [vmem:[#allocation7 + $0xf] sm:$0x1] %vm2378_vm7, %v2501_v11  ;;  %2589 = vrot.lane.b32.xlu0 %v2505_v17, %s5998_s30  ;;  %v4987_v36 = vld [vmem:[%s7524_s26] sm:$0xff]   ;;  %v4990_v47 = vld [vmem:[%s7524_s26 + $0x18] sm:$0xff]   ;;  %s7532_s28 = scalar_lea.vmem [#allocation39], %s6855_s15  ;;  %s7533_s18 = scalar_lea.vmem [#allocation40], %s6855_s15 }
 0x65d   : > { %4629 = vmatpush3.bf16.msra.mxu1 %v4987_v36  ;;  %v4991_v54 = vld [vmem:[%s7524_s26 + $0x20] sm:$0xff]   ;;  %s7534_s27 = sld [smem:[#allocation114_spill]] }
 0x65e   : > { %2581 = vrot.lane.b32.xlu1 %v2504_v13, %s5998_s30  ;;  %4630 = vmatprep.subr.bf16.mxu1 %v5995_v16  ;;  %v4432_v58 = vld [vmem:[%s7525_s22] ss:$0 sm:$0xff]  ;;  %s3093_s22 = scalar_lea.vmem [#allocation9], %s7014_s20  ;;  %s3111_s20 = scalar_lea.vmem [#allocation9], %s7020_s1 }
 0x65f   : > { %s3062_s29 = scalar_lea.vmem [#allocation9], %s7531_s25  ;;  %s3129_s1 = scalar_lea.vmem [#allocation9], %s7026_s4 }
 0x660   : > { %s3147_s4 = scalar_lea.vmem [#allocation9], %s7032_s13 }
 0x661   : > { %4631 = vmatpush3.bf16.msra.mxu1 %v4988_v38  ;;  %v4448_v38 = vld [vmem:[%s7527_s0] ss:$0 sm:$0xff] }
 0x662   : > { %4632 = vmatprep.subr.bf16.mxu1 %v5995_v16 }
 0x663   : > { %v2506_v18 = vld [vmem:[#allocation7 + $0x8] sm:$0xff] }
 0x664   : > { %2591 = vrot.lane.b32.xlu0 %v2506_v18, %s5998_s30 }
 0x665   : > { %4633 = vmatpush3.bf16.msra.mxu1 %v4989_v41 }
 0x666   : > { %4634 = vmatprep.subr.bf16.mxu1 %v5995_v16 }
 0x668   : > { %2579 = vrot.lane.b32.xlu0 %v7134_v7, %s5998_s30  ;;  %s3075_s30 = scalar_lea.vmem [#allocation9], %s7008_s17  ;;  %s3087_s17 = scalar_lea.vmem [#allocation9], %s7012_s24 }
 0x669   : > { %4635 = vmatpush3.bf16.msra.mxu1 %v4990_v47  ;;  %s3105_s24 = scalar_lea.vmem [#allocation9], %s7018_s14  ;;  %s3123_s14 = scalar_lea.vmem [#allocation9], %s7024_s3 }
 0x66a   : > { %4636 = vmatprep.subr.bf16.mxu1 %v5995_v16  ;;  %s3141_s3 = scalar_lea.vmem [#allocation9], %s7030_s12  ;;  %s7537_s12 = scalar_lea.vmem [#allocation43], %s6855_s15 }
 0x66d   : > { %4637 = vmatpush3.bf16.msra.mxu1 %v4991_v54 }
 0x66e   : > { %4638 = vmatprep.subr.bf16.mxu1 %v5995_v16 }
 0x671   : > { %4639 = vmatpush3.bf16.msra.mxu1 %v4992_v56 }
 0x672   : > { %4660 = vmatprep.subr.bf16.mxu1 %v5995_v16 }
 0x6c8   : > { %v4969_v19 = vpop.permute.xlu1 %4968 }
 0x6c9   : > { %v4971_v22 = vunpack.i.h.bf16 %v4969_v19  ;;  %v4970_v23 = vunpack.i.l.bf16 %v4969_v19 }
 0x6cc   : > { %v4974_v24 = vpop.permute.xlu1 %4973 }
 0x6cd   : > { %v4976_v26 = vunpack.i.h.bf16 %v4974_v24  ;;  %v4975_v27 = vunpack.i.l.bf16 %v4974_v24 }
 0x6ce   : > { %v2590_v20 = vpop.permute.xlu0 %2589 }
 0x6cf   : > { %v2595_v21 = vmul.f32 %v2590_v20, %v7134_v7  ;;  %v2636_v29 = vsel %vm2328_vm5, %v4970_v23, %v2590_v20 }
 0x6d0   : > { %v2638_v33 = vsel %vm2617_vm8, %v2636_v29, %v4975_v27  ;;  %v2582_v39 = vpop.permute.xlu1 %2581  ;;  %v4995_v27 = vld [vmem:[%s7526_s9 + $0x10] sm:$0xff]   ;;  %v4997_v29 = vld [vmem:[%s7526_s9 + $0x20] sm:$0xff]  }
 0x6d1   : > { %2601 = vrot.lane.b32.xlu0 %v2595_v21, %s5999_s8  ;;  %v2586_v48 = vmul.f32 %v2582_v39, %v2504_v13 }
 0x6d5   : > { %2609 = vrot.lane.b32.xlu0 %v2597_v28, %s5997_s10  ;;  %v4996_v28 = vld [vmem:[%s7526_s9 + $0x18] sm:$0xff]  }
 0x6d6   : > { %v2592_v25 = vpop.permute.xlu0 %2591 }
 0x6d7   : > { %v2596_v30 = vmul.f32 %v2592_v25, %v2504_v13  ;;  %v2637_v31 = vsel %vm2328_vm5, %v4971_v22, %v2592_v25  ;;  %v4993_v25 = vld [vmem:[%s7526_s9] sm:$0xff]  }
 0x6d8   : > { %v2639_v32 = vsel %vm2617_vm8, %v2637_v31, %v4976_v26  ;;  %v4994_v26 = vld [vmem:[%s7526_s9 + $0x8] sm:$0xff]  }
 0x6d9   : > { %v2653_v34 = vpack.c.bf16 %v2639_v32, %v2638_v33  ;;  %2603 = vrot.lane.b32.xlu1 %v2596_v30, %s5999_s8  ;;  %v4998_v30 = vld [vmem:[%s7526_s9 + $0x28] sm:$0xff]   ;;  %s7535_s8 = scalar_lea.vmem [#allocation42], %s7534_s27  ;;  %s3153_s9 = scalar_lea.vmem [#allocation9], %s7034_s23 }
 0x6da   : > { %v2580_v37 = vpop.permute.xlu0 %2579  ;;  %s7536_s26 = smov %s7535_s8  ;;  %s7538_s23 = sld [smem:[#allocation111_spill]] }
 0x6db   : > { %4625 = vmatmul.mubr.msk.bf16.vlgmr.msra.gmra.mrb[0].mxu0 %vm2372_vm6, %v2653_v34  ;;  %v2585_v42 = vmul.f32 %v2580_v37, %v7134_v7 }
 0x6dc   : > { %4656 = vmatprep.mubr.msk.bf16.mxu0 %vm5996_vm4, %v5995_v16  ;;  %4645 = vmatpush3.bf16.msra.mxu0 %v4993_v25 }
 0x6dd   : > { %2611 = vrot.lane.b32.xlu1 %v2598_v35, %s5997_s10  ;;  %4646 = vmatprep.subr.bf16.mxu0 %v5995_v16  ;;  %s3069_s10 = scalar_lea.vmem [#allocation9], %s7006_s21  ;;  %s3081_s21 = scalar_lea.vmem [#allocation9], %s7010_s6 }
 0x6de   : > { %s3099_s6 = scalar_lea.vmem [#allocation9], %s7016_s5  ;;  %s3117_s5 = scalar_lea.vmem [#allocation9], %s7022_s7 }
 0x6df   : > { %s3135_s7 = scalar_lea.vmem [#allocation9], %s7028_s11 }
 0x6e0   : > { %4647 = vmatpush3.bf16.msra.mxu0 %v4994_v26  ;;  %p4479_p12 = scmp.ge.s32.totalorder %s7538_s23, 3 }
 0x6e1   : > { %4648 = vmatprep.subr.bf16.mxu0 %v5995_v16  ;;  %s7539_s13 = sld [smem:[#allocation115_spill]] (!%p4479_p12)  ;;  %s7540_s11 = sld [smem:[#allocation114_spill]] (!%p4479_p12)  ;;  %vm6001_vm10 = vmmov (!%p4479_p12), 0  }
 0x6e2   : > { %s6003_s25 = smov (!%p4479_p12), 96  }
 0x6e4   : > { %4649 = vmatpush3.bf16.msra.mxu0 %v4995_v27 }
 0x6e5   : > { %4650 = vmatprep.subr.bf16.mxu0 %v5995_v16 }
 0x6e7   : > { %s7541_s0 = scalar_lea.vmem (!%p4479_p12), [#allocation46], %s7540_s11 }
 0x6e8   : > { %4651 = vmatpush3.bf16.msra.mxu0 %v4996_v28 }
 0x6e9   : > { %4652 = vmatprep.subr.bf16.mxu0 %v5995_v16 }
 0x6ec   : > { %4653 = vmatpush3.bf16.msra.mxu0 %v4997_v29 }
 0x6ed   : > { %4654 = vmatprep.subr.bf16.mxu0 %v5995_v16 }
 0x6f0   : > { %4655 = vmatpush3.bf16.msra.mxu0 %v4998_v30  ;;  %v4458_v30 = vld [vmem:[%s7532_s28] ss:$0 sm:$0xff] }
 0x743   : > { %v2602_v40 = vpop.permute.xlu0 %2601 }
 0x744   : > { %v2615_v43 = vsel %vm2328_vm5, %v2585_v42, %v2602_v40  ;;  %v4449_v40 = vld [vmem:[%s7528_s19] ss:$0 sm:$0xff]  ;;  %s7542_s19 = smov (!%p4479_p12), %s7541_s0 }
 0x747   : > { %v2610_v44 = vpop.permute.xlu0 %2609 }
 0x748   : > { %v2618_v46 = vsel %vm2617_vm8, %v2615_v43, %v2610_v44 }
 0x749   : > { %v2620_v49 = vmul.f32 0.10206208, %v2618_v46 }
 0x74b   : > { %v2604_v45 = vpop.permute.xlu1 %2603  ;;  %v2856_v52 = vsel %vm2372_vm6, %v2620_v49, 0.0 }
 0x74c   : > { %v2616_v50 = vsel %vm2328_vm5, %v2586_v48, %v2604_v45  ;;  %2857 = vadd.xlane.f32.xlu0 %v2856_v52 }
 0x74f   : > { %v2612_v51 = vpop.permute.xlu1 %2611 }
 0x750   : > { %v2619_v53 = vsel %vm2617_vm8, %v2616_v50, %v2612_v51 }
 0x751   : > { %v2621_v55 = vmul.f32 0.10206208, %v2619_v53 }
 0x753   : > { %v2859_v57 = vsel %vm2372_vm6, %v2621_v55, 0.0 }
 0x754   : > { %2860 = vadd.xlane.f32.xlu1 %v2859_v57 }
 0x7ae   : > { %v2733_v59 = vpop.f32.mrb[0].mxu0 }
 0x7af   : > { %v2734_v60 = vadd.f32 %v4432_v58, %v2733_v59  ;;  %v4626_v61 = vpop.f32.mrb[1].mxu0 }
 0x7b0   : > { %v2736_v62 = vpop.f32.mrb[2].mxu0 }
 0x7b1   : > { %v2740_v63 = vsub.f32 0.0, %v2734_v60  ;;  %v2737_v0 = vadd.f32 %v4432_v58, %v2736_v62  ;;  %v4627_v1 = vpop.f32.mrb[3].mxu0 }
 0x7b3   : > { %v2742_v2 = vmul.f32 1.442695, %v2740_v63  ;;  %v2741_v3 = vsub.f32 0.0, %v2737_v0 }
 0x7b5   : > { %5001 = vpow2.f32 %v2742_v2  ;;  %v2744_v4 = vmul.f32 1.442695, %v2741_v3  ;;  %v4450_v3 = vld [vmem:[%s7530_s16] ss:$0 sm:$0xff]  ;;  %s7544_s16 = scalar_lea.vmem (!%p4479_p12), [#allocation49], %s7540_s11 }
 0x7b6   : > { %s7545_s28 = smov (!%p4479_p12), %s7544_s16 }
 0x7b7   : > { %5003 = vpow2.f32 %v2744_v4 }
 0x7bf   : > { %v5002_v5 = vpop.eup %5001 }
 0x7c0   : > { %v2746_v6 = vadd.f32 1.0, %v5002_v5 }
 0x7c1   : > { %v5004_v7 = vpop.eup %5003 }
 0x7c2   : > { %5005 = vrcp.f32 %v2746_v6  ;;  %v2747_v8 = vadd.f32 1.0, %v5004_v7 }
 0x7c4   : > { %5007 = vrcp.f32 %v2747_v8 }
 0x7cc   : > { %v5006_v9 = vpop.eup %5005 }
 0x7cd   : > { %v2752_v11 = vmul.f32 %v5006_v9, %v2734_v60 }
 0x7ce   : > { %v5008_v10 = vpop.eup %5007 }
 0x7cf   : > { %v2753_v12 = vmul.f32 %v5008_v10, %v2737_v0 }
 0x7d1   : > { %v2767_v13 = vpack.c.bf16 %v2753_v12, %v2752_v11 }
 0x7d3   : > { %4641 = vmatmul.mubr.msk.bf16.vlgmr.msra.gmra.mrb[8].mxu1 %vm2372_vm6, %v2767_v13 }
 0x7d4   : > { %4664 = vmatprep.mubr.msk.bf16.mxu1 %vm5996_vm4, %v5995_v16 }
 0x7d9   : > { %v2858_v14 = vpop.xlane.xlu0 %2857 }
 0x7da   : > { %v2863_v15 = vmul.f32 0.010416667, %v2858_v14 }
 0x7dc   : > { %v2865_v17 = vsub.f32 %v2620_v49, %v2863_v15 }
 0x7de   : > { %v2867_v20 = vmul.f32 %v2865_v17, %v2865_v17 }
 0x7e0   : > { %v2869_v22 = vsel %vm2372_vm6, %v2867_v20, 0.0 }
 0x7e1   : > { %v2861_v18 = vpop.xlane.xlu1 %2860  ;;  %2870 = vadd.xlane.f32.xlu0 %v2869_v22 }
 0x7e2   : > { %v2864_v19 = vmul.f32 0.010416667, %v2861_v18 }
 0x7e4   : > { %v2866_v21 = vsub.f32 %v2621_v55, %v2864_v19  ;;  %v4440_v55 = vld [vmem:[%s7529_s2] ss:$0 sm:$0xff]  ;;  %s7543_s2 = scalar_lea.vmem (!%p4479_p12), [#allocation45], %s6855_s15 }
 0x7e6   : > { %v2868_v23 = vmul.f32 %v2866_v21, %v2866_v21 }
 0x7e8   : > { %v2872_v24 = vsel %vm2372_vm6, %v2868_v23, 0.0 }
 0x7e9   : > { %2873 = vadd.xlane.f32.xlu0 %v2872_v24 }
 0x86e   : > { %v2871_v31 = vpop.xlane.xlu0 %2870 }
 0x86f   : > { %v2875_v32 = vmul.f32 0.010416667, %v2871_v31 }
 0x871   : > { %v2877_v33 = vadd.f32 1e-05, %v2875_v32  ;;  %v4459_v32 = vld [vmem:[%s7533_s18] ss:$0 sm:$0xff]  ;;  %s7546_s18 = scalar_lea.vmem (!%p4479_p12), [#allocation48], %s6855_s15 }
 0x873   : > { %5009 = vrsqrt.f32 %v2877_v33 }
 0x876   : > { %v2874_v34 = vpop.xlane.xlu0 %2873 }
 0x877   : > { %v2876_v35 = vmul.f32 0.010416667, %v2874_v34 }
 0x879   : > { %v2878_v36 = vadd.f32 1e-05, %v2876_v35 }
 0x87b   : > { %5011 = vrsqrt.f32 %v2878_v36 }
 0x87d   : > { %v5010_v37 = vpop.eup %5009 }
 0x87e   : > { %v2881_v39 = vmul.f32 %v5010_v37, %v2865_v17 }
 0x880   : > { %v2889_v41 = vmul.f32 %v4448_v38, %v2881_v39  ;;  %v3063_v39 = vld [vmem:[%s3062_s29] sm:$0x1] }
 0x882   : > { %v2897_v43 = vadd.f32 %v4449_v40, %v2889_v41 }
 0x884   : > { %v2899_v45 = vsub.f32 0.0, %v2897_v43 }
 0x885   : > { %v5012_v42 = vpop.eup %5011 }
 0x886   : > { %v2882_v44 = vmul.f32 %v5012_v42, %v2866_v21  ;;  %v2901_v48 = vmul.f32 1.442695, %v2899_v45 }
 0x888   : > { %v2890_v46 = vmul.f32 %v4448_v38, %v2882_v44  ;;  %5013 = vpow2.f32 %v2901_v48  ;;  %v4999_v48 = vld [vmem:[%s7535_s8] sm:$0xff]  }
 0x889   : > { %4661 = vmatpush3.bf16.msra.mxu1 %v4999_v48  ;;  %v3241_v48 = vld [vmem:[#allocation3] sm:$0xff] (!%p4479_p12) }
 0x88a   : > { %v2898_v47 = vadd.f32 %v4449_v40, %v2890_v46  ;;  %4662 = vmatprep.subr.bf16.mxu1 %v5995_v16 }
 0x88c   : > { %v2900_v49 = vsub.f32 0.0, %v2898_v47 }
 0x88e   : > { %v2903_v50 = vmul.f32 1.442695, %v2900_v49  ;;  %v5000_v49 = vld [vmem:[%s7536_s26 + $0x8] sm:$0xff]  }
 0x88f   : > { %4663 = vmatpush3.bf16.msra.mxu1 %v5000_v49 }
 0x890   : > { %5015 = vpow2.f32 %v2903_v50 }
 0x892   : > { %v5014_v51 = vpop.eup %5013 }
 0x893   : > { %v2905_v53 = vadd.f32 1.0, %v5014_v51 }
 0x895   : > { %5017 = vrcp.f32 %v2905_v53 }
 0x89a   : > { %v5016_v52 = vpop.eup %5015 }
 0x89b   : > { %v2906_v54 = vadd.f32 1.0, %v5016_v52 }
 0x89d   : > { %5019 = vrcp.f32 %v2906_v54 }
 0x89f   : > { %v5018_v60 = vpop.eup %5017 }
 0x8a6   : > { %v2847_v56 = vpop.f32.mrb[8].mxu1 }
 0x8a7   : > { %v2848_v57 = vadd.f32 %v4440_v55, %v2847_v56  ;;  %v4642_v58 = vpop.f32.mrb[9].mxu1  ;;  %v5020_v63 = vpop.eup %5019 }
 0x8a8   : > { %v2850_v59 = vpop.f32.mrb[10].mxu1 }
 0x8a9   : > { %v2851_v61 = vadd.f32 %v4440_v55, %v2850_v59  ;;  %v4643_v62 = vpop.f32.mrb[11].mxu1  ;;  %v2911_v0 = vmul.f32 %v5018_v60, %v2848_v57 }
 0x8ab   : > { %v2912_v1 = vmul.f32 %v5020_v63, %v2851_v61 }
 0x8ad   : > { %v2926_v2 = vpack.c.bf16 %v2912_v1, %v2911_v0 }
 0x8af   : > { %4657 = vmatmul.mubr.msk.bf16.vlgmr.msra.gmra.mrb[4].mxu0 %vm2372_vm6, %v2926_v2 }
 0x982   : > { %v3006_v4 = vpop.f32.mrb[4].mxu0 }
 0x983   : > { %v3007_v5 = vadd.f32 %v4450_v3, %v3006_v4  ;;  %v4658_v6 = vpop.f32.mrb[5].mxu0 }
 0x984   : > { %v3009_v7 = vpop.f32.mrb[6].mxu0 }
 0x985   : > { %v3010_v8 = vadd.f32 %v4450_v3, %v3009_v7  ;;  %v4659_v9 = vpop.f32.mrb[7].mxu0  ;;  %v3015_v10 = vsel %vm2328_vm5, %v3007_v5, 0.0 }
 0x986   : > { %3016 = vadd.xlane.f32.xlu1 %v3015_v10 }
 0x987   : > { %v3018_v11 = vsel %vm2328_vm5, %v3010_v8, 0.0 }
 0x98a   : > { %3019 = vadd.xlane.f32.xlu1 %v3018_v11 }
 0xa13   : > { %v3017_v12 = vpop.xlane.xlu1 %3016 }
 0xa14   : > { %v3022_v13 = vmul.f32 0.03125, %v3017_v12 }
 0xa16   : > { %v3024_v14 = vsub.f32 %v3007_v5, %v3022_v13 }
 0xa17   : > { %v3020_v15 = vpop.xlane.xlu1 %3019 }
 0xa18   : > { %v3023_v17 = vmul.f32 0.03125, %v3020_v15  ;;  %v3026_v18 = vmul.f32 %v3024_v14, %v3024_v14 }
 0xa1a   : > { %v3025_v19 = vsub.f32 %v3010_v8, %v3023_v17  ;;  %v3028_v20 = vsel %vm2328_vm5, %v3026_v18, 0.0 }
 0xa1b   : > { %3029 = vadd.xlane.f32.xlu0 %v3028_v20 }
 0xa1c   : > { %v3027_v21 = vmul.f32 %v3025_v19, %v3025_v19 }
 0xa1e   : > { %v3031_v22 = vsel %vm2328_vm5, %v3027_v21, 0.0 }
 0xa1f   : > { %3032 = vadd.xlane.f32.xlu0 %v3031_v22 }
 0xaa8   : > { %v3030_v23 = vpop.xlane.xlu0 %3029 }
 0xaa9   : > { %v3034_v24 = vmul.f32 0.03125, %v3030_v23 }
 0xaab   : > { %v3036_v25 = vadd.f32 1e-05, %v3034_v24 }
 0xaac   : > { %v3033_v26 = vpop.xlane.xlu0 %3032 }
 0xaad   : > { %5021 = vrsqrt.f32 %v3036_v25  ;;  %v3035_v27 = vmul.f32 0.03125, %v3033_v26 }
 0xaaf   : > { %v3037_v28 = vadd.f32 1e-05, %v3035_v27  ;;  %v4475_v27 = vld [vmem:[%s7537_s12] ss:$0 sm:$0xff] }
 0xab1   : > { %5023 = vrsqrt.f32 %v3037_v28 }
 0xab7   : > { %v5022_v29 = vpop.eup %5021 }
 0xab8   : > { %v3040_v31 = vmul.f32 %v5022_v29, %v3024_v14 }
 0xaba   : > { %v3048_v33 = vmul.f32 %v4458_v30, %v3040_v31 }
 0xabb   : > { %v5024_v34 = vpop.eup %5023 }
 0xabc   : > { %v3056_v35 = vadd.f32 %v4459_v32, %v3048_v33  ;;  %v3041_v36 = vmul.f32 %v5024_v34, %v3025_v19  ;;  %v5029_v34 = vld [vmem:[#allocation2] sm:$0xff] }
 0xabe   : > { %3058 = vst.msk [vmem:[#allocation8] sm:$0xff] %vm2328_vm5, %v3056_v35  ;;  %v3049_v37 = vmul.f32 %v4458_v30, %v3041_v36 }
 0xac0   : > { %v3057_v38 = vadd.f32 %v4459_v32, %v3049_v37 }
 0xac2   : > { %3059 = vst.msk [vmem:[#allocation8 + $0x8] sm:$0xff] %vm2328_vm5, %v3057_v38 }
 0xac5   : > { %v3064_v40 = vld [vmem:[#allocation8] sm:$0x1]  ;;  %v3071_v43 = vld [vmem:[#allocation8 + $0x1] sm:$0x1]  ;;  %v3077_v46 = vld [vmem:[#allocation8 + $0x2] sm:$0x1] }
 0xac6   : > { %v3065_v41 = vadd.f32 %v3064_v40, %v3063_v39  ;;  %v3083_v51 = vld [vmem:[#allocation8 + $0x3] sm:$0x1]  ;;  %v3089_v54 = vld [vmem:[#allocation8 + $0x4] sm:$0x1]  ;;  %v3095_v57 = vld [vmem:[#allocation8 + $0x5] sm:$0x1] }
 0xac7   : > { %v3101_v59 = vld [vmem:[#allocation8 + $0x6] sm:$0x1]  ;;  %v3107_v62 = vld [vmem:[#allocation8 + $0x7] sm:$0x1] }
 0xac8   : > { %3067 = vst.msk [vmem:[%s3062_s29] sm:$0x1] %vm3066_vm9, %v3065_v41  ;;  %s7547_s29 = scalar_lea.vmem (!%p4479_p12), [#allocation51], %s6855_s15 }
 0xac9   : > { %v3113_v1 = vld [vmem:[#allocation8 + $0x8] sm:$0x1]  ;;  %v3119_v4 = vld [vmem:[#allocation8 + $0x9] sm:$0x1]  ;;  %v3125_v7 = vld [vmem:[#allocation8 + $0xa] sm:$0x1] }
 0xaca   : > { %v3131_v10 = vld [vmem:[#allocation8 + $0xb] sm:$0x1]  ;;  %v3137_v13 = vld [vmem:[#allocation8 + $0xc] sm:$0x1]  ;;  %v3143_v17 = vld [vmem:[#allocation8 + $0xd] sm:$0x1] }
 0xacb   : > { %v3149_v20 = vld [vmem:[#allocation8 + $0xe] sm:$0x1]  ;;  %v3155_v23 = vld [vmem:[#allocation8 + $0xf] sm:$0x1] }
 0xacf   : > { %v3070_v42 = vld [vmem:[%s3069_s10] sm:$0x1] }
 0xad0   : > { %v3072_v44 = vadd.f32 %v3071_v43, %v3070_v42 }
 0xad2   : > { %3073 = vst.msk [vmem:[%s3069_s10] sm:$0x1] %vm3066_vm9, %v3072_v44 }
 0xad9   : > { %v3076_v45 = vld [vmem:[%s3075_s30] sm:$0x1] }
 0xada   : > { %v3078_v47 = vadd.f32 %v3077_v46, %v3076_v45  ;;  %v5030_v45 = vld [vmem:[%s7539_s13] sm:$0xff] (!%p4479_p12)   ;;  %v6000_v46 = vmov (!%p4479_p12), 0.0  }
 0xadb   : > { %4668 = vmatprep.subr.bf16.mxu0 (!%p4479_p12), %v6000_v46  ;;  %4676 = vmatprep.subr.bf16.mxu1 (!%p4479_p12), %v6000_v46 }
 0xadc   : > { %3079 = vst.msk [vmem:[%s3075_s30] sm:$0x1] %vm3066_vm9, %v3078_v47  ;;  %v5031_v47 = vld [vmem:[%s7539_s13 + $0x8] sm:$0xff] (!%p4479_p12)   ;;  %4669 = vmatpush3.bf16.msra.mxu0 (!%p4479_p12), %v5030_v45  ;;  %4672 = vmatprep.mubr.msk.bf16.mxu0 (!%p4479_p12), %vm6001_vm10, %v6000_v46 }
 0xadd   : > { %4670 = vmatprep.subr.bf16.mxu0 (!%p4479_p12), %v6000_v46 }
 0xae0   : > { %4671 = vmatpush3.bf16.msra.mxu0 (!%p4479_p12), %v5031_v47 }
 0xae1   : > { %4684 = vmatprep.subr.bf16.mxu0 (!%p4479_p12), %v6000_v46 }
 0xae3   : > { %v3082_v50 = vld [vmem:[%s3081_s21] sm:$0x1] }
 0xae4   : > { %v3084_v52 = vadd.f32 %v3083_v51, %v3082_v50  ;;  %v5032_v50 = vld [vmem:[%s7541_s0] sm:$0xff] (!%p4479_p12)  }
 0xae6   : > { %3085 = vst.msk [vmem:[%s3081_s21] sm:$0x1] %vm3066_vm9, %v3084_v52 }
 0xaed   : > { %v3088_v53 = vld [vmem:[%s3087_s17] sm:$0x1] }
 0xaee   : > { %v3090_v55 = vadd.f32 %v3089_v54, %v3088_v53  ;;  %v5033_v53 = vld [vmem:[%s7542_s19 + $0x8] sm:$0xff] (!%p4479_p12)   ;;  %v4480_v54 = vld [vmem:[%s7543_s2] ss:$0 sm:$0xff] (!%p4479_p12) }
 0xaf0   : > { %3091 = vst.msk [vmem:[%s3087_s17] sm:$0x1] %vm3066_vm9, %v3090_v55 }
 0xaf7   : > { %v3094_v56 = vld [vmem:[%s3093_s22] sm:$0x1] }
 0xaf8   : > { %v3096_v16 = vadd.f32 %v3095_v57, %v3094_v56 }
 0xafa   : > { %3097 = vst.msk [vmem:[%s3093_s22] sm:$0x1] %vm3066_vm9, %v3096_v16 }
 0xb01   : > { %v3100_v58 = vld [vmem:[%s3099_s6] sm:$0x1] }
 0xb02   : > { %v3102_v60 = vadd.f32 %v3101_v59, %v3100_v58 }
 0xb04   : > { %3103 = vst.msk [vmem:[%s3099_s6] sm:$0x1] %vm3066_vm9, %v3102_v60 }
 0xb0b   : > { %v3106_v61 = vld [vmem:[%s3105_s24] sm:$0x1] }
 0xb0c   : > { %v3108_v63 = vadd.f32 %v3107_v62, %v3106_v61 }
 0xb0e   : > { %3109 = vst.msk [vmem:[%s3105_s24] sm:$0x1] %vm3066_vm9, %v3108_v63 }
 0xb15   : > { %v3112_v0 = vld [vmem:[%s3111_s20] sm:$0x1] }
 0xb16   : > { %v3114_v2 = vadd.f32 %v3113_v1, %v3112_v0 }
 0xb18   : > { %3115 = vst.msk [vmem:[%s3111_s20] sm:$0x1] %vm3066_vm9, %v3114_v2 }
 0xb1f   : > { %v3118_v3 = vld [vmem:[%s3117_s5] sm:$0x1] }
 0xb20   : > { %v3120_v5 = vadd.f32 %v3119_v4, %v3118_v3 }
 0xb22   : > { %3121 = vst.msk [vmem:[%s3117_s5] sm:$0x1] %vm3066_vm9, %v3120_v5 }
 0xb29   : > { %v3124_v6 = vld [vmem:[%s3123_s14] sm:$0x1] }
 0xb2a   : > { %v3126_v8 = vadd.f32 %v3125_v7, %v3124_v6 }
 0xb2c   : > { %3127 = vst.msk [vmem:[%s3123_s14] sm:$0x1] %vm3066_vm9, %v3126_v8 }
 0xb33   : > { %v3130_v9 = vld [vmem:[%s3129_s1] sm:$0x1] }
 0xb34   : > { %v3132_v11 = vadd.f32 %v3131_v10, %v3130_v9 }
 0xb36   : > { %3133 = vst.msk [vmem:[%s3129_s1] sm:$0x1] %vm3066_vm9, %v3132_v11 }
 0xb3d   : > { %v3136_v12 = vld [vmem:[%s3135_s7] sm:$0x1] }
 0xb3e   : > { %v3138_v14 = vadd.f32 %v3137_v13, %v3136_v12  ;;  %v5034_v12 = vld [vmem:[%s7544_s16] sm:$0xff] (!%p4479_p12)  }
 0xb40   : > { %3139 = vst.msk [vmem:[%s3135_s7] sm:$0x1] %vm3066_vm9, %v3138_v14 }
 0xb47   : > { %v3142_v15 = vld [vmem:[%s3141_s3] sm:$0x1] }
 0xb48   : > { %v3144_v18 = vadd.f32 %v3143_v17, %v3142_v15 }
 0xb4a   : > { %3145 = vst.msk [vmem:[%s3141_s3] sm:$0x1] %vm3066_vm9, %v3144_v18  ;;  %v6002_v18 = vmov (!%p4479_p12), 1.0  }
 0xb51   : > { %v3148_v19 = vld [vmem:[%s3147_s4] sm:$0x1] }
 0xb52   : > { %v3150_v21 = vadd.f32 %v3149_v20, %v3148_v19 }
 0xb54   : > { %3151 = vst.msk [vmem:[%s3147_s4] sm:$0x1] %vm3066_vm9, %v3150_v21 }
 0xb5b   : > { %v3154_v22 = vld [vmem:[%s3153_s9] sm:$0x1] }
 0xb5c   : > { %v3156_v24 = vadd.f32 %v3155_v23, %v3154_v22 }
 0xb5e   : > { %3157 = vst.msk [vmem:[%s3153_s9] sm:$0x1] %vm3066_vm9, %v3156_v24  ;;  %v5035_v24 = vld [vmem:[%s7545_s28 + $0x8] sm:$0xff] (!%p4479_p12)  }
 0xb65   : > { %v3158_v25 = vld [vmem:[#allocation9] sm:$0xff] }
 0xb66   : > { %v3164_v26 = vpack.c.bf16 %v3158_v25, %v3158_v25  ;;  %v4484_v25 = vld [vmem:[%s7546_s18] ss:$0 sm:$0xff] (!%p4479_p12) }
 0xb68   : > { %4665 = vmatmul.mubr.msk.bf16.vlgmr.msra.gmra.mrb[12].mxu1 %vm2328_vm5, %v3164_v26 }
 0xb69   : > { %4680 = vmatprep.mubr.msk.bf16.mxu1 (!%p4479_p12), %vm6001_vm10, %v6000_v46  ;;  %4677 = vmatpush3.bf16.msra.mxu1 (!%p4479_p12), %v5032_v50 }
 0xb6a   : > { %4678 = vmatprep.subr.bf16.mxu1 (!%p4479_p12), %v6000_v46 }
 0xb6d   : > { %4679 = vmatpush3.bf16.msra.mxu1 (!%p4479_p12), %v5033_v53 }
 0xc3b   : > { %v3220_v28 = vpop.f32.mrb[12].mxu1 }
 0xc3c   : > { %v3221_v29 = vadd.f32 %v4475_v27, %v3220_v28  ;;  %v4666_v30 = vpop.f32.mrb[13].mxu1 }
 0xc3d   : > { %v3223_v31 = vpop.f32.mrb[14].mxu1 }
 0xc3e   : > { %v3226_v32 = vmul.f32 0.999995, %v3221_v29  ;;  %v4667_v33 = vpop.f32.mrb[15].mxu1 }
 0xc40   : > { %v3227_v35 = vadd.f32 %v5029_v34, %v3226_v32  ;;  %v4488_v34 = vld [vmem:[%s7547_s29] ss:$0 sm:$0xff] (!%p4479_p12) }
 0xc42   : > { %v3229_v36 = vand.u32 2147483647, %v3227_v35  ;;  %v3228_v42 = vmax.f32 %v3227_v35, 0.0 }
 0xc44   : > { %v3230_v37 = vsub.f32 0.0, %v3229_v36 }
 0xc46   : > { %v3231_v38 = vmul.f32 1.442695, %v3230_v37 }
 0xc48   : > { %5025 = vpow2.f32 %v3231_v38 }
 0xc52   : > { %v5026_v39 = vpop.eup %5025 }
 0xc53   : > { %v3233_v40 = vadd.f32 1.0, %v5026_v39 }
 0xc55   : > { %5027 = vlog2.f32 %v3233_v40 }
 0xc5c   : > { %3240 = sbr.rel (%p4479_p12) target bundleno = 3829 (0xef5), region = 292 }
 0xc5f   : > { %v5028_v41 = vpop.eup %5027 }
 0xc60   : > { %v3235_v43 = vmul.f32 0.6931472, %v5028_v41 }
 0xc62   : > { %v7264_v44 = vadd.f32 %v3235_v43, %v3228_v42 }
 0xc64   : > { %v3242_v49 = vadd.f32 %v3241_v48, %v7264_v44 }
 0xc66   : > { %v3243_v51 = vmul.f32 0.999995, %v3242_v49  ;;  %3479 = vst.msk [vmem:[#allocation3] sm:$0xff] %vm2328_vm5, %v3242_v49 }
 0xc68   : > { %v3249_v52 = vpack.c.bf16 %v3243_v51, %v3243_v51 }
 0xc6a   : > { %4673 = vmatmul.mubr.msk.bf16.vlgmr.msra.gmra.mrb[0].mxu0 %vm2328_vm5, %v3249_v52 }
 0xc6b   : > { %4688 = vmatprep.mubr.msk.bf16.mxu0 %vm6001_vm10, %v6000_v46  ;;  %4685 = vmatpush3.bf16.msra.mxu0 %v5034_v12 }
 0xc6c   : > { %4686 = vmatprep.subr.bf16.mxu0 %v6000_v46 }
 0xc6f   : > { %4687 = vmatpush3.bf16.msra.mxu0 %v5035_v24 }
 0xd3d   : > { %v3305_v55 = vpop.f32.mrb[0].mxu0 }
 0xd3e   : > { %v3306_v56 = vadd.f32 %v4480_v54, %v3305_v55  ;;  %v4674_v57 = vpop.f32.mrb[1].mxu0 }
 0xd3f   : > { %v3308_v16 = vpop.f32.mrb[2].mxu0 }
 0xd40   : > { %v3379_v58 = vmul.f32 0.70710677, %v3306_v56  ;;  %v4675_v59 = vpop.f32.mrb[3].mxu0  ;;  %v3316_v60 = vpack.c.bf16 %v3306_v56, %v3306_v56  ;;  %v3378_v21 = vmul.f32 0.5, %v3306_v56 }
 0xd42   : > { %v3382_v61 = vand.u32 2147483647, %v3379_v58  ;;  %4681 = vmatmul.mubr.msk.bf16.vlgmr.msra.gmra.mrb[0].mxu1 %vm2328_vm5, %v3316_v60  ;;  %vm3380_vm11 = vcmp.lt.f32.partialorder %v3379_v58, 0.0 }
 0xd43   : > { %v3381_v19 = vsel %vm3380_vm11, -1.0, %v6002_v18 }
 0xd44   : > { %v3383_v62 = vmul.f32 0.3275911, %v3382_v61  ;;  %v3396_v0 = vsub.f32 0.0, %v3382_v61 }
 0xd46   : > { %v3384_v63 = vadd.f32 1.0, %v3383_v62  ;;  %v3397_v2 = vmul.f32 %v3396_v0, %v3382_v61 }
 0xd48   : > { %5036 = vrcp.f32 %v3384_v63  ;;  %v3398_v5 = vmul.f32 1.442695, %v3397_v2 }
 0xd4a   : > { %5038 = vpow2.f32 %v3398_v5 }
 0xd52   : > { %v5037_v1 = vpop.eup %5036 }
 0xd53   : > { %v3387_v3 = vmul.f32 1.0614054, %v5037_v1 }
 0xd54   : > { %v5039_v14 = vpop.eup %5038 }
 0xd55   : > { %v3388_v4 = vadd.f32 -1.4531521, %v3387_v3 }
 0xd57   : > { %v3389_v6 = vmul.f32 %v5037_v1, %v3388_v4 }
 0xd59   : > { %v3390_v7 = vadd.f32 1.4214138, %v3389_v6 }
 0xd5b   : > { %v3391_v8 = vmul.f32 %v5037_v1, %v3390_v7 }
 0xd5d   : > { %v3392_v9 = vadd.f32 -0.28449672, %v3391_v8 }
 0xd5f   : > { %v3393_v10 = vmul.f32 %v5037_v1, %v3392_v9 }
 0xd61   : > { %v3394_v11 = vadd.f32 0.2548296, %v3393_v10 }
 0xd63   : > { %v3395_v13 = vmul.f32 %v5037_v1, %v3394_v11 }
 0xd65   : > { %v3400_v15 = vmul.f32 %v5039_v14, %v3395_v13 }
 0xd67   : > { %v3401_v17 = vsub.f32 1.0, %v3400_v15 }
 0xd69   : > { %v3402_v20 = vmul.f32 %v3401_v17, %v3381_v19 }
 0xd6b   : > { %v3403_v22 = vadd.f32 1.0, %v3402_v20 }
 0xd6d   : > { %v3404_v23 = vmul.f32 %v3403_v22, %v3378_v21 }
 0xd6f   : > { %3406 = vrot.lane.b32.xlu0 %v3404_v23, %s6003_s25 }
 0xde1   : > { %v3407_v29 = vpop.permute.xlu0 %3406 }
 0xe15   : > { %v3372_v26 = vpop.f32.mrb[0].mxu1 }
 0xe16   : > { %v3373_v27 = vadd.f32 %v4484_v25, %v3372_v26  ;;  %v4682_v28 = vpop.f32.mrb[1].mxu1 }
 0xe17   : > { %v3375_v30 = vpop.f32.mrb[2].mxu1 }
 0xe18   : > { %v3409_v31 = vmul.f32 %v3407_v29, %v3373_v27  ;;  %v4683_v32 = vpop.f32.mrb[3].mxu1 }
 0xe1a   : > { %v3415_v33 = vpack.c.bf16 %v3409_v31, %v3409_v31 }
 0xe1c   : > { %4689 = vmatmul.mubr.msk.bf16.vlgmr.msra.gmra.mrb[4].mxu0 %vm2328_vm5, %v3415_v33 }
 0xeef   : > { %v3471_v35 = vpop.f32.mrb[4].mxu0 }
 0xef0   : > { %v3472_v36 = vadd.f32 %v4488_v34, %v3471_v35  ;;  %v4690_v37 = vpop.f32.mrb[5].mxu0 }
 0xef1   : > { %v3474_v38 = vpop.f32.mrb[6].mxu0 }
 0xef2   : > { %v3477_v39 = vadd.f32 %v3472_v36, %v7264_v44  ;;  %v4691_v40 = vpop.f32.mrb[7].mxu0 }
 0xef4   : > { %3478 = vst.msk [vmem:[#allocation2] sm:$0xff] %vm2328_vm5, %v3477_v39 }
 0xef5 PF: > { %3483 = sbr.rel (%p1960_p9) target bundleno = 3836 (0xefc), region = 296  ;;  %3484 = vst.msk [vmem:[#allocation2] sm:$0xff] (!%p1960_p9), %vm2328_vm5, %v7264_v44 }
 0xefc PF: > { %s7549_s10 = sld [smem:[#allocation111_spill]] }
 0xf02   : > { %p4493_p11 = scmp.ne.s32.totalorder %s7549_s10, 3 }
 0xf03   : > { %v3489_v41 = vld [vmem:[#allocation2] sm:$0xff] (!%p4493_p11)  ;;  %s7550_s15 = sld [smem:[#allocation103_spill]] (!%p4493_p11)  ;;  %vm3491_vm12 = vcmask (!%p4493_p11), 64512   ;;  %v6004_v43 = vmov (!%p4493_p11), 0.0   ;;  %vm6005_vm13 = vmmov (!%p4493_p11), 0   ;;  %s7551_s30 = sld [smem:[#allocation106_spill]] (!%p4493_p11) }
 0xf04   : > { %3488 = sbr.rel (%p4493_p11) target bundleno = 4527 (0x11af), region = 300  ;;  %4692 = vmatprep.subr.mxu0 (!%p4493_p11), %v6004_v43  ;;  %4694 = vmatprep.mubr.msk.f32.mxu0 (!%p4493_p11), %vm6005_vm13, %v6004_v43  ;;  %v5040_v45 = vld [vmem:[#allocation52] sm:$0xff] (!%p4493_p11)   ;;  %v5041_v44 = vld [vmem:[#allocation52 + $0x8] sm:$0xff] (!%p4493_p11)   ;;  %v6006_v52 = vmov (!%p4493_p11), 0.0|0.0   ;;  %v4495_v56 = vld [vmem:[#allocation54] ss:$0 sm:$0xff] (!%p4493_p11) }
 0xf05   : > { %4693 = vmatpush3.msra.mxu0 (!%p4493_p11), %v3489_v41  ;;  %4697 = vmatprep.subr.bf16.mxu1 (!%p4493_p11), %v6004_v43  ;;  %s7552_s8 = sld [smem:[#allocation107_spill]] (!%p4493_p11)  ;;  %s7553_s26 = sld [smem:[#allocation108_spill]] (!%p4493_p11)  ;;  %v4499_v5 = vld [vmem:[#allocation13] ss:$0 sm:$0xff] (!%p4493_p11)  ;;  %vm3727_vm14 = vcmask (!%p4493_p11), 1024  }
 0xf06   : > { %4698 = vmatpush3.bf16.msra.mxu1 (!%p4493_p11), %v5040_v45  ;;  %4701 = vmatprep.mubr.msk.bf16.mxu1 (!%p4493_p11), %vm6005_vm13, %v6004_v43 }
 0xf07   : > { %4699 = vmatprep.subr.bf16.mxu1 (!%p4493_p11), %v6004_v43  ;;  %4716 = vmatprep.subr.bf16.mxu0 (!%p4493_p11), %v6006_v52 }
 0xf09   : > { %v3490_v42 = vld [vmem:[%s7550_s15] sm:$0x3] (!%p4493_p11)  ;;  %v3641_v50 = vld [vmem:[%s7551_s30 + $0x8] sm:$0xff] (!%p4493_p11)  ;;  %v3642_v53 = vld [vmem:[%s7551_s30 + $0x10] sm:$0xff] (!%p4493_p11) }
 0xf0a   : > { %4695 = vmatmul.mubr.msk.f32.vlgmr.msra.gmra.mrb[0].mxu0 (!%p4493_p11), %vm3491_vm12, %v3490_v42  ;;  %4700 = vmatpush3.bf16.msra.mxu1 (!%p4493_p11), %v5041_v44  ;;  %v3640_v49 = vld [vmem:[%s7551_s30] sm:$0xff] (!%p4493_p11)  ;;  %v3643_v54 = vld [vmem:[%s7551_s30 + $0x18] sm:$0xff] (!%p4493_p11) }
 0xf0b   : > { %4713 = vmatprep.mubr.msk.f32.mxu0 %vm6005_vm13, %v6004_v43  ;;  %v4717_v51 = vpack.c.bf16 %v3641_v50, %v3640_v49  ;;  %v4720_v55 = vpack.c.bf16 %v3643_v54, %v3642_v53  ;;  %v3724_v4 = vld [vmem:[%s7552_s8] sm:$0x3] }
 0xf0d   : > { %4718 = vmatpush3.bf16.msra.mxu0 %v4717_v51 }
 0xf0e   : > { %4719 = vmatprep.subr.bf16.mxu0 %v6006_v52 }
 0xf11   : > { %4721 = vmatpush3.bf16.msra.mxu0 %v4720_v55 }
 0xfdd   : > { %v3561_v46 = vpop.f32.mrb[0].mxu0 }
 0xfde   : > { %v3570_v47 = vpack.c.bf16 %v3561_v46, %v3561_v46  ;;  %v4696_v48 = vpop.f32.mrb[1].mxu0 }
 0xfe0   : > { %4702 = vmatmul.mubr.msk.bf16.vlgmr.msra.gmra.mrb[0].mxu1 %vm2328_vm5, %v3570_v47 }
0x10b3   : > { %v3626_v57 = vpop.f32.mrb[0].mxu1 }
0x10b4   : > { %v3627_v16 = vadd.f32 %v4495_v56, %v3626_v57  ;;  %v4703_v58 = vpop.f32.mrb[1].mxu1 }
0x10b5   : > { %v3629_v59 = vpop.f32.mrb[2].mxu1 }
0x10b6   : > { %v3632_v60 = vsub.f32 0.0, %v3627_v16  ;;  %v4704_v61 = vpop.f32.mrb[3].mxu1 }
0x10b8   : > { %v3633_v62 = vmul.f32 1.442695, %v3632_v60 }
0x10ba   : > { %5042 = vpow2.f32 %v3633_v62 }
0x10c4   : > { %v5043_v63 = vpop.eup %5042 }
0x10c5   : > { %v3635_v0 = vadd.f32 1.0, %v5043_v63 }
0x10c7   : > { %5044 = vrcp.f32 %v3635_v0 }
0x10c8   : > { %5046 = vrcp.f32 %v3724_v4 }
0x10d1   : > { %v5045_v1 = vpop.eup %5044 }
0x10d2   : > { %v3638_v2 = vmul.f32 %v5045_v1, %v3627_v16  ;;  %v5047_v6 = vpop.eup %5046 }
0x10d4   : > { %v3639_v3 = vadd.f32 %v3638_v2, %v3561_v46 }
0x10d6   : > { %4714 = vmatmul.mubr.msk.f32.vlgmr.msra.gmra.mrb[2].mxu0 %vm2328_vm5, %v3639_v3 }
0x11a9   : > { %v3720_v7 = vpop.f32.mrb[2].mxu0 }
0x11aa   : > { %v3721_v8 = vadd.f32 %v4499_v5, %v3720_v7  ;;  %v4715_v9 = vpop.f32.mrb[3].mxu0 }
0x11ac   : > { %v3726_v10 = vmul.f32 %v5047_v6, %v3721_v8 }
0x11ae   : > { %3728 = vst.msk [vmem:[%s7553_s26] sm:$0x3] %vm3727_vm14, %v3726_v10 }
0x11af PF: > { %s7554_s19 = sld [smem:[#allocation112_spill]]  ;;  %s7555_s0 = sld [smem:[#allocation109_spill]] }
0x11b0   : > { %s7556_s22 = sld [smem:[#allocation110_spill]]  ;;  %s7557_s26 = sld [smem:[#allocation113_spill]] }
0x11b5   : > { %p134_p13 = scmp.ge.s32.totalorder %s7554_s19, 6  }
0x11b7   :  { %136 = sbr.rel (!%p134_p13) target bundleno = 129 (0x81), region = 569 }
0x11be   :  { %3740 = vsyncpa [#allocation15], 1 }
0x11bf   :  { %3742 = vsyncpa [#allocation15 + $0x1], 1 }
0x11c0   :  { %3743 = vsyncpa [#allocation17], 1 }
0x11c1   :  { %3744 = vsyncpa [#allocation20], 1 }
0x11c2   :  { %3745 = vsyncpa [#allocation23], 1 }
0x11c3   :  { %3746 = vsyncpa [#allocation26], 1 }
0x11c4   :  { %3748 = vsyncpa [#allocation26 + $0x1], 1 }
0x11c5   :  { %3749 = vsyncpa [#allocation29], 1 }
0x11c6   :  { %3751 = vsyncpa [#allocation29 + $0x1], 1 }
0x11c7   :  { %3752 = vsyncpa [#allocation32], 1 }
0x11c8   :  { %3754 = vsyncpa [#allocation32 + $0x1], 1 }
0x11c9   :  { %3755 = vsyncpa [#allocation35], 1 }
0x11ca   :  { %3757 = vsyncpa [#allocation35 + $0x1], 1 }
0x11cb   :  { %3758 = vsyncpa [#allocation38], 1 }
0x11cc   :  { %3760 = vsyncpa [#allocation38 + $0x1], 1 }
0x11cd   :  { %3761 = vsyncpa [#allocation41], 1 }
0x11ce   :  { %3763 = vsyncpa [#allocation41 + $0x1], 1 }
0x11cf   :  { %3764 = vsyncpa [#allocation44], 1 }
0x11d0   :  { %3766 = vsyncpa [#allocation44 + $0x1], 1 }
0x11d1   :  { %3767 = vsyncpa [#allocation47], 1 }
0x11d2   :  { %3769 = vsyncpa [#allocation47 + $0x1], 1 }
0x11d3   :  { %3770 = vsyncpa [#allocation50], 1 }
0x11d4   :  { %3772 = vsyncpa [#allocation50 + $0x1], 1 }
0x11d5   :  { %3773 = vsyncpa [#allocation53], 1 }

</bundles_post_ra>
